<compile_context>
chip_gen: v7x
topology: tpu7x:2x2x1
jax: 0.10.0
libtpu: 0.0.40
codegen_flags: <defaults>
</compile_context>

<pallas_src>
import functools

import jax
import jax.numpy as jnp
from jax.experimental import pallas as pl
from jax.experimental.pallas import tpu as pltpu


# ----------------------------------------------------------------------------
# Fused kernel: conv1 + ReLU + LN + mask -> conv2 + ReLU + LN + mask -> proj
# ----------------------------------------------------------------------------
def _duration_predictor_kernel(
    x_ref,        # (Bb, T, Cin) bf16  raw (unmasked, unpadded) activations, NTC
    mtc_ref,      # (Bb, T, 1)   f32   mask, channel-broadcast form
    mrow_ref,     # (Bb, 1, T)   f32   mask, lane-dense form
    w1_ref,       # (K*Cin, Cf)  bf16  conv_1 weights, tap-major
    w2_ref,       # (K*Cf, Cf)   bf16  conv_2 weights, tap-major
    pvec_ref,     # (8, Cf)      f32   [b1, g1, be1, b2, g2, be2, wp, unused]
    bp_ref,       # (1,)         f32   proj bias (SMEM scalar)
    o_ref,        # (Bb, 1, T)   f32   output (lane-dense)
    xp_ref,       # scratch VMEM (Bb*Tp, Cin) bf16  stacked padded conv1 input
    hp_ref,       # scratch VMEM (Bb*Tp, Cf)  bf16  stacked padded conv2 input
    *, Bb, T, K, pad, eps,
):
    cin = x_ref.shape[2]
    cf = w1_ref.shape[1]
    Tp = T + 2 * pad
    Mv = Bb * Tp - 2 * pad          # rows of valid (per-element "same"-conv) output

    pv = pvec_ref[...]
    b1, g1, be1 = pv[0:1, :], pv[1:2, :], pv[2:3, :]
    b2, g2, be2 = pv[3:4, :], pv[4:5, :], pv[5:6, :]
    wp = pv[6:7, :]
    bp = bp_ref[0]

    # ---- fold mask-mul + zero-padding into VMEM scratch (bf16, stacked batch) ----
    zin = jnp.zeros((pad, cin), jnp.bfloat16)
    zh = jnp.zeros((pad, cf), jnp.bfloat16)
    for i in range(Bb):
        base = i * Tp
        m_b = mtc_ref[i].astype(jnp.bfloat16)                     # (T, 1)
        xp_ref[pl.ds(base, pad), :] = zin
        xp_ref[pl.ds(base + pad, T), :] = x_ref[i] * m_b           # x * mask, cast once
        xp_ref[pl.ds(base + pad + T, pad), :] = zin
        hp_ref[pl.ds(base, pad), :] = zh                           # conv2 halos
        hp_ref[pl.ds(base + pad + T, pad), :] = zh

    # ---- conv_1: K shifted bf16 dots over the whole stacked batch (M = Mv) ----
    acc = jnp.zeros((Mv, cf), jnp.float32)
    for k in range(K):
        acc += jnp.dot(
            xp_ref[pl.ds(k, Mv), :],
            w1_ref[pl.ds(k * cin, cin), :],
            preferred_element_type=jnp.float32,
        )
    h = jnp.maximum(acc + b1, 0.0)

    # ---- LayerNorm over channels (one-pass stats) ----
    mu = jnp.mean(h, axis=-1, keepdims=True)
    var = jnp.maximum(jnp.mean(h * h, axis=-1, keepdims=True) - mu * mu, 0.0)
    h = (h - mu) * jax.lax.rsqrt(var + eps) * g1 + be1

    # ---- dropout = identity (eval); mask + scatter into padded hidden scratch ----
    for i in range(Bb):
        hp_ref[pl.ds(i * Tp + pad, T), :] = (
            h[i * Tp:i * Tp + T] * mtc_ref[i]
        ).astype(jnp.bfloat16)

    # ---- conv_2 ----
    acc2 = jnp.zeros((Mv, cf), jnp.float32)
    for k in range(K):
        acc2 += jnp.dot(
            hp_ref[pl.ds(k, Mv), :],
            w2_ref[pl.ds(k * cf, cf), :],
            preferred_element_type=jnp.float32,
        )
    h2 = jnp.maximum(acc2 + b2, 0.0)
    mu2 = jnp.mean(h2, axis=-1, keepdims=True)
    var2 = jnp.maximum(jnp.mean(h2 * h2, axis=-1, keepdims=True) - mu2 * mu2, 0.0)
    h2 = (h2 - mu2) * jax.lax.rsqrt(var2 + eps) * g2 + be2

    # ---- proj (Cout = 1): lane reduction per frame, one small transpose, then
    #      lane-dense (1, T) row stores ----
    cols = []
    for i in range(Bb):
        h2m = h2[i * Tp:i * Tp + T] * mtc_ref[i]                   # mask before proj
        cols.append(jnp.sum(h2m * wp, axis=-1, keepdims=True))     # (T, 1)
    y_bt = jnp.concatenate(cols, axis=1).T + bp                    # (Bb, T) lane-dense
    for i in range(Bb):
        o_ref[i] = (y_bt[i:i + 1, :] * mrow_ref[i]).astype(o_ref.dtype)


# ----------------------------------------------------------------------------
# Wrapper: layout plumbing + pallas_call
# ----------------------------------------------------------------------------
def duration_predictor_forward(x, x_mask, params, kernel_size, g=None, block_b=None):
    """x: (B, Cin, T) f32, x_mask: (B, 1, T) f32 -> (B, 1, T) f32."""
    # TODO(synk): gin_channels > 0 path (x += cond(g), a 1x1 conv) not implemented;
    # the default module config (gin_channels=0, g=None) is what we run here.
    assert g is None
    assert kernel_size % 2 == 1

    B, Cin, T = x.shape
    K = kernel_size
    pad = K // 2
    Tp = T + 2 * pad
    Cf = params["w1"].shape[0]

    # Bb batch elements per grid step; keep >= 2 grid blocks when possible (v7x has
    # 2 TensorCores), and Bb must divide B.
    if block_b is None:
        block_b = B // 2 if (B % 2 == 0 and B >= 2) else B
    assert B % block_b == 0
    n_blocks = B // block_b

    # Lane-dense NTC activations, bf16 in HBM (halves DMA bytes; MXU operands are
    # bf16 anyway). Masking / padding happens inside the kernel.
    x_ntc = jnp.transpose(x, (0, 2, 1)).astype(jnp.bfloat16)           # (B, T, Cin)
    mask_tc = jnp.transpose(x_mask, (0, 2, 1)).astype(jnp.float32)     # (B, T, 1)
    mask_row = x_mask.astype(jnp.float32)                              # (B, 1, T)

    # torch Conv1d weight (Cout, Cin, K) -> tap-major (K*Cin, Cout), bf16 for the MXU.
    w1_2d = jnp.transpose(params["w1"], (2, 1, 0)).reshape(K * Cin, Cf).astype(jnp.bfloat16)
    w2_2d = jnp.transpose(params["w2"], (2, 1, 0)).reshape(K * Cf, Cf).astype(jnp.bfloat16)

    # Pack all per-channel vectors into one aligned (8, Cf) f32 tile.
    pvec = jnp.stack(
        [params["b1"], params["g1"], params["be1"],
         params["b2"], params["g2"], params["be2"],
         params["wp"][0, :, 0], jnp.zeros((Cf,), jnp.float32)],
        axis=0).astype(jnp.float32)                                    # (8, Cf)
    bp = params["bp"].reshape(1).astype(jnp.float32)                   # (1,) SMEM scalar

    kernel = functools.partial(
        _duration_predictor_kernel, Bb=block_b, T=T, K=K, pad=pad, eps=1e-5)

    out = pl.pallas_call(
        kernel,
        out_shape=jax.ShapeDtypeStruct((B, 1, T), jnp.float32),
        grid_spec=pltpu.PrefetchScalarGridSpec(
            num_scalar_prefetch=0,
            grid=(n_blocks,),
            in_specs=[
                pl.BlockSpec((block_b, T, Cin), lambda b: (b, 0, 0)),   # x (bf16)
                pl.BlockSpec((block_b, T, 1), lambda b: (b, 0, 0)),     # mask (T,1) form
                pl.BlockSpec((block_b, 1, T), lambda b: (b, 0, 0)),     # mask (1,T) form
                pl.BlockSpec((K * Cin, Cf), lambda b: (0, 0)),          # w1
                pl.BlockSpec((K * Cf, Cf), lambda b: (0, 0)),           # w2
                pl.BlockSpec((8, Cf), lambda b: (0, 0)),                # packed params
                pl.BlockSpec(memory_space=pltpu.MemorySpace.SMEM),      # proj bias
            ],
            out_specs=pl.BlockSpec((block_b, 1, T), lambda b: (b, 0, 0)),
            scratch_shapes=[
                pltpu.VMEM((block_b * Tp, Cin), jnp.bfloat16),          # padded conv1 in
                pltpu.VMEM((block_b * Tp, Cf), jnp.bfloat16),           # padded conv2 in
            ],
        ),
        compiler_params=pltpu.CompilerParams(
            dimension_semantics=("parallel",),
        ),
    )(x_ntc, mask_tc, mask_row, w1_2d, w2_2d, pvec, bp)

    return out                                                          # (B, 1, T)


# ----------------------------------------------------------------------------
# Deterministic synthetic parameters (weight_norm is identity at forward time)
# ----------------------------------------------------------------------------
def init_params(key, in_channels, filter_channels, kernel_size):
    ks = jax.random.split(key, 10)

    def w_init(k, shape, fan_in):
        return jax.random.normal(k, shape, jnp.float32) / jnp.sqrt(float(fan_in))

    return {
        "w1": w_init(ks[0], (filter_channels, in_channels, kernel_size),
                     in_channels * kernel_size),
        "b1": 0.01 * jax.random.normal(ks[1], (filter_channels,), jnp.float32),
        "g1": 1.0 + 0.1 * jax.random.normal(ks[2], (filter_channels,), jnp.float32),
        "be1": 0.1 * jax.random.normal(ks[3], (filter_channels,), jnp.float32),
        "w2": w_init(ks[4], (filter_channels, filter_channels, kernel_size),
                     filter_channels * kernel_size),
        "b2": 0.01 * jax.random.normal(ks[5], (filter_channels,), jnp.float32),
        "g2": 1.0 + 0.1 * jax.random.normal(ks[6], (filter_channels,), jnp.float32),
        "be2": 0.1 * jax.random.normal(ks[7], (filter_channels,), jnp.float32),
        "wp": w_init(ks[8], (1, filter_channels, 1), filter_channels),
        "bp": 0.01 * jax.random.normal(ks[9], (1,), jnp.float32),
    }


# ----------------------------------------------------------------------------
# Pure-JAX reference (f32) for a sanity check
# ----------------------------------------------------------------------------
def _conv1d_ref(x, w, b, pad):
    out = jax.lax.conv_general_dilated(
        x, w, window_strides=(1,), padding=[(pad, pad)],
        dimension_numbers=("NCH", "OIH", "NCH"))
    return out + b[None, :, None]


def _layer_norm_ref(x, gamma, beta, eps=1e-5):
    mu = jnp.mean(x, axis=1, keepdims=True)
    var = jnp.mean(jnp.square(x - mu), axis=1, keepdims=True)
    xn = (x - mu) * jax.lax.rsqrt(var + eps)
    return xn * gamma[None, :, None] + beta[None, :, None]


def duration_predictor_reference(x, x_mask, params, kernel_size):
    pad = kernel_size // 2
    h = _conv1d_ref(x * x_mask, params["w1"], params["b1"], pad)
    h = jnp.maximum(h, 0.0)
    h = _layer_norm_ref(h, params["g1"], params["be1"])
    h = _conv1d_ref(h * x_mask, params["w2"], params["b2"], pad)
    h = jnp.maximum(h, 0.0)
    h = _layer_norm_ref(h, params["g2"], params["be2"])
    y = _conv1d_ref(h * x_mask, params["wp"], params["bp"], 0)
    return y * x_mask


if __name__ == "__main__":
    key = jax.random.PRNGKey(0)
    k_param, k_x = jax.random.split(key)

    B, Cin, Cf, K, T = 8, 64, 128, 3, 48
    params = init_params(k_param, Cin, Cf, K)
    x = jax.random.normal(k_x, (B, Cin, T), jnp.float32)
    lengths = jnp.array([T, T - 11, T - 5, 7, T, T - 20, 1, T - 3], jnp.int32)
    x_mask = (jnp.arange(T)[None, :] < lengths[:, None]).astype(jnp.float32)[:, None, :]

    fwd = jax.jit(functools.partial(duration_predictor_forward, kernel_size=K))
    out = fwd(x, x_mask, params)
    jax.block_until_ready(out)

    ref = duration_predictor_reference(x, x_mask, params, K)
    err = float(jnp.max(jnp.abs(out - ref)))

    assert out.shape == (B, 1, T), out.shape
    # bf16 MXU operands (same as a bf16-weight torch deployment) -> ~1e-2 deviation
    # from the f32 reference; outputs are O(1).
    assert err < 0.15, f"max abs diff vs reference too large: {err}"
    print("KERNEL_OK")
</pallas_src>

<mosaic_0001>
module attributes {stable_mosaic.version = 11 : i64} {
  func.func @_duration_predictor_kernel(%arg0: i32, %arg1: memref<4x48x64xbf16, #tpu.memory_space<vmem>>, %arg2: memref<4x48x1xf32, #tpu.memory_space<vmem>>, %arg3: memref<4x1x48xf32, #tpu.memory_space<vmem>>, %arg4: memref<192x128xbf16, #tpu.memory_space<vmem>>, %arg5: memref<384x128xbf16, #tpu.memory_space<vmem>>, %arg6: memref<8x128xf32, #tpu.memory_space<vmem>>, %arg7: memref<1xf32, #tpu.memory_space<smem>>, %arg8: memref<4x1x48xf32, #tpu.memory_space<vmem>>, %arg9: memref<200x64xbf16, #tpu.memory_space<vmem>>, %arg10: memref<200x128xbf16, #tpu.memory_space<vmem>>) attributes {dimension_semantics = [#tpu.dimension_semantics<parallel>], iteration_bounds = array<i64: 2>, scalar_prefetch = 0 : i64, scratch_operands = 2 : i64, tpu.core_type = #tpu.core_type<tc>, window_params = [{transform_indices = @transform_0, window_bounds = array<i64: 4, 48, 64>}, {transform_indices = @transform_1, window_bounds = array<i64: 4, 48, 1>}, {transform_indices = @transform_2, window_bounds = array<i64: 4, 1, 48>}, {pipeline_mode = #tpu.pipeline_mode<synchronous>, transform_indices = @transform_3, window_bounds = array<i64: 192, 128>}, {pipeline_mode = #tpu.pipeline_mode<synchronous>, transform_indices = @transform_4, window_bounds = array<i64: 384, 128>}, {pipeline_mode = #tpu.pipeline_mode<synchronous>, transform_indices = @transform_5, window_bounds = array<i64: 8, 128>}, {transform_indices = @transform_6, window_bounds = array<i64: 1>}, {transform_indices = @transform_7, window_bounds = array<i64: 4, 1, 48>}]} {
    %c0 = arith.constant 0 : index
    %c0_0 = arith.constant 0 : index
    %0 = vector.load %arg6[%c0, %c0_0] : memref<8x128xf32, #tpu.memory_space<vmem>>, vector<8x128xf32>
    %1 = vector.extract_strided_slice %0 {offsets = [0, 0], sizes = [1, 128], strides = [1, 1]} : vector<8x128xf32> to vector<1x128xf32>
    %2 = vector.extract_strided_slice %0 {offsets = [1, 0], sizes = [1, 128], strides = [1, 1]} : vector<8x128xf32> to vector<1x128xf32>
    %3 = vector.extract_strided_slice %0 {offsets = [2, 0], sizes = [1, 128], strides = [1, 1]} : vector<8x128xf32> to vector<1x128xf32>
    %4 = vector.extract_strided_slice %0 {offsets = [3, 0], sizes = [1, 128], strides = [1, 1]} : vector<8x128xf32> to vector<1x128xf32>
    %5 = vector.extract_strided_slice %0 {offsets = [4, 0], sizes = [1, 128], strides = [1, 1]} : vector<8x128xf32> to vector<1x128xf32>
    %6 = vector.extract_strided_slice %0 {offsets = [5, 0], sizes = [1, 128], strides = [1, 1]} : vector<8x128xf32> to vector<1x128xf32>
    %7 = vector.extract_strided_slice %0 {offsets = [6, 0], sizes = [1, 128], strides = [1, 1]} : vector<8x128xf32> to vector<1x128xf32>
    %c0_1 = arith.constant 0 : index
    %8 = memref.load %arg7[%c0_1] : memref<1xf32, #tpu.memory_space<smem>>
    %cst = arith.constant 0.000000e+00 : bf16
    %9 = vector.broadcast %cst : bf16 to vector<1x64xbf16>
    %cst_2 = arith.constant 0.000000e+00 : bf16
    %10 = vector.broadcast %cst_2 : bf16 to vector<1x128xbf16>
    %c0_3 = arith.constant 0 : index
    %c0_4 = arith.constant 0 : index
    %c0_5 = arith.constant 0 : index
    %11 = vector.load %arg2[%c0_3, %c0_4, %c0_5] : memref<4x48x1xf32, #tpu.memory_space<vmem>>, vector<1x48x1xf32>
    %12 = vector.shape_cast %11 : vector<1x48x1xf32> to vector<48x1xf32>
    %13 = arith.truncf %12 : vector<48x1xf32> to vector<48x1xbf16>
    %c0_6 = arith.constant 0 : index
    %c0_7 = arith.constant 0 : index
    %14 = vector.load %arg9[%c0_6, %c0_7] : memref<200x64xbf16, #tpu.memory_space<vmem>>, vector<1x64xbf16>
    tpu.vector_store %arg9[%c0_6, %c0_7], %9 {strides = array<i32>} : memref<200x64xbf16, #tpu.memory_space<vmem>>, vector<1x64xbf16>,
    %c0_8 = arith.constant 0 : index
    %c0_9 = arith.constant 0 : index
    %c0_10 = arith.constant 0 : index
    %15 = vector.load %arg1[%c0_8, %c0_9, %c0_10] : memref<4x48x64xbf16, #tpu.memory_space<vmem>>, vector<1x48x64xbf16>
    %16 = vector.shape_cast %15 : vector<1x48x64xbf16> to vector<48x64xbf16>
    %17 = vector.broadcast %13 : vector<48x1xbf16> to vector<48x64xbf16>
    %18 = arith.mulf %16, %17 : vector<48x64xbf16>
    %c1 = arith.constant 1 : index
    %c0_11 = arith.constant 0 : index
    %19 = vector.load %arg9[%c1, %c0_11] : memref<200x64xbf16, #tpu.memory_space<vmem>>, vector<48x64xbf16>
    tpu.vector_store %arg9[%c1, %c0_11], %18 {strides = array<i32>} : memref<200x64xbf16, #tpu.memory_space<vmem>>, vector<48x64xbf16>,
    %c49 = arith.constant 49 : index
    %c0_12 = arith.constant 0 : index
    %20 = vector.load %arg9[%c49, %c0_12] : memref<200x64xbf16, #tpu.memory_space<vmem>>, vector<1x64xbf16>
    tpu.vector_store %arg9[%c49, %c0_12], %9 {strides = array<i32>} : memref<200x64xbf16, #tpu.memory_space<vmem>>, vector<1x64xbf16>,
    %c0_13 = arith.constant 0 : index
    %c0_14 = arith.constant 0 : index
    %21 = vector.load %arg10[%c0_13, %c0_14] : memref<200x128xbf16, #tpu.memory_space<vmem>>, vector<1x128xbf16>
    tpu.vector_store %arg10[%c0_13, %c0_14], %10 {strides = array<i32>} : memref<200x128xbf16, #tpu.memory_space<vmem>>, vector<1x128xbf16>,
    %c49_15 = arith.constant 49 : index
    %c0_16 = arith.constant 0 : index
    %22 = vector.load %arg10[%c49_15, %c0_16] : memref<200x128xbf16, #tpu.memory_space<vmem>>, vector<1x128xbf16>
    tpu.vector_store %arg10[%c49_15, %c0_16], %10 {strides = array<i32>} : memref<200x128xbf16, #tpu.memory_space<vmem>>, vector<1x128xbf16>,
    %c1_17 = arith.constant 1 : index
    %c0_18 = arith.constant 0 : index
    %c0_19 = arith.constant 0 : index
    %23 = vector.load %arg2[%c1_17, %c0_18, %c0_19] : memref<4x48x1xf32, #tpu.memory_space<vmem>>, vector<1x48x1xf32>
    %24 = vector.shape_cast %23 : vector<1x48x1xf32> to vector<48x1xf32>
    %25 = arith.truncf %24 : vector<48x1xf32> to vector<48x1xbf16>
    %c50 = arith.constant 50 : index
    %c0_20 = arith.constant 0 : index
    %26 = vector.load %arg9[%c50, %c0_20] : memref<200x64xbf16, #tpu.memory_space<vmem>>, vector<1x64xbf16>
    tpu.vector_store %arg9[%c50, %c0_20], %9 {strides = array<i32>} : memref<200x64xbf16, #tpu.memory_space<vmem>>, vector<1x64xbf16>,
    %c1_21 = arith.constant 1 : index
    %c0_22 = arith.constant 0 : index
    %c0_23 = arith.constant 0 : index
    %27 = vector.load %arg1[%c1_21, %c0_22, %c0_23] : memref<4x48x64xbf16, #tpu.memory_space<vmem>>, vector<1x48x64xbf16>
    %28 = vector.shape_cast %27 : vector<1x48x64xbf16> to vector<48x64xbf16>
    %29 = vector.broadcast %25 : vector<48x1xbf16> to vector<48x64xbf16>
    %30 = arith.mulf %28, %29 : vector<48x64xbf16>
    %c51 = arith.constant 51 : index
    %c0_24 = arith.constant 0 : index
    %31 = vector.load %arg9[%c51, %c0_24] : memref<200x64xbf16, #tpu.memory_space<vmem>>, vector<48x64xbf16>
    tpu.vector_store %arg9[%c51, %c0_24], %30 {strides = array<i32>} : memref<200x64xbf16, #tpu.memory_space<vmem>>, vector<48x64xbf16>,
    %c99 = arith.constant 99 : index
    %c0_25 = arith.constant 0 : index
    %32 = vector.load %arg9[%c99, %c0_25] : memref<200x64xbf16, #tpu.memory_space<vmem>>, vector<1x64xbf16>
    tpu.vector_store %arg9[%c99, %c0_25], %9 {strides = array<i32>} : memref<200x64xbf16, #tpu.memory_space<vmem>>, vector<1x64xbf16>,
    %c50_26 = arith.constant 50 : index
    %c0_27 = arith.constant 0 : index
    %33 = vector.load %arg10[%c50_26, %c0_27] : memref<200x128xbf16, #tpu.memory_space<vmem>>, vector<1x128xbf16>
    tpu.vector_store %arg10[%c50_26, %c0_27], %10 {strides = array<i32>} : memref<200x128xbf16, #tpu.memory_space<vmem>>, vector<1x128xbf16>,
    %c99_28 = arith.constant 99 : index
    %c0_29 = arith.constant 0 : index
    %34 = vector.load %arg10[%c99_28, %c0_29] : memref<200x128xbf16, #tpu.memory_space<vmem>>, vector<1x128xbf16>
    tpu.vector_store %arg10[%c99_28, %c0_29], %10 {strides = array<i32>} : memref<200x128xbf16, #tpu.memory_space<vmem>>, vector<1x128xbf16>,
    %c2 = arith.constant 2 : index
    %c0_30 = arith.constant 0 : index
    %c0_31 = arith.constant 0 : index
    %35 = vector.load %arg2[%c2, %c0_30, %c0_31] : memref<4x48x1xf32, #tpu.memory_space<vmem>>, vector<1x48x1xf32>
    %36 = vector.shape_cast %35 : vector<1x48x1xf32> to vector<48x1xf32>
    %37 = arith.truncf %36 : vector<48x1xf32> to vector<48x1xbf16>
    %c100 = arith.constant 100 : index
    %c0_32 = arith.constant 0 : index
    %38 = vector.load %arg9[%c100, %c0_32] : memref<200x64xbf16, #tpu.memory_space<vmem>>, vector<1x64xbf16>
    tpu.vector_store %arg9[%c100, %c0_32], %9 {strides = array<i32>} : memref<200x64xbf16, #tpu.memory_space<vmem>>, vector<1x64xbf16>,
    %c2_33 = arith.constant 2 : index
    %c0_34 = arith.constant 0 : index
    %c0_35 = arith.constant 0 : index
    %39 = vector.load %arg1[%c2_33, %c0_34, %c0_35] : memref<4x48x64xbf16, #tpu.memory_space<vmem>>, vector<1x48x64xbf16>
    %40 = vector.shape_cast %39 : vector<1x48x64xbf16> to vector<48x64xbf16>
    %41 = vector.broadcast %37 : vector<48x1xbf16> to vector<48x64xbf16>
    %42 = arith.mulf %40, %41 : vector<48x64xbf16>
    %c101 = arith.constant 101 : index
    %c0_36 = arith.constant 0 : index
    %43 = vector.load %arg9[%c101, %c0_36] : memref<200x64xbf16, #tpu.memory_space<vmem>>, vector<48x64xbf16>
    tpu.vector_store %arg9[%c101, %c0_36], %42 {strides = array<i32>} : memref<200x64xbf16, #tpu.memory_space<vmem>>, vector<48x64xbf16>,
    %c149 = arith.constant 149 : index
    %c0_37 = arith.constant 0 : index
    %44 = vector.load %arg9[%c149, %c0_37] : memref<200x64xbf16, #tpu.memory_space<vmem>>, vector<1x64xbf16>
    tpu.vector_store %arg9[%c149, %c0_37], %9 {strides = array<i32>} : memref<200x64xbf16, #tpu.memory_space<vmem>>, vector<1x64xbf16>,
    %c100_38 = arith.constant 100 : index
    %c0_39 = arith.constant 0 : index
    %45 = vector.load %arg10[%c100_38, %c0_39] : memref<200x128xbf16, #tpu.memory_space<vmem>>, vector<1x128xbf16>
    tpu.vector_store %arg10[%c100_38, %c0_39], %10 {strides = array<i32>} : memref<200x128xbf16, #tpu.memory_space<vmem>>, vector<1x128xbf16>,
    %c149_40 = arith.constant 149 : index
    %c0_41 = arith.constant 0 : index
    %46 = vector.load %arg10[%c149_40, %c0_41] : memref<200x128xbf16, #tpu.memory_space<vmem>>, vector<1x128xbf16>
    tpu.vector_store %arg10[%c149_40, %c0_41], %10 {strides = array<i32>} : memref<200x128xbf16, #tpu.memory_space<vmem>>, vector<1x128xbf16>,
    %c3 = arith.constant 3 : index
    %c0_42 = arith.constant 0 : index
    %c0_43 = arith.constant 0 : index
    %47 = vector.load %arg2[%c3, %c0_42, %c0_43] : memref<4x48x1xf32, #tpu.memory_space<vmem>>, vector<1x48x1xf32>
    %48 = vector.shape_cast %47 : vector<1x48x1xf32> to vector<48x1xf32>
    %49 = arith.truncf %48 : vector<48x1xf32> to vector<48x1xbf16>
    %c150 = arith.constant 150 : index
    %c0_44 = arith.constant 0 : index
    %50 = vector.load %arg9[%c150, %c0_44] : memref<200x64xbf16, #tpu.memory_space<vmem>>, vector<1x64xbf16>
    tpu.vector_store %arg9[%c150, %c0_44], %9 {strides = array<i32>} : memref<200x64xbf16, #tpu.memory_space<vmem>>, vector<1x64xbf16>,
    %c3_45 = arith.constant 3 : index
    %c0_46 = arith.constant 0 : index
    %c0_47 = arith.constant 0 : index
    %51 = vector.load %arg1[%c3_45, %c0_46, %c0_47] : memref<4x48x64xbf16, #tpu.memory_space<vmem>>, vector<1x48x64xbf16>
    %52 = vector.shape_cast %51 : vector<1x48x64xbf16> to vector<48x64xbf16>
    %53 = vector.broadcast %49 : vector<48x1xbf16> to vector<48x64xbf16>
    %54 = arith.mulf %52, %53 : vector<48x64xbf16>
    %c151 = arith.constant 151 : index
    %c0_48 = arith.constant 0 : index
    %55 = vector.load %arg9[%c151, %c0_48] : memref<200x64xbf16, #tpu.memory_space<vmem>>, vector<48x64xbf16>
    tpu.vector_store %arg9[%c151, %c0_48], %54 {strides = array<i32>} : memref<200x64xbf16, #tpu.memory_space<vmem>>, vector<48x64xbf16>,
    %c199 = arith.constant 199 : index
    %c0_49 = arith.constant 0 : index
    %56 = vector.load %arg9[%c199, %c0_49] : memref<200x64xbf16, #tpu.memory_space<vmem>>, vector<1x64xbf16>
    tpu.vector_store %arg9[%c199, %c0_49], %9 {strides = array<i32>} : memref<200x64xbf16, #tpu.memory_space<vmem>>, vector<1x64xbf16>,
    %c150_50 = arith.constant 150 : index
    %c0_51 = arith.constant 0 : index
    %57 = vector.load %arg10[%c150_50, %c0_51] : memref<200x128xbf16, #tpu.memory_space<vmem>>, vector<1x128xbf16>
    tpu.vector_store %arg10[%c150_50, %c0_51], %10 {strides = array<i32>} : memref<200x128xbf16, #tpu.memory_space<vmem>>, vector<1x128xbf16>,
    %c199_52 = arith.constant 199 : index
    %c0_53 = arith.constant 0 : index
    %58 = vector.load %arg10[%c199_52, %c0_53] : memref<200x128xbf16, #tpu.memory_space<vmem>>, vector<1x128xbf16>
    tpu.vector_store %arg10[%c199_52, %c0_53], %10 {strides = array<i32>} : memref<200x128xbf16, #tpu.memory_space<vmem>>, vector<1x128xbf16>,
    %cst_54 = arith.constant 0.000000e+00 : f32
    %59 = vector.broadcast %cst_54 : f32 to vector<198x128xf32>
    %c0_55 = arith.constant 0 : index
    %c0_56 = arith.constant 0 : index
    %60 = vector.load %arg9[%c0_55, %c0_56] : memref<200x64xbf16, #tpu.memory_space<vmem>>, vector<198x64xbf16>
    %c0_57 = arith.constant 0 : index
    %c0_58 = arith.constant 0 : index
    %61 = vector.load %arg4[%c0_57, %c0_58] : memref<192x128xbf16, #tpu.memory_space<vmem>>, vector<64x128xbf16>
    %cst_59 = arith.constant dense<0.000000e+00> : vector<198x128xf32>
    %62 = tpu.matmul %60, %61, %cst_59 {dimension_numbers = #tpu.dot_dimension_numbers<[1], [0], [0], [1], [0, 0, 1, 1], [], []>} : vector<198x64xbf16>, vector<64x128xbf16>, vector<198x128xf32> -> vector<198x128xf32>
    %63 = arith.addf %59, %62 : vector<198x128xf32>
    %c1_60 = arith.constant 1 : index
    %c0_61 = arith.constant 0 : index
    %64 = vector.load %arg9[%c1_60, %c0_61] : memref<200x64xbf16, #tpu.memory_space<vmem>>, vector<198x64xbf16>
    %c64 = arith.constant 64 : index
    %c0_62 = arith.constant 0 : index
    %65 = vector.load %arg4[%c64, %c0_62] : memref<192x128xbf16, #tpu.memory_space<vmem>>, vector<64x128xbf16>
    %cst_63 = arith.constant dense<0.000000e+00> : vector<198x128xf32>
    %66 = tpu.matmul %64, %65, %cst_63 {dimension_numbers = #tpu.dot_dimension_numbers<[1], [0], [0], [1], [0, 0, 1, 1], [], []>} : vector<198x64xbf16>, vector<64x128xbf16>, vector<198x128xf32> -> vector<198x128xf32>
    %67 = arith.addf %63, %66 : vector<198x128xf32>
    %c2_64 = arith.constant 2 : index
    %c0_65 = arith.constant 0 : index
    %68 = vector.load %arg9[%c2_64, %c0_65] : memref<200x64xbf16, #tpu.memory_space<vmem>>, vector<198x64xbf16>
    %c128 = arith.constant 128 : index
    %c0_66 = arith.constant 0 : index
    %69 = vector.load %arg4[%c128, %c0_66] : memref<192x128xbf16, #tpu.memory_space<vmem>>, vector<64x128xbf16>
    %cst_67 = arith.constant dense<0.000000e+00> : vector<198x128xf32>
    %70 = tpu.matmul %68, %69, %cst_67 {dimension_numbers = #tpu.dot_dimension_numbers<[1], [0], [0], [1], [0, 0, 1, 1], [], []>} : vector<198x64xbf16>, vector<64x128xbf16>, vector<198x128xf32> -> vector<198x128xf32>
    %71 = arith.addf %67, %70 : vector<198x128xf32>
    %72 = vector.broadcast %1 : vector<1x128xf32> to vector<198x128xf32>
    %73 = arith.addf %71, %72 : vector<198x128xf32>
    %cst_68 = arith.constant 0.000000e+00 : f32
    %74 = vector.broadcast %cst_68 : f32 to vector<198x128xf32>
    %75 = arith.maximumf %73, %74 : vector<198x128xf32>
    %cst_69 = arith.constant dense<0.000000e+00> : vector<198xf32>
    %76 = vector.multi_reduction <add>, %75, %cst_69 [1] : vector<198x128xf32> to vector<198xf32>
    %77 = vector.shape_cast %76 : vector<198xf32> to vector<198x1xf32>
    %cst_70 = arith.constant 1.280000e+02 : f32
    %78 = vector.broadcast %cst_70 : f32 to vector<198x1xf32>
    %79 = arith.divf %77, %78 : vector<198x1xf32>
    %80 = arith.mulf %75, %75 : vector<198x128xf32>
    %cst_71 = arith.constant dense<0.000000e+00> : vector<198xf32>
    %81 = vector.multi_reduction <add>, %80, %cst_71 [1] : vector<198x128xf32> to vector<198xf32>
    %82 = vector.shape_cast %81 : vector<198xf32> to vector<198x1xf32>
    %cst_72 = arith.constant 1.280000e+02 : f32
    %83 = vector.broadcast %cst_72 : f32 to vector<198x1xf32>
    %84 = arith.divf %82, %83 : vector<198x1xf32>
    %85 = arith.mulf %79, %79 : vector<198x1xf32>
    %86 = arith.subf %84, %85 : vector<198x1xf32>
    %cst_73 = arith.constant 0.000000e+00 : f32
    %87 = vector.broadcast %cst_73 : f32 to vector<198x1xf32>
    %88 = arith.maximumf %86, %87 : vector<198x1xf32>
    %89 = vector.broadcast %79 : vector<198x1xf32> to vector<198x128xf32>
    %90 = arith.subf %75, %89 : vector<198x128xf32>
    %cst_74 = arith.constant 9.99999974E-6 : f32
    %91 = vector.broadcast %cst_74 : f32 to vector<198x1xf32>
    %92 = arith.addf %88, %91 : vector<198x1xf32>
    %93 = math.rsqrt %92 : vector<198x1xf32>
    %94 = vector.broadcast %93 : vector<198x1xf32> to vector<198x128xf32>
    %95 = arith.mulf %90, %94 : vector<198x128xf32>
    %96 = vector.broadcast %2 : vector<1x128xf32> to vector<198x128xf32>
    %97 = arith.mulf %95, %96 : vector<198x128xf32>
    %98 = vector.broadcast %3 : vector<1x128xf32> to vector<198x128xf32>
    %99 = arith.addf %97, %98 : vector<198x128xf32>
    %100 = vector.extract_strided_slice %99 {offsets = [0, 0], sizes = [48, 128], strides = [1, 1]} : vector<198x128xf32> to vector<48x128xf32>
    %c0_75 = arith.constant 0 : index
    %c0_76 = arith.constant 0 : index
    %c0_77 = arith.constant 0 : index
    %101 = vector.load %arg2[%c0_75, %c0_76, %c0_77] : memref<4x48x1xf32, #tpu.memory_space<vmem>>, vector<1x48x1xf32>
    %102 = vector.shape_cast %101 : vector<1x48x1xf32> to vector<48x1xf32>
    %103 = vector.broadcast %102 : vector<48x1xf32> to vector<48x128xf32>
    %104 = arith.mulf %100, %103 : vector<48x128xf32>
    %105 = arith.truncf %104 : vector<48x128xf32> to vector<48x128xbf16>
    %c1_78 = arith.constant 1 : index
    %c0_79 = arith.constant 0 : index
    %106 = vector.load %arg10[%c1_78, %c0_79] : memref<200x128xbf16, #tpu.memory_space<vmem>>, vector<48x128xbf16>
    tpu.vector_store %arg10[%c1_78, %c0_79], %105 {strides = array<i32>} : memref<200x128xbf16, #tpu.memory_space<vmem>>, vector<48x128xbf16>,
    %107 = vector.extract_strided_slice %99 {offsets = [50, 0], sizes = [48, 128], strides = [1, 1]} : vector<198x128xf32> to vector<48x128xf32>
    %c1_80 = arith.constant 1 : index
    %c0_81 = arith.constant 0 : index
    %c0_82 = arith.constant 0 : index
    %108 = vector.load %arg2[%c1_80, %c0_81, %c0_82] : memref<4x48x1xf32, #tpu.memory_space<vmem>>, vector<1x48x1xf32>
    %109 = vector.shape_cast %108 : vector<1x48x1xf32> to vector<48x1xf32>
    %110 = vector.broadcast %109 : vector<48x1xf32> to vector<48x128xf32>
    %111 = arith.mulf %107, %110 : vector<48x128xf32>
    %112 = arith.truncf %111 : vector<48x128xf32> to vector<48x128xbf16>
    %c51_83 = arith.constant 51 : index
    %c0_84 = arith.constant 0 : index
    %113 = vector.load %arg10[%c51_83, %c0_84] : memref<200x128xbf16, #tpu.memory_space<vmem>>, vector<48x128xbf16>
    tpu.vector_store %arg10[%c51_83, %c0_84], %112 {strides = array<i32>} : memref<200x128xbf16, #tpu.memory_space<vmem>>, vector<48x128xbf16>,
    %114 = vector.extract_strided_slice %99 {offsets = [100, 0], sizes = [48, 128], strides = [1, 1]} : vector<198x128xf32> to vector<48x128xf32>
    %c2_85 = arith.constant 2 : index
    %c0_86 = arith.constant 0 : index
    %c0_87 = arith.constant 0 : index
    %115 = vector.load %arg2[%c2_85, %c0_86, %c0_87] : memref<4x48x1xf32, #tpu.memory_space<vmem>>, vector<1x48x1xf32>
    %116 = vector.shape_cast %115 : vector<1x48x1xf32> to vector<48x1xf32>
    %117 = vector.broadcast %116 : vector<48x1xf32> to vector<48x128xf32>
    %118 = arith.mulf %114, %117 : vector<48x128xf32>
    %119 = arith.truncf %118 : vector<48x128xf32> to vector<48x128xbf16>
    %c101_88 = arith.constant 101 : index
    %c0_89 = arith.constant 0 : index
    %120 = vector.load %arg10[%c101_88, %c0_89] : memref<200x128xbf16, #tpu.memory_space<vmem>>, vector<48x128xbf16>
    tpu.vector_store %arg10[%c101_88, %c0_89], %119 {strides = array<i32>} : memref<200x128xbf16, #tpu.memory_space<vmem>>, vector<48x128xbf16>,
    %121 = vector.extract_strided_slice %99 {offsets = [150, 0], sizes = [48, 128], strides = [1, 1]} : vector<198x128xf32> to vector<48x128xf32>
    %c3_90 = arith.constant 3 : index
    %c0_91 = arith.constant 0 : index
    %c0_92 = arith.constant 0 : index
    %122 = vector.load %arg2[%c3_90, %c0_91, %c0_92] : memref<4x48x1xf32, #tpu.memory_space<vmem>>, vector<1x48x1xf32>
    %123 = vector.shape_cast %122 : vector<1x48x1xf32> to vector<48x1xf32>
    %124 = vector.broadcast %123 : vector<48x1xf32> to vector<48x128xf32>
    %125 = arith.mulf %121, %124 : vector<48x128xf32>
    %126 = arith.truncf %125 : vector<48x128xf32> to vector<48x128xbf16>
    %c151_93 = arith.constant 151 : index
    %c0_94 = arith.constant 0 : index
    %127 = vector.load %arg10[%c151_93, %c0_94] : memref<200x128xbf16, #tpu.memory_space<vmem>>, vector<48x128xbf16>
    tpu.vector_store %arg10[%c151_93, %c0_94], %126 {strides = array<i32>} : memref<200x128xbf16, #tpu.memory_space<vmem>>, vector<48x128xbf16>,
    %cst_95 = arith.constant 0.000000e+00 : f32
    %128 = vector.broadcast %cst_95 : f32 to vector<198x128xf32>
    %c0_96 = arith.constant 0 : index
    %c0_97 = arith.constant 0 : index
    %129 = vector.load %arg10[%c0_96, %c0_97] : memref<200x128xbf16, #tpu.memory_space<vmem>>, vector<198x128xbf16>
    %c0_98 = arith.constant 0 : index
    %c0_99 = arith.constant 0 : index
    %130 = vector.load %arg5[%c0_98, %c0_99] : memref<384x128xbf16, #tpu.memory_space<vmem>>, vector<128x128xbf16>
    %cst_100 = arith.constant dense<0.000000e+00> : vector<198x128xf32>
    %131 = tpu.matmul %129, %130, %cst_100 {dimension_numbers = #tpu.dot_dimension_numbers<[1], [0], [0], [1], [0, 0, 1, 1], [], []>} : vector<198x128xbf16>, vector<128x128xbf16>, vector<198x128xf32> -> vector<198x128xf32>
    %132 = arith.addf %128, %131 : vector<198x128xf32>
    %c1_101 = arith.constant 1 : index
    %c0_102 = arith.constant 0 : index
    %133 = vector.load %arg10[%c1_101, %c0_102] : memref<200x128xbf16, #tpu.memory_space<vmem>>, vector<198x128xbf16>
    %c128_103 = arith.constant 128 : index
    %c0_104 = arith.constant 0 : index
    %134 = vector.load %arg5[%c128_103, %c0_104] : memref<384x128xbf16, #tpu.memory_space<vmem>>, vector<128x128xbf16>
    %cst_105 = arith.constant dense<0.000000e+00> : vector<198x128xf32>
    %135 = tpu.matmul %133, %134, %cst_105 {dimension_numbers = #tpu.dot_dimension_numbers<[1], [0], [0], [1], [0, 0, 1, 1], [], []>} : vector<198x128xbf16>, vector<128x128xbf16>, vector<198x128xf32> -> vector<198x128xf32>
    %136 = arith.addf %132, %135 : vector<198x128xf32>
    %c2_106 = arith.constant 2 : index
    %c0_107 = arith.constant 0 : index
    %137 = vector.load %arg10[%c2_106, %c0_107] : memref<200x128xbf16, #tpu.memory_space<vmem>>, vector<198x128xbf16>
    %c256 = arith.constant 256 : index
    %c0_108 = arith.constant 0 : index
    %138 = vector.load %arg5[%c256, %c0_108] : memref<384x128xbf16, #tpu.memory_space<vmem>>, vector<128x128xbf16>
    %cst_109 = arith.constant dense<0.000000e+00> : vector<198x128xf32>
    %139 = tpu.matmul %137, %138, %cst_109 {dimension_numbers = #tpu.dot_dimension_numbers<[1], [0], [0], [1], [0, 0, 1, 1], [], []>} : vector<198x128xbf16>, vector<128x128xbf16>, vector<198x128xf32> -> vector<198x128xf32>
    %140 = arith.addf %136, %139 : vector<198x128xf32>
    %141 = vector.broadcast %4 : vector<1x128xf32> to vector<198x128xf32>
    %142 = arith.addf %140, %141 : vector<198x128xf32>
    %cst_110 = arith.constant 0.000000e+00 : f32
    %143 = vector.broadcast %cst_110 : f32 to vector<198x128xf32>
    %144 = arith.maximumf %142, %143 : vector<198x128xf32>
    %cst_111 = arith.constant dense<0.000000e+00> : vector<198xf32>
    %145 = vector.multi_reduction <add>, %144, %cst_111 [1] : vector<198x128xf32> to vector<198xf32>
    %146 = vector.shape_cast %145 : vector<198xf32> to vector<198x1xf32>
    %cst_112 = arith.constant 1.280000e+02 : f32
    %147 = vector.broadcast %cst_112 : f32 to vector<198x1xf32>
    %148 = arith.divf %146, %147 : vector<198x1xf32>
    %149 = arith.mulf %144, %144 : vector<198x128xf32>
    %cst_113 = arith.constant dense<0.000000e+00> : vector<198xf32>
    %150 = vector.multi_reduction <add>, %149, %cst_113 [1] : vector<198x128xf32> to vector<198xf32>
    %151 = vector.shape_cast %150 : vector<198xf32> to vector<198x1xf32>
    %cst_114 = arith.constant 1.280000e+02 : f32
    %152 = vector.broadcast %cst_114 : f32 to vector<198x1xf32>
    %153 = arith.divf %151, %152 : vector<198x1xf32>
    %154 = arith.mulf %148, %148 : vector<198x1xf32>
    %155 = arith.subf %153, %154 : vector<198x1xf32>
    %cst_115 = arith.constant 0.000000e+00 : f32
    %156 = vector.broadcast %cst_115 : f32 to vector<198x1xf32>
    %157 = arith.maximumf %155, %156 : vector<198x1xf32>
    %158 = vector.broadcast %148 : vector<198x1xf32> to vector<198x128xf32>
    %159 = arith.subf %144, %158 : vector<198x128xf32>
    %cst_116 = arith.constant 9.99999974E-6 : f32
    %160 = vector.broadcast %cst_116 : f32 to vector<198x1xf32>
    %161 = arith.addf %157, %160 : vector<198x1xf32>
    %162 = math.rsqrt %161 : vector<198x1xf32>
    %163 = vector.broadcast %162 : vector<198x1xf32> to vector<198x128xf32>
    %164 = arith.mulf %159, %163 : vector<198x128xf32>
    %165 = vector.broadcast %5 : vector<1x128xf32> to vector<198x128xf32>
    %166 = arith.mulf %164, %165 : vector<198x128xf32>
    %167 = vector.broadcast %6 : vector<1x128xf32> to vector<198x128xf32>
    %168 = arith.addf %166, %167 : vector<198x128xf32>
    %169 = vector.extract_strided_slice %168 {offsets = [0, 0], sizes = [48, 128], strides = [1, 1]} : vector<198x128xf32> to vector<48x128xf32>
    %c0_117 = arith.constant 0 : index
    %c0_118 = arith.constant 0 : index
    %c0_119 = arith.constant 0 : index
    %170 = vector.load %arg2[%c0_117, %c0_118, %c0_119] : memref<4x48x1xf32, #tpu.memory_space<vmem>>, vector<1x48x1xf32>
    %171 = vector.shape_cast %170 : vector<1x48x1xf32> to vector<48x1xf32>
    %172 = vector.broadcast %171 : vector<48x1xf32> to vector<48x128xf32>
    %173 = arith.mulf %169, %172 : vector<48x128xf32>
    %174 = vector.broadcast %7 : vector<1x128xf32> to vector<48x128xf32>
    %175 = arith.mulf %173, %174 : vector<48x128xf32>
    %cst_120 = arith.constant dense<0.000000e+00> : vector<48xf32>
    %176 = vector.multi_reduction <add>, %175, %cst_120 [1] : vector<48x128xf32> to vector<48xf32>
    %177 = vector.shape_cast %176 : vector<48xf32> to vector<48x1xf32>
    %178 = vector.extract_strided_slice %168 {offsets = [50, 0], sizes = [48, 128], strides = [1, 1]} : vector<198x128xf32> to vector<48x128xf32>
    %c1_121 = arith.constant 1 : index
    %c0_122 = arith.constant 0 : index
    %c0_123 = arith.constant 0 : index
    %179 = vector.load %arg2[%c1_121, %c0_122, %c0_123] : memref<4x48x1xf32, #tpu.memory_space<vmem>>, vector<1x48x1xf32>
    %180 = vector.shape_cast %179 : vector<1x48x1xf32> to vector<48x1xf32>
    %181 = vector.broadcast %180 : vector<48x1xf32> to vector<48x128xf32>
    %182 = arith.mulf %178, %181 : vector<48x128xf32>
    %183 = vector.broadcast %7 : vector<1x128xf32> to vector<48x128xf32>
    %184 = arith.mulf %182, %183 : vector<48x128xf32>
    %cst_124 = arith.constant dense<0.000000e+00> : vector<48xf32>
    %185 = vector.multi_reduction <add>, %184, %cst_124 [1] : vector<48x128xf32> to vector<48xf32>
    %186 = vector.shape_cast %185 : vector<48xf32> to vector<48x1xf32>
    %187 = vector.extract_strided_slice %168 {offsets = [100, 0], sizes = [48, 128], strides = [1, 1]} : vector<198x128xf32> to vector<48x128xf32>
    %c2_125 = arith.constant 2 : index
    %c0_126 = arith.constant 0 : index
    %c0_127 = arith.constant 0 : index
    %188 = vector.load %arg2[%c2_125, %c0_126, %c0_127] : memref<4x48x1xf32, #tpu.memory_space<vmem>>, vector<1x48x1xf32>
    %189 = vector.shape_cast %188 : vector<1x48x1xf32> to vector<48x1xf32>
    %190 = vector.broadcast %189 : vector<48x1xf32> to vector<48x128xf32>
    %191 = arith.mulf %187, %190 : vector<48x128xf32>
    %192 = vector.broadcast %7 : vector<1x128xf32> to vector<48x128xf32>
    %193 = arith.mulf %191, %192 : vector<48x128xf32>
    %cst_128 = arith.constant dense<0.000000e+00> : vector<48xf32>
    %194 = vector.multi_reduction <add>, %193, %cst_128 [1] : vector<48x128xf32> to vector<48xf32>
    %195 = vector.shape_cast %194 : vector<48xf32> to vector<48x1xf32>
    %196 = vector.extract_strided_slice %168 {offsets = [150, 0], sizes = [48, 128], strides = [1, 1]} : vector<198x128xf32> to vector<48x128xf32>
    %c3_129 = arith.constant 3 : index
    %c0_130 = arith.constant 0 : index
    %c0_131 = arith.constant 0 : index
    %197 = vector.load %arg2[%c3_129, %c0_130, %c0_131] : memref<4x48x1xf32, #tpu.memory_space<vmem>>, vector<1x48x1xf32>
    %198 = vector.shape_cast %197 : vector<1x48x1xf32> to vector<48x1xf32>
    %199 = vector.broadcast %198 : vector<48x1xf32> to vector<48x128xf32>
    %200 = arith.mulf %196, %199 : vector<48x128xf32>
    %201 = vector.broadcast %7 : vector<1x128xf32> to vector<48x128xf32>
    %202 = arith.mulf %200, %201 : vector<48x128xf32>
    %cst_132 = arith.constant dense<0.000000e+00> : vector<48xf32>
    %203 = vector.multi_reduction <add>, %202, %cst_132 [1] : vector<48x128xf32> to vector<48xf32>
    %204 = vector.shape_cast %203 : vector<48xf32> to vector<48x1xf32>
    %205 = tpu.concatenate %177, %186, %195, %204 in 1 : vector<48x1xf32>, vector<48x1xf32>, vector<48x1xf32>, vector<48x1xf32> -> vector<48x4xf32>
    %206 = tpu.transpose %205, [1, 0] : vector<48x4xf32> -> vector<4x48xf32>
    %207 = vector.broadcast %8 : f32 to vector<4x48xf32>
    %208 = arith.addf %206, %207 : vector<4x48xf32>
    %209 = vector.extract_strided_slice %208 {offsets = [0, 0], sizes = [1, 48], strides = [1, 1]} : vector<4x48xf32> to vector<1x48xf32>
    %c0_133 = arith.constant 0 : index
    %c0_134 = arith.constant 0 : index
    %c0_135 = arith.constant 0 : index
    %210 = vector.load %arg3[%c0_133, %c0_134, %c0_135] : memref<4x1x48xf32, #tpu.memory_space<vmem>>, vector<1x1x48xf32>
    %211 = vector.shape_cast %210 : vector<1x1x48xf32> to vector<1x48xf32>
    %212 = arith.mulf %209, %211 : vector<1x48xf32>
    %c0_136 = arith.constant 0 : index
    %c0_137 = arith.constant 0 : index
    %c0_138 = arith.constant 0 : index
    %213 = vector.load %arg8[%c0_136, %c0_137, %c0_138] : memref<4x1x48xf32, #tpu.memory_space<vmem>>, vector<1x1x48xf32>
    %214 = vector.shape_cast %213 : vector<1x1x48xf32> to vector<1x48xf32>
    %215 = vector.shape_cast %212 : vector<1x48xf32> to vector<1x1x48xf32>
    tpu.vector_store %arg8[%c0_136, %c0_137, %c0_138], %215 {strides = array<i32>} : memref<4x1x48xf32, #tpu.memory_space<vmem>>, vector<1x1x48xf32>,
    %216 = vector.extract_strided_slice %208 {offsets = [1, 0], sizes = [1, 48], strides = [1, 1]} : vector<4x48xf32> to vector<1x48xf32>
    %c1_139 = arith.constant 1 : index
    %c0_140 = arith.constant 0 : index
    %c0_141 = arith.constant 0 : index
    %217 = vector.load %arg3[%c1_139, %c0_140, %c0_141] : memref<4x1x48xf32, #tpu.memory_space<vmem>>, vector<1x1x48xf32>
    %218 = vector.shape_cast %217 : vector<1x1x48xf32> to vector<1x48xf32>
    %219 = arith.mulf %216, %218 : vector<1x48xf32>
    %c1_142 = arith.constant 1 : index
    %c0_143 = arith.constant 0 : index
    %c0_144 = arith.constant 0 : index
    %220 = vector.load %arg8[%c1_142, %c0_143, %c0_144] : memref<4x1x48xf32, #tpu.memory_space<vmem>>, vector<1x1x48xf32>
    %221 = vector.shape_cast %220 : vector<1x1x48xf32> to vector<1x48xf32>
    %222 = vector.shape_cast %219 : vector<1x48xf32> to vector<1x1x48xf32>
    tpu.vector_store %arg8[%c1_142, %c0_143, %c0_144], %222 {strides = array<i32>} : memref<4x1x48xf32, #tpu.memory_space<vmem>>, vector<1x1x48xf32>,
    %223 = vector.extract_strided_slice %208 {offsets = [2, 0], sizes = [1, 48], strides = [1, 1]} : vector<4x48xf32> to vector<1x48xf32>
    %c2_145 = arith.constant 2 : index
    %c0_146 = arith.constant 0 : index
    %c0_147 = arith.constant 0 : index
    %224 = vector.load %arg3[%c2_145, %c0_146, %c0_147] : memref<4x1x48xf32, #tpu.memory_space<vmem>>, vector<1x1x48xf32>
    %225 = vector.shape_cast %224 : vector<1x1x48xf32> to vector<1x48xf32>
    %226 = arith.mulf %223, %225 : vector<1x48xf32>
    %c2_148 = arith.constant 2 : index
    %c0_149 = arith.constant 0 : index
    %c0_150 = arith.constant 0 : index
    %227 = vector.load %arg8[%c2_148, %c0_149, %c0_150] : memref<4x1x48xf32, #tpu.memory_space<vmem>>, vector<1x1x48xf32>
    %228 = vector.shape_cast %227 : vector<1x1x48xf32> to vector<1x48xf32>
    %229 = vector.shape_cast %226 : vector<1x48xf32> to vector<1x1x48xf32>
    tpu.vector_store %arg8[%c2_148, %c0_149, %c0_150], %229 {strides = array<i32>} : memref<4x1x48xf32, #tpu.memory_space<vmem>>, vector<1x1x48xf32>,
    %230 = vector.extract_strided_slice %208 {offsets = [3, 0], sizes = [1, 48], strides = [1, 1]} : vector<4x48xf32> to vector<1x48xf32>
    %c3_151 = arith.constant 3 : index
    %c0_152 = arith.constant 0 : index
    %c0_153 = arith.constant 0 : index
    %231 = vector.load %arg3[%c3_151, %c0_152, %c0_153] : memref<4x1x48xf32, #tpu.memory_space<vmem>>, vector<1x1x48xf32>
    %232 = vector.shape_cast %231 : vector<1x1x48xf32> to vector<1x48xf32>
    %233 = arith.mulf %230, %232 : vector<1x48xf32>
    %c3_154 = arith.constant 3 : index
    %c0_155 = arith.constant 0 : index
    %c0_156 = arith.constant 0 : index
    %234 = vector.load %arg8[%c3_154, %c0_155, %c0_156] : memref<4x1x48xf32, #tpu.memory_space<vmem>>, vector<1x1x48xf32>
    %235 = vector.shape_cast %234 : vector<1x1x48xf32> to vector<1x48xf32>
    %236 = vector.shape_cast %233 : vector<1x48xf32> to vector<1x1x48xf32>
    tpu.vector_store %arg8[%c3_154, %c0_155, %c0_156], %236 {strides = array<i32>} : memref<4x1x48xf32, #tpu.memory_space<vmem>>, vector<1x1x48xf32>,
    return
  }
  func.func @transform_0(%arg0: i32) -> (i32, i32, i32) {
    %c0_i32 = arith.constant 0 : i32
    %c0_i32_0 = arith.constant 0 : i32
    %c0_i32_1 = arith.constant 0 : i32
    return %arg0, %c0_i32, %c0_i32_0 : i32, i32, i32
  }
  func.func @transform_1(%arg0: i32) -> (i32, i32, i32) {
    %c0_i32 = arith.constant 0 : i32
    %c0_i32_0 = arith.constant 0 : i32
    %c0_i32_1 = arith.constant 0 : i32
    return %arg0, %c0_i32, %c0_i32_0 : i32, i32, i32
  }
  func.func @transform_2(%arg0: i32) -> (i32, i32, i32) {
    %c0_i32 = arith.constant 0 : i32
    %c0_i32_0 = arith.constant 0 : i32
    %c0_i32_1 = arith.constant 0 : i32
    return %arg0, %c0_i32, %c0_i32_0 : i32, i32, i32
  }
  func.func @transform_3(%arg0: i32) -> (i32, i32) {
    %c0_i32 = arith.constant 0 : i32
    %c0_i32_0 = arith.constant 0 : i32
    %c0_i32_1 = arith.constant 0 : i32
    return %c0_i32, %c0_i32_0 : i32, i32
  }
  func.func @transform_4(%arg0: i32) -> (i32, i32) {
    %c0_i32 = arith.constant 0 : i32
    %c0_i32_0 = arith.constant 0 : i32
    %c0_i32_1 = arith.constant 0 : i32
    return %c0_i32, %c0_i32_0 : i32, i32
  }
  func.func @transform_5(%arg0: i32) -> (i32, i32) {
    %c0_i32 = arith.constant 0 : i32
    %c0_i32_0 = arith.constant 0 : i32
    %c0_i32_1 = arith.constant 0 : i32
    return %c0_i32, %c0_i32_0 : i32, i32
  }
  func.func @transform_6(%arg0: i32) -> i32 {
    %c0_i32 = arith.constant 0 : i32
    %c0_i32_0 = arith.constant 0 : i32
    return %c0_i32 : i32
  }
  func.func @transform_7(%arg0: i32) -> (i32, i32, i32) {
    %c0_i32 = arith.constant 0 : i32
    %c0_i32_0 = arith.constant 0 : i32
    %c0_i32_1 = arith.constant 0 : i32
    return %arg0, %c0_i32, %c0_i32_0 : i32, i32, i32
  }
}

</mosaic_0001>

<bundles_post_ra>
// kernel: duration_predictor_forward.1
= control target key start
LH: loop header
LB: loop body
LE: loop exit
PB: predicated region body
PF: predicated region fallthrough
CT: control target
= control target key end

     0   :  { %s8572_s0 = inlined_call_operand.vmem [shape: bf16[8,48,64], index: 0, kind: input, shape index: {}]   ;;  %s8573_s1 = inlined_call_operand.vmem [shape: f32[8,48,1], index: 1, kind: input, shape index: {}]   ;;  %s8574_s2 = inlined_call_operand.vmem [shape: f32[8,1,48], index: 2, kind: input, shape index: {}]   ;;  %s8575_s3 = inlined_call_operand.vmem [shape: bf16[192,128], index: 3, kind: input, shape index: {}]   ;;  %s8576_s4 = inlined_call_operand.vmem [shape: bf16[384,128], index: 4, kind: input, shape index: {}]   ;;  %s8577_s5 = inlined_call_operand.vmem [shape: f32[8,128], index: 5, kind: input, shape index: {}]   ;;  %s8578_s6 = inlined_call_operand.<no memory space> [shape: f32[1], index: 6, kind: input, shape index: {}]   ;;  %s8579_s7 = inlined_call_operand.hbm [shape: f32[8,1,48], index: 7, kind: output, shape index: {}]  }
   0x1   :  { %12 = sst [smem:[#allocation4]] %s8578_s6 }
   0x2   :  { %13 = vsyncpa [#allocation6], 0 }
   0x3   :  { %15 = vsyncpa [#allocation6 + $0x1], 0  ;;  %s6023_s26 = smov 0   ;;  %s6025_s27 = smov 0  }
   0x4   :  { %s6027_s28 = smov 0   ;;  %s6029_s29 = smov 0  }
   0x5 LB: > { %s6044_s6 = sadd.s32 4294967295, %s5970_s29   ;;  %s4936_s30 = sadd.s32 4294967294, %s5970_s29   ;;  %s5970_s29 = sphi %s6029_s29, %s8770_s29   ;;  %s5966_s28 = sphi %s6027_s28, %s8769_s28   ;;  %s5962_s27 = sphi %s6025_s27, %s8768_s27   ;;  %s5958_s26 = sphi %s6023_s26, %s8767_s26  }
   0x6   : > { %s6048_s8 = sadd.s32 1, %s5970_s29   ;;  %s190_s9 = sadd.s32 1, %s5966_s28 }
   0x7   : > { %s187_s10 = ssub.s32 %s5970_s29, %s6048_s8  ;;  %p200_p0 = scmp.ne.s32.totalorder %s5966_s28, %s5962_s27 }
   0x8   : > { %p188_p1 = scmp.eq.s32.totalorder %s187_s10, 0  ;;  %p201_p2 = scmp.eq.s32.totalorder %s6044_s6, 1 }
   0x9   : > { %p206_p3 = scmp.ne.s32.totalorder %s5962_s27, %s5958_s26  ;;  %p207_p4 = scmp.eq.s32.totalorder %s4936_s30, 1 }
   0xa   : > { %s6059_s11 = scalar_select %p188_p1, %s5966_s28, %s190_s9  }
   0xb   : > { %p6061_p5 = por %p201_p2, %p200_p0  ;;  %p6065_p6 = por %p207_p4, %p206_p3 }
   0xc   : > { %p4939_p7 = scmp.ge.s32.totalorder %s5970_s29, 1  ;;  %p265_p8 = scmp.lt.s32.totalorder %s5970_s29, 3 }
   0xe   : > { %p266_p9 = pnand %p4939_p7, %p265_p8 }
  0x10   : > { %269 = sbr.rel (%p266_p9) target bundleno = 1693 (0x69d), region = 48 }
  0x17   : > { %s4941_s14 = sshll.u32 %s6044_s6, 2  ;;  %vm340_vm0 = vcmask 516096   ;;  %vm341_vm1 = vsmask.f32 256  ;;  %v370_v0 = vlaneseq  ;;  %v5972_v1 = vmov 0   ;;  %v329_v9 = vld [vmem:[%s8577_s5] sm:$0xff] }
  0x18   : > { %5740 = vset.pattern.permute.xlu1 %v5972_v1  ;;  %5739 = vset.pattern.permute.xlu0 %v5972_v1  ;;  %p309_p10 = scmp.lt.s32.totalorder %s4941_s14, 7  ;;  %vm6074_vm2 = vmand %vm340_vm0, %vm341_vm1  ;;  %v343_v3 = vld [vmem:[#allocation2] sm:$0x1]  ;;  %vm8587_vm3 = vsmask.f32 7938  ;;  %vm502_vm4 = vcmask 1040384  }
  0x19   : > { %v344_v4 = vsel %vm6074_vm2, 0, %v343_v3  ;;  %v6080_v5 = vshrl.u32 %v370_v0, 7  ;;  %v504_v6 = vld [vmem:[#allocation3] sm:$0x1]  ;;  %v508_v7 = vld [vmem:[#allocation3 + $0x18] sm:$0x1]  ;;  %vm6091_vm5 = vmand %vm340_vm0, %vm8587_vm3 }
  0x1a   : > { %s8772_s14 = smov (!%p309_p10, %s4941_s14), 7  ;;  %345 = vst [vmem:[#allocation2] sm:$0x1] %v344_v4  ;;  %vm6098_vm6 = vmand %vm502_vm4, %vm341_vm1  ;;  %vm521_vm8 = vcmask 517121   ;;  %vm8585_vm9 = vsmask.f32 1280 }
  0x1b   : > { %v2346_v8 = vsub.s32 1, %v6080_v5  ;;  %s5692_s15 = smul.u32 48, %s8772_s14  ;;  %v2375_v11 = vsub.s32 2, %v6080_v5  ;;  %v3903_v12 = vsub.s32 3, %v6080_v5  ;;  %v4309_v15 = vsub.s32 4, %v6080_v5  ;;  %vm507_vm7 = vmand %vm502_vm4, %vm8587_vm3  ;;  %v5741_v56 = vld [vmem:[%s8575_s3] sm:$0xff]   ;;  %s325_s25 = scalar_lea.vmem %s8574_s2, %s8772_s14 }
  0x1c   : > { %v505_v16 = vsel %vm6098_vm6, 0, %v504_v6  ;;  %v509_v22 = vsel %vm507_vm7, 0, %v508_v7  ;;  %v4338_v24 = vsub.s32 5, %v6080_v5  ;;  %v4409_v25 = vsub.s32 6, %v6080_v5  ;;  %v524_v53 = vld [vmem:[#allocation2 + $0x18] sm:$0x2]  ;;  %vm523_vm10 = vmand %vm521_vm8, %vm8585_vm9 }
  0x1d   : > { %v6102_v14 = vrot.slane %v329_v9, %v2346_v8  ;;  %s6108_s20 = scalar_lea.vmem %s8573_s1, %s5692_s15  ;;  %v6113_v17 = vrot.slane %v329_v9, %v2375_v11  ;;  %v6115_v18 = vrot.slane %v329_v9, %v3903_v12  ;;  %506 = vst [vmem:[#allocation3] sm:$0x1] %v505_v16  ;;  %v6126_v23 = vrot.slane %v329_v9, %v4309_v15  ;;  %v693_v3 = vld [vmem:[#allocation3 + $0x18] sm:$0x2]  ;;  %v697_v4 = vld [vmem:[#allocation3 + $0x30] sm:$0x2] }
  0x1e   : > { %v6118_v19 = vld [vmem:[%s6108_s20 + $0x20] sm:$0xff]  ;;  %v6121_v20 = vld [vmem:[%s6108_s20 + $0x28] sm:$0xff]  ;;  %v6136_v28 = vld [vmem:[%s6108_s20 + $0x30] sm:$0xff]  ;;  %510 = vst [vmem:[#allocation3 + $0x18] sm:$0x1] %v509_v22  ;;  %v6149_v33 = vrot.slane %v329_v9, %v4338_v24  ;;  %v6151_v34 = vrot.slane %v329_v9, %v4409_v25  ;;  %v8588_v54 = vmov 0.0  }
  0x1f   : > { %8636 = vst [vmem:[#allocation8_spill] sm:$0xff] %v6115_v18  ;;  %v6124_v21 = vld [vmem:[%s6108_s20] sm:$0xff]  ;;  %8637 = vst [vmem:[#allocation9_spill] sm:$0xff] %v6126_v23  ;;  %v339_v26 = vpack.c.bf16 %v6121_v20, %v6118_v19  ;;  %v6133_v27 = vld [vmem:[%s6108_s20 + $0x8] sm:$0xff]  ;;  %5367 = vmatprep.subr.bf16.mxu1 %v8588_v54  ;;  %5307 = vmatprep.subr.bf16.mxu0 %v8588_v54  ;;  %v525_v59 = vsel %vm523_vm10, 0, %v524_v53  ;;  %vm691_vm13 = vcmask 1041409  }
  0x20   : > { %v6139_v29 = vld [vmem:[%s6108_s20 + $0x38] sm:$0xff]  ;;  %v337_v30 = vpack.c.bf16 %v6133_v27, %v6124_v21  ;;  %v6144_v31 = vld [vmem:[%s6108_s20 + $0x10] sm:$0xff]  ;;  %8638 = vst [vmem:[#allocation10_spill] sm:$0xff] %v6149_v33  ;;  %8639 = vst [vmem:[#allocation11_spill] sm:$0xff] %v6151_v34  ;;  %5368 = vmatpush3.bf16.msra.mxu1 %v5741_v56  ;;  %vm8586_vm11 = vsmask.f32 7942 }
  0x21   : > { %v6147_v32 = vld [vmem:[%s6108_s20 + $0x18] sm:$0xff]  ;;  %362 = vperm.xlu1 %5740, %v339_v26   ;;  %v518_v35 = vpack.c.bf16 %v6139_v29, %v6136_v28  ;;  %v6158_v37 = vld [vmem:[%s6108_s20 + $0x50] sm:$0xff]  ;;  %v6164_v39 = vld [vmem:[%s6108_s20 + $0x40] sm:$0xff]  ;;  %526 = vst [vmem:[#allocation2 + $0x18] sm:$0x2] %v525_v59  ;;  %5369 = vmatprep.subr.bf16.mxu1 %v8588_v54  ;;  %vm8580_vm4 = vcmask 518146  }
  0x22   : > { %354 = vperm.xlu0 %5739, %v337_v30   ;;  %v338_v36 = vpack.c.bf16 %v6147_v32, %v6144_v31  ;;  %v6161_v38 = vld [vmem:[%s6108_s20 + $0x58] sm:$0xff]  ;;  %v6167_v40 = vld [vmem:[%s6108_s20 + $0x48] sm:$0xff]  ;;  %v6174_v43 = vld [vmem:[%s6108_s20 + $0x70] sm:$0xff]  ;;  %vm711_vm0 = vsmask.f32 2304  ;;  %s5691_s24 = smul.u32 24, %s8772_s14 }
  0x23   : > { %v520_v41 = vpack.c.bf16 %v6161_v38, %v6158_v37  ;;  %v519_v42 = vpack.c.bf16 %v6167_v40, %v6164_v39  ;;  %v6177_v44 = vld [vmem:[%s6108_s20 + $0x78] sm:$0xff]  ;;  %v6180_v45 = vld [vmem:[%s6108_s20 + $0x60] sm:$0xff]  ;;  %v6183_v46 = vld [vmem:[%s6108_s20 + $0x68] sm:$0xff]  ;;  %vm8583_vm10 = vsmask.f32 3328  ;;  %s305_s21 = sand.u32 1, %s5962_s27  }
  0x24   : > { %v708_v47 = vpack.c.bf16 %v6177_v44, %v6174_v43  ;;  %v707_v48 = vpack.c.bf16 %v6183_v46, %v6180_v45  ;;  %v4970_v49 = vld [vmem:[%s6108_s20 + $0x90] sm:$0xff]  ;;  %v4971_v50 = vld [vmem:[%s6108_s20 + $0x98] sm:$0xff]  ;;  %v6192_v51 = vld [vmem:[%s6108_s20 + $0x80] sm:$0xff]  ;;  %v5976_v30 = vmov 839922192   ;;  %s6282_s9 = scalar_lea.vmem %s8572_s0, %s5691_s24  ;;  %s4940_s22 = sshll.u32 %s305_s21, 2 }
  0x25   : > { %536 = vperm.xlu1 %5740, %v518_v35   ;;  %v4963_v52 = vld [vmem:[%s6108_s20 + $0x88] sm:$0xff]  ;;  %v4974_v55 = vld [vmem:[%s6108_s20 + $0xb0] sm:$0xff]  ;;  %v896_v57 = vpack.c.bf16 %v4971_v50, %v4970_v49  ;;  %v4975_v58 = vld [vmem:[%s6108_s20 + $0xb8] sm:$0xff]  ;;  %s5192_s30 = sshll.u32 %s6044_s6, 6  ;;  %s8531_s6 = scalar_lea.sflag [#allocation6], %s305_s21 }
  0x26   : > { %358 = vperm.xlu0 %5739, %v338_v36   ;;  %v709_v60 = vpack.c.bf16 %v4963_v52, %v6192_v51  ;;  %v4972_v61 = vld [vmem:[%s6108_s20 + $0xa0] sm:$0xff]  ;;  %v4973_v62 = vld [vmem:[%s6108_s20 + $0xa8] sm:$0xff]  ;;  %v898_v63 = vpack.c.bf16 %v4975_v58, %v4974_v55  ;;  %vm6210_vm12 = vmand %vm521_vm8, %vm8586_vm11  ;;  %vm8584_vm8 = vcmask 519171   ;;  %s8527_s17 = scalar_lea.hbm %s8579_s7, %s5192_s30  ;;  %s5977_s18 = smov [#allocation5]  }
  0x27   : > { %v897_v0 = vpack.c.bf16 %v4973_v62, %v4972_v61  ;;  %vm692_vm14 = vmand %vm691_vm13, %vm8585_vm9  ;;  %v5742_v7 = vld [vmem:[%s8575_s3 + $0x8] sm:$0xff]   ;;  %v713_v9 = vld [vmem:[#allocation2 + $0x30] sm:$0x4]  ;;  %s5912_s19 = sshll.u32 %s5977_s18, 4  ;;  %s5913_s19 = int_to_ptr.vmem [resolvable:$false] %s5912_s19 }
  0x28   : > { %v694_v6 = vsel %vm692_vm14, 0, %v693_v3  ;;  %vm696_vm15 = vmand %vm691_vm13, %vm8586_vm11  ;;  %5370 = vmatpush3.bf16.msra.mxu1 %v5742_v7  ;;  %v5743_v12 = vld [vmem:[%s8575_s3 + $0x20] sm:$0xff]   ;;  %v5744_v15 = vld [vmem:[%s8575_s3 + $0x10] sm:$0xff]   ;;  %vm880_vm14 = vcmask 1042434  }
  0x29   : > { %544 = vperm.xlu1 %5740, %v520_v41   ;;  %695 = vst [vmem:[#allocation3 + $0x18] sm:$0x2] %v694_v6  ;;  %v698_v8 = vsel %vm696_vm15, 0, %v697_v4  ;;  %5371 = vmatprep.subr.bf16.mxu1 %v8588_v54  ;;  %vm712_vm7 = vmand %vm8580_vm4, %vm711_vm0  ;;  %v902_v16 = vld [vmem:[#allocation2 + $0x48] sm:$0x8]  ;;  %v5746_v22 = vld [vmem:[%s8575_s3 + $0x18] sm:$0xff]  }
  0x2a   : > { %540 = vperm.xlu0 %5739, %v519_v42   ;;  %699 = vst [vmem:[#allocation3 + $0x30] sm:$0x2] %v698_v8  ;;  %v714_v11 = vsel %vm712_vm7, 0, %v713_v9  ;;  %5308 = vmatpush3.bf16.msra.mxu0 %v5743_v12  ;;  %vm901_vm13 = vmand %vm8584_vm8, %vm8583_vm10  ;;  %vm861_vm15 = vsmask.f32 7946  ;;  %vm8581_vm4 = vmmov 0  }
  0x2b   : > { %715 = vst [vmem:[#allocation2 + $0x30] sm:$0x4] %v714_v11  ;;  %5309 = vmatprep.subr.bf16.mxu0 %v8588_v54  ;;  %vm881_vm7 = vmand %vm880_vm14, %vm711_vm0  ;;  %5375 = vmatprep.mubr.msk.bf16.mxu1 %vm8581_vm4, %v8588_v54  ;;  %v5749_v26 = vld [vmem:[%s8575_s3 + $0x30] sm:$0xff]   ;;  %vm603_vm10 = vsmask.f32 5392 }
  0x2c   : > { %5372 = vmatpush3.bf16.msra.mxu1 %v5744_v15  ;;  %5315 = vmatprep.mubr.msk.bf16.mxu0 %vm8581_vm4, %v8588_v54  ;;  %vm671_vm4 = vcmask 519169   ;;  %v348_v7 = vld [vmem:[%s6282_s9 + $0x8] sm:$0xf]  ;;  %v4952_v12 = vld [vmem:[%s6282_s9 + $0x18] sm:$0xf] }
  0x2d   : > { %729 = vperm.xlu1 %5740, %v708_v47   ;;  %5373 = vmatprep.subr.bf16.mxu1 %v8588_v54  ;;  %v4953_v15 = vld [vmem:[%s6282_s9 + $0x1c] sm:$0xf]  ;;  %v1068_v18 = vld [vmem:[#allocation3 + $0x48] sm:$0x8] }
  0x2e   : > { %725 = vperm.xlu0 %5739, %v707_v48  }
  0x30   : > { %5374 = vmatpush3.bf16.msra.mxu1 %v5746_v22 }
  0x31   : > { %914 = vperm.xlu1 %5740, %v896_v57   ;;  %5487 = vmatprep.subr.bf16.mxu1 %v8588_v54 }
  0x32   : > { %733 = vperm.xlu0 %5739, %v709_v60  }
  0x35   : > { %922 = vperm.xlu1 %5740, %v898_v63   ;;  %v495_v63 = vld [vmem:[#allocation2 + $0x18] sm:$0x1] }
  0x36   : > { %918 = vperm.xlu0 %5739, %v897_v0  }
  0x39   : > { %2410 = vperm.xlu1 %5740, %v6124_v21   ;;  %v903_v21 = vsel %vm901_vm13, 0, %v902_v16  ;;  %vm6250_vm13 = vmand %vm880_vm14, %vm861_vm15  ;;  %vm421_vm14 = vsmask.f32 4368 }
  0x3a   : > { %2415 = vperm.xlu0 %5739, %v6133_v27   ;;  %904 = vst [vmem:[#allocation2 + $0x48] sm:$0x8] %v903_v21  ;;  %v5750_v27 = vld [vmem:[%s8575_s3 + $0x38] sm:$0xff]   ;;  %vm6300_vm8 = vmor %vm341_vm1, %vm421_vm14  ;;  %vm682_vm14 = vcmask 517120  }
  0x3d   : > { %2420 = vperm.xlu1 %5740, %v6144_v31   ;;  %v368_v31 = vunpack.c.l.s4 %v5976_v30 }
  0x3e   : > { %2425 = vperm.xlu0 %5739, %v6147_v32  }
  0x3f   : > { %v369_v35 = vunpack.c.0.s8 %v368_v31 }
  0x41   : > { %2430 = vperm.xlu1 %5740, %v6118_v19   ;;  %v5745_v19 = vld [vmem:[%s8575_s3 + $0x28] sm:$0xff]  }
  0x42   : > { %2435 = vperm.xlu0 %5739, %v6121_v20   ;;  %v882_v20 = vld [vmem:[#allocation3 + $0x30] sm:$0x4]  ;;  %5310 = vmatpush3.bf16.msra.mxu0 %v5745_v19 }
  0x43   : > { %v883_v24 = vsel %vm881_vm7, 0, %v882_v20  ;;  %5311 = vmatprep.subr.bf16.mxu0 %v8588_v54  ;;  %vm483_vm7 = vcmask 519168  }
  0x44   : > { %884 = vst [vmem:[#allocation3 + $0x30] sm:$0x4] %v883_v24  ;;  %vm6314_vm1 = vmand %vm483_vm7, %vm8587_vm3 }
  0x45   : > { %2543 = vperm.xlu1 %5740, %v6136_v28   ;;  %v5975_v28 = vmov 1985246804  }
  0x46   : > { %2555 = vperm.xlu0 %5739, %v6167_v40   ;;  %5312 = vmatpush3.bf16.msra.mxu0 %v5749_v26  ;;  %v351_v40 = vld [vmem:[%s6282_s9 + $0x14] sm:$0xf] }
  0x47   : > { %5313 = vmatprep.subr.bf16.mxu0 %v8588_v54 }
  0x49   : > { %2547 = vperm.xlu1 %5740, %v6139_v29   ;;  %v375_v29 = vunpack.c.l.s4 %v5975_v28  ;;  %v349_v28 = vld [vmem:[%s6282_s9 + $0xc] sm:$0xf] }
  0x4a   : > { %2559 = vperm.xlu0 %5739, %v6158_v37   ;;  %5314 = vmatpush3.bf16.msra.mxu0 %v5750_v27  ;;  %v6285_v37 = vsub.s32 %v369_v35, %v6080_v5  ;;  %v486_v27 = vld [vmem:[#allocation2] sm:$0xf] }
  0x4b   : > { %5427 = vmatprep.subr.bf16.mxu0 %v8588_v54  ;;  %v376_v32 = vunpack.c.0.s8 %v375_v29 }
  0x4d   : > { %2551 = vperm.xlu1 %5740, %v6164_v39   ;;  %v6277_v36 = vsub.s32 %v376_v32, %v6080_v5  ;;  %v350_v39 = vld [vmem:[%s6282_s9 + $0x10] sm:$0xf] }
  0x4e   : > { %2708 = vperm.xlu0 %5739, %v6183_v46  }
  0x51   : > { %2563 = vperm.xlu1 %5740, %v6161_v38  }
  0x52   : > { %2716 = vperm.xlu0 %5739, %v6177_v44   ;;  %v346_v44 = vld [vmem:[%s6282_s9] sm:$0xf] }
  0x55   : > { %2704 = vperm.xlu1 %5740, %v6180_v45   ;;  %v347_v45 = vld [vmem:[%s6282_s9 + $0x4] sm:$0xf] }
  0x56   : > { %2720 = vperm.xlu0 %5739, %v6192_v51  }
  0x59   : > { %2712 = vperm.xlu1 %5740, %v6174_v43  }
  0xa0   : > { %v363_v38 = vpop.permute.xlu1 %362 }
  0xa1   : > { %v401_v41 = vrot.slane %v363_v38, %v6285_v37  ;;  %v408_v42 = vrot.slane %v363_v38, %v6277_v36  ;;  %v355_v43 = vpop.permute.xlu0 %354 }
  0xa2   : > { %v373_v46 = vrot.slane %v355_v43, %v6285_v37  ;;  %v380_v47 = vrot.slane %v355_v43, %v6277_v36 }
  0xa3   : > { %v419_v48 = vmul.bf16 %v401_v41, %v350_v39  ;;  %v420_v49 = vmul.bf16 %v408_v42, %v351_v40 }
  0xa4   : > { %v415_v50 = vmul.bf16 %v373_v46, %v346_v44  ;;  %v416_v51 = vmul.bf16 %v380_v47, %v347_v45  ;;  %v537_v62 = vpop.permute.xlu1 %536 }
  0xa5   : > { %v459_v52 = vshrl.u32 %v419_v48, 16  ;;  %v462_v53 = vshll.u32 %v419_v48, 16  ;;  %v468_v55 = vshrl.u32 %v420_v49, 16  ;;  %v471_v56 = vshll.u32 %v420_v49, 16  ;;  %v359_v57 = vpop.permute.xlu0 %358 }
  0xa6   : > { %v424_v58 = vshrl.u32 %v415_v50, 16  ;;  %v427_v59 = vshll.u32 %v415_v50, 16  ;;  %v432_v60 = vshrl.u32 %v416_v51, 16  ;;  %v435_v61 = vshll.u32 %v416_v51, 16 }
  0xa7   : > { %v461_v0 = vrot.slane %v459_v52, 7  ;;  %v470_v3 = vrot.slane %v468_v55, 7  ;;  %v555_v4 = vrot.slane %v537_v62, %v6285_v37  ;;  %v562_v6 = vrot.slane %v537_v62, %v6277_v36 }
  0xa8   : > { %v426_v9 = vrot.slane %v424_v58, 7  ;;  %v6304_v11 = vrot.slane %v432_v60, 7  ;;  %v387_v16 = vrot.slane %v359_v57, %v6285_v37  ;;  %v394_v21 = vrot.slane %v359_v57, %v6277_v36  ;;  %v545_v48 = vpop.permute.xlu1 %544  ;;  %v674_v60 = vld [vmem:[#allocation2 + $0x18] sm:$0xe] }
  0xa9   : > { %v6310_v19 = vor.u32 %v462_v53, %v461_v0  ;;  %v466_v22 = vrot.slane %v461_v0, 4  ;;  %v473_v20 = vor.u32 %v471_v56, %v470_v3  ;;  %v475_v24 = vrot.slane %v470_v3, 4  ;;  %v541_v53 = vpop.permute.xlu0 %540 }
  0xaa   : > { %v429_v29 = vor.u32 %v427_v59, %v426_v9  ;;  %v430_v30 = vrot.slane %v426_v9, 4  ;;  %v437_v31 = vor.u32 %v435_v61, %v6304_v11  ;;  %v439_v32 = vrot.slane %v6304_v11, 4 }
  0xab   : > { %v474_v35 = vsel %vm6300_vm8, %v466_v22, %v473_v20  ;;  %v496_v38 = vsel %vm6074_vm2, %v475_v24, %v495_v63  ;;  %v597_v39 = vmul.bf16 %v4952_v12, %v555_v4  ;;  %v598_v40 = vmul.bf16 %v4953_v15, %v562_v6  ;;  %vm6333_vm2 = vmand %vm671_vm4, %vm8586_vm11  ;;  %v4956_v63 = vld [vmem:[%s6282_s9 + $0x28] sm:$0xf]  ;;  %v4954_v20 = vld [vmem:[%s6282_s9 + $0x20] sm:$0xf] }
  0xac   : > { %494 = vst.msk [vmem:[#allocation2 + $0x14] sm:$0xf] %vm483_vm7, %v474_v35  ;;  %497 = vst [vmem:[#allocation2 + $0x18] sm:$0x1] %v496_v38  ;;  %v438_v41 = vsel %vm6300_vm8, %v430_v30, %v437_v31  ;;  %v487_v42 = vsel %vm6314_vm1, %v429_v29, %v486_v27  ;;  %v417_v43 = vmul.bf16 %v387_v16, %v348_v7  ;;  %v4957_v7 = vld [vmem:[%s6282_s9 + $0x2c] sm:$0xf]  ;;  %v730_v31 = vpop.permute.xlu1 %729 }
  0xad   : > { %v418_v44 = vmul.bf16 %v394_v21, %v349_v28  ;;  %488 = vst [vmem:[#allocation2] sm:$0xf] %v487_v42  ;;  %490 = vst.msk [vmem:[#allocation2 + $0x4] sm:$0xf] %vm483_vm7, %v438_v41  ;;  %v606_v45 = vshrl.u32 %v597_v39, 16  ;;  %v609_v46 = vshll.u32 %v597_v39, 16  ;;  %v583_v0 = vrot.slane %v545_v48, %v6285_v37 }
  0xae   : > { %v615_v2 = vshrl.u32 %v598_v40, 16  ;;  %v618_v47 = vshll.u32 %v598_v40, 16  ;;  %v441_v49 = vshrl.u32 %v417_v43, 16  ;;  %v444_v50 = vshll.u32 %v417_v43, 16  ;;  %vm6347_vm4 = vmor %vm8585_vm9, %vm603_vm10  ;;  %v4955_v24 = vld [vmem:[%s6282_s9 + $0x24] sm:$0xf] }
  0xaf   : > { %v450_v51 = vshrl.u32 %v418_v44, 16  ;;  %v453_v52 = vshll.u32 %v418_v44, 16  ;;  %v608_v55 = vrot.slane %v606_v45, 6  ;;  %v611_v56 = vrot.slane %v609_v46, 7  ;;  %vm6379_vm1 = vmand %vm682_vm14, %vm8585_vm9 }
  0xb0   : > { %v617_v57 = vrot.slane %v615_v2, 6  ;;  %v620_v58 = vrot.slane %v618_v47, 7  ;;  %v443_v61 = vrot.slane %v441_v49, 7  ;;  %v590_v3 = vrot.slane %v545_v48, %v6277_v36 }
  0xb1   : > { %v452_v62 = vrot.slane %v450_v51, 7  ;;  %v612_v4 = vor.u32 %v611_v56, %v608_v55  ;;  %v569_v9 = vrot.slane %v541_v53, %v6285_v37  ;;  %v576_v11 = vrot.slane %v541_v53, %v6277_v36  ;;  %v4967_v55 = vld [vmem:[%s6282_s9 + $0x3c] sm:$0xf] }
  0xb2   : > { %v6340_v6 = vor.u32 %v620_v58, %v617_v57  ;;  %v446_v15 = vor.u32 %v444_v50, %v443_v61  ;;  %v448_v16 = vrot.slane %v443_v61, 4  ;;  %v601_v30 = vmul.bf16 %v4956_v63, %v583_v0 }
  0xb3   : > { %v455_v21 = vor.u32 %v453_v52, %v452_v62  ;;  %v457_v22 = vrot.slane %v452_v62, 4  ;;  %v499_v26 = vld [vmem:[#allocation2 + $0x18] sm:$0x1]  ;;  %v613_v27 = vrot.slane %v612_v4, 4  ;;  %v675_v29 = vsel %vm6333_vm2, %v612_v4, %v674_v60  ;;  %v726_v60 = vpop.permute.xlu0 %725 }
  0xb4   : > { %v623_v28 = vrot.slane %v6340_v6, 4  ;;  %v500_v35 = vsel %vm6091_vm5, 0, %v499_v26  ;;  %676 = vst [vmem:[#allocation2 + $0x18] sm:$0xe] %v675_v29  ;;  %v447_v38 = vsel %vm6300_vm8, %v439_v32, %v446_v15  ;;  %v602_v10 = vmul.bf16 %v4957_v7, %v590_v3  ;;  %v684_v3 = vld [vmem:[#allocation2 + $0x30] sm:$0x3] }
  0xb5   : > { %v456_v39 = vsel %vm6300_vm8, %v448_v16, %v455_v21  ;;  %v465_v40 = vsel %vm6300_vm8, %v457_v22, %v6310_v19  ;;  %501 = vst [vmem:[#allocation2 + $0x18] sm:$0x1] %v500_v35  ;;  %v622_v41 = vsel %vm6347_vm4, %v613_v27, %v6340_v6  ;;  %491 = vst.msk [vmem:[#allocation2 + $0x8] sm:$0xf] %vm483_vm7, %v447_v38  ;;  %v645_v32 = vshrl.u32 %v601_v30, 16 }
  0xb6   : > { %492 = vst.msk [vmem:[#allocation2 + $0xc] sm:$0xf] %vm483_vm7, %v456_v39  ;;  %493 = vst.msk [vmem:[#allocation2 + $0x10] sm:$0xf] %vm483_vm7, %v465_v40  ;;  %v648_v42 = vshll.u32 %v601_v30, 16  ;;  %v599_v43 = vmul.bf16 %v4954_v20, %v569_v9  ;;  %v600_v44 = vmul.bf16 %v4955_v24, %v576_v11  ;;  %v758_v45 = vrot.slane %v730_v31, %v6285_v37  ;;  %v915_v40 = vpop.permute.xlu1 %914 }
  0xb7   : > { %677 = vst.msk [vmem:[#allocation2 + $0x1c] sm:$0xf] %vm483_vm7, %v622_v41  ;;  %v4966_v19 = vld [vmem:[%s6282_s9 + $0x38] sm:$0xf]  ;;  %v765_v46 = vrot.slane %v730_v31, %v6277_v36  ;;  %v647_v2 = vrot.slane %v645_v32, 6  ;;  %v655_v48 = vshrl.u32 %v602_v10, 16  ;;  %v744_v24 = vrot.slane %v726_v60, %v6285_v37 }
  0xb8   : > { %v650_v47 = vrot.slane %v648_v42, 7  ;;  %v658_v49 = vshll.u32 %v602_v10, 16  ;;  %vm792_vm5 = vsmask.f32 6416  ;;  %v625_v50 = vshrl.u32 %v599_v43, 16 }
  0xb9   : > { %v628_v51 = vshll.u32 %v599_v43, 16  ;;  %v635_v52 = vshrl.u32 %v600_v44, 16  ;;  %v638_v53 = vshll.u32 %v600_v44, 16  ;;  %v657_v57 = vrot.slane %v655_v48, 6  ;;  %v4964_v11 = vld [vmem:[%s6282_s9 + $0x30] sm:$0xf]  ;;  %v734_v43 = vpop.permute.xlu0 %733 }
  0xba   : > { %v651_v56 = vor.u32 %v650_v47, %v647_v2  ;;  %v660_v58 = vrot.slane %v658_v49, 7  ;;  %v788_v59 = vmul.bf16 %v4966_v19, %v758_v45  ;;  %v627_v61 = vrot.slane %v625_v50, 6  ;;  %v4965_v20 = vld [vmem:[%s6282_s9 + $0x34] sm:$0xf]  ;;  %v4977_v48 = vld [vmem:[%s6282_s9 + $0x4c] sm:$0xf] }
  0xbb   : > { %v630_v62 = vrot.slane %v628_v51, 7  ;;  %v637_v63 = vrot.slane %v635_v52, 6  ;;  %v640_v0 = vrot.slane %v638_v53, 7  ;;  %vm860_vm10 = vcmask 519170  }
  0xbc   : > { %v653_v4 = vrot.slane %v651_v56, 4  ;;  %v661_v6 = vor.u32 %v660_v58, %v657_v57  ;;  %v789_v7 = vmul.bf16 %v4967_v55, %v765_v46  ;;  %v814_v9 = vshrl.u32 %v788_v59, 16  ;;  %v4976_v46 = vld [vmem:[%s6282_s9 + $0x48] sm:$0xf]  ;;  %v863_v57 = vld [vmem:[#allocation2 + $0x30] sm:$0xc] }
  0xbd   : > { %v631_v16 = vor.u32 %v630_v62, %v627_v61  ;;  %v641_v21 = vor.u32 %v640_v0, %v637_v63  ;;  %v817_v22 = vshll.u32 %v788_v59, 16  ;;  %vm1049_vm2 = vsmask.f32 7950  ;;  %v4968_v0 = vld [vmem:[%s6282_s9 + $0x40] sm:$0xf]  ;;  %v6491_v12 = vld [vmem:[#allocation2 + $0x8] sm:$0xff]  }
  0xbe   : > { %v662_v26 = vsel %vm6347_vm4, %v653_v4, %v661_v6  ;;  %v663_v27 = vrot.slane %v661_v6, 4  ;;  %v816_v29 = vrot.slane %v814_v9, 5  ;;  %v824_v30 = vshrl.u32 %v789_v7, 16  ;;  %v4978_v9 = vld [vmem:[%s6282_s9 + $0x50] sm:$0xf] }
  0xbf   : > { %681 = vst.msk [vmem:[#allocation2 + $0x2c] sm:$0xf] %vm483_vm7, %v662_v26  ;;  %v632_v31 = vsel %vm6347_vm4, %v623_v28, %v631_v16  ;;  %v633_v35 = vrot.slane %v631_v16, 4  ;;  %v643_v38 = vrot.slane %v641_v21, 4  ;;  %v819_v39 = vrot.slane %v817_v22, 6 }
  0xc0   : > { %v685_v41 = vsel %vm6379_vm1, %v663_v27, %v684_v3  ;;  %678 = vst.msk [vmem:[#allocation2 + $0x20] sm:$0xf] %vm483_vm7, %v632_v31  ;;  %v826_v10 = vrot.slane %v824_v30, 5  ;;  %v827_v32 = vshll.u32 %v789_v7, 16  ;;  %v751_v42 = vrot.slane %v726_v60, %v6277_v36  ;;  %v4969_v3 = vld [vmem:[%s6282_s9 + $0x44] sm:$0xf] }
  0xc1   : > { %686 = vst [vmem:[#allocation2 + $0x30] sm:$0x3] %v685_v41  ;;  %v642_v28 = vsel %vm6347_vm4, %v633_v35, %v641_v21  ;;  %v652_v44 = vsel %vm6347_vm4, %v643_v38, %v651_v56  ;;  %v6398_v19 = vor.u32 %v819_v39, %v816_v29  ;;  %v786_v45 = vmul.bf16 %v4964_v11, %v744_v24  ;;  %vm6408_vm4 = vmor %vm711_vm0, %vm792_vm5  ;;  %v1051_v29 = vld [vmem:[#allocation2 + $0x48] sm:$0x8]  ;;  %v5764_v27 = vld [vmem:[%s8575_s3 + $0x58] sm:$0xff]  }
  0xc2   : > { %679 = vst.msk [vmem:[#allocation2 + $0x24] sm:$0xf] %vm483_vm7, %v642_v28  ;;  %680 = vst.msk [vmem:[#allocation2 + $0x28] sm:$0xf] %vm483_vm7, %v652_v44  ;;  %v829_v2 = vrot.slane %v827_v32, 6  ;;  %v787_v47 = vmul.bf16 %v4965_v20, %v751_v42  ;;  %v933_v49 = vrot.slane %v915_v40, %v6285_v37  ;;  %v940_v50 = vrot.slane %v915_v40, %v6277_v36  ;;  %v923_v28 = vpop.permute.xlu1 %922 }
  0xc3   : > { %vm981_vm14 = vsmask.f32 7440  ;;  %v822_v51 = vrot.slane %v6398_v19, 4  ;;  %v795_v52 = vshrl.u32 %v786_v45, 16  ;;  %v798_v53 = vshll.u32 %v786_v45, 16  ;;  %vm6425_vm5 = vmand %vm860_vm10, %vm861_vm15 }
  0xc4   : > { %v772_v55 = vrot.slane %v734_v43, %v6285_v37  ;;  %v6414_v56 = vor.u32 %v829_v2, %v826_v10  ;;  %v804_v58 = vshrl.u32 %v787_v47, 16  ;;  %v807_v59 = vshll.u32 %v787_v47, 16  ;;  %v4980_v2 = vld [vmem:[%s6282_s9 + $0x58] sm:$0xf] }
  0xc5   : > { %v975_v60 = vmul.bf16 %v4976_v46, %v933_v49  ;;  %v797_v61 = vrot.slane %v795_v52, 5  ;;  %v800_v62 = vrot.slane %v798_v53, 6  ;;  %v976_v63 = vmul.bf16 %v4977_v48, %v940_v50  ;;  %v919_v52 = vpop.permute.xlu0 %918  ;;  %v1075_v53 = vld [vmem:[#allocation2] sm:$0xf] }
  0xc6   : > { %v779_v4 = vrot.slane %v734_v43, %v6277_v36  ;;  %v831_v6 = vsel %vm6408_vm4, %v822_v51, %v6414_v56  ;;  %v832_v7 = vrot.slane %v6414_v56, 4  ;;  %v806_v11 = vrot.slane %v804_v58, 5  ;;  %v4981_v51 = vld [vmem:[%s6282_s9 + $0x5c] sm:$0xf] }
  0xc7   : > { %v809_v15 = vrot.slane %v807_v59, 6  ;;  %868 = vst.msk [vmem:[#allocation2 + $0x3c] sm:$0xf] %vm483_vm7, %v831_v6  ;;  %v801_v16 = vor.u32 %v800_v62, %v797_v61  ;;  %v984_v21 = vshll.u32 %v975_v60, 16  ;;  %v987_v22 = vshrl.u32 %v975_v60, 16 }
  0xc8   : > { %v993_v20 = vshll.u32 %v976_v63, 16  ;;  %vm871_vm1 = vcmask 518144   ;;  %vm1308_vm9 = vcmask 523264   ;;  %v688_v24 = vld [vmem:[#allocation2 + $0x30] sm:$0x2]  ;;  %vm8658_vm11 = vcmask 519171  }
  0xc9   : > { %v810_v26 = vor.u32 %v809_v15, %v806_v11  ;;  %vm6432_vm3 = vmand %vm8658_vm11, %vm1049_vm2  ;;  %v997_v30 = vshrl.u32 %v976_v63, 16  ;;  %v790_v31 = vmul.bf16 %v4968_v0, %v772_v55  ;;  %v791_v35 = vmul.bf16 %v4969_v3, %v779_v4  ;;  %v6458_v60 = vld [vmem:[#allocation2 + $0x4] sm:$0xf] }
  0xca   : > { %v689_v38 = vsel %vm6210_vm12, 0, %v688_v24  ;;  %v802_v39 = vrot.slane %v801_v16, 4  ;;  %v864_v40 = vsel %vm6425_vm5, %v801_v16, %v863_v57  ;;  %v986_v41 = vrot.slane %v984_v21, 5  ;;  %v4979_v21 = vld [vmem:[%s6282_s9 + $0x54] sm:$0xf]  ;;  %vm6477_vm10 = vmand %vm871_vm1, %vm711_vm0  ;;  %s307_s9 = scalar_lea.vmem [#allocation5], %s4940_s22 }
  0xcb   : > { %690 = vst [vmem:[#allocation2 + $0x30] sm:$0x2] %v689_v38  ;;  %v812_v10 = vrot.slane %v810_v26, 4  ;;  %865 = vst [vmem:[#allocation2 + $0x30] sm:$0xc] %v864_v40  ;;  %v989_v32 = vrot.slane %v987_v22, 4  ;;  %v961_v59 = vrot.slane %v923_v28, %v6285_v37  ;;  %v968_v0 = vrot.slane %v923_v28, %v6277_v36 }
  0xcc   : > { %v995_v42 = vrot.slane %v993_v20, 5  ;;  %v999_v43 = vrot.slane %v997_v30, 4  ;;  %v811_v44 = vsel %vm6408_vm4, %v802_v39, %v810_v26  ;;  %v1052_v1 = vsel %vm6432_vm3, %v986_v41, %v1051_v29  ;;  %s4853_s10 = sshll.u32 %s307_s9, 4  ;;  %s8529_s10 = int_to_ptr.vmem [resolvable:$true] %s4853_s10 }
  0xcd   : > { %v834_v45 = vshrl.u32 %v790_v31, 16  ;;  %v837_v46 = vshll.u32 %v790_v31, 16  ;;  %v821_v47 = vsel %vm6408_vm4, %v812_v10, %v6398_v19  ;;  %866 = vst.msk [vmem:[#allocation2 + $0x34] sm:$0xf] %vm483_vm7, %v811_v44  ;;  %v990_v48 = vor.u32 %v989_v32, %v986_v41  ;;  %1053 = vst [vmem:[#allocation2 + $0x48] sm:$0x8] %v1052_v1  ;;  %p5915_p0 = scmp.lt.s32.totalorder %s8529_s10, %s5913_s19 }
  0xce   : > { %v1000_v49 = vor.u32 %v999_v43, %v995_v42  ;;  %v844_v50 = vshrl.u32 %v791_v35, 16  ;;  %867 = vst.msk [vmem:[#allocation2 + $0x38] sm:$0xf] %vm483_vm7, %v821_v47  ;;  %vm8661_vm11 = vsmask.f32 3328  ;;  %v847_v58 = vshll.u32 %v791_v35, 16 }
  0xcf   : > { %vm6453_vm12 = vmor %vm8661_vm11, %vm981_vm14  ;;  %v836_v57 = vrot.slane %v834_v45, 5  ;;  %v839_v19 = vrot.slane %v837_v46, 6  ;;  %v991_v61 = vrot.slane %v990_v48, 4  ;;  %v979_v6 = vmul.bf16 %v4980_v2, %v961_v59  ;;  %s5908_s14 = scalar_lea.vmem %s8529_s10, 64 }
  0xd0   : > { %v1001_v62 = vrot.slane %v1000_v49, 4  ;;  %v846_v63 = vrot.slane %v844_v50, 5  ;;  %v849_v4 = vrot.slane %v847_v58, 6  ;;  %v947_v11 = vrot.slane %v919_v52, %v6285_v37  ;;  %v1060_v49 = vld [vmem:[#allocation2 + $0x60] sm:$0xf]  ;;  %p5909_p11 = scmp.ne.s32.totalorder %s8529_s10, %s5908_s14 }
  0xd1   : > { %v840_v3 = vor.u32 %v839_v19, %v836_v57  ;;  %v996_v15 = vsel %vm6453_vm12, %v991_v61, %v995_v42  ;;  %v980_v16 = vmul.bf16 %v4981_v51, %v968_v0  ;;  %v954_v22 = vrot.slane %v919_v52, %v6277_v36  ;;  %v873_v36 = vld [vmem:[#allocation2 + $0x48] sm:$0x7] }
  0xd2   : > { %v6468_v20 = vcombine.low %v1075_v53, %v6458_v60  ;;  %1054 = vst.msk [vmem:[#allocation2 + $0x4c] sm:$0xf] %vm483_vm7, %v996_v15  ;;  %v850_v29 = vor.u32 %v849_v4, %v846_v63  ;;  %v1023_v37 = vshll.u32 %v979_v6, 16  ;;  %v1027_v31 = vshrl.u32 %v979_v6, 16  ;;  %p5910_p12 = pnand %p5909_p11, %p6061_p5 }
  0xd3   : > { %v841_v24 = vsel %vm6408_vm4, %v832_v7, %v840_v3  ;;  %v842_v26 = vrot.slane %v840_v3, 4  ;;  %v1033_v35 = vshll.u32 %v980_v16, 16  ;;  %v1037_v38 = vshrl.u32 %v980_v16, 16 }
  0xd4   : > { %869 = vst.msk [vmem:[#allocation2 + $0x40] sm:$0xf] %vm483_vm7, %v841_v24  ;;  %v977_v39 = vmul.bf16 %v4978_v9, %v947_v11  ;;  %5376 = vmatmul.mubr.msk.bf16.vlgmr.msra.gmra.mrb[0].mxu1 %vm1308_vm9, %v6468_v20  ;;  %v852_v7 = vrot.slane %v850_v29, 4  ;;  %v1025_v40 = vrot.slane %v1023_v37, 5  ;;  %v978_v41 = vmul.bf16 %v4979_v21, %v954_v22  ;;  %v5752_v24 = vld [vmem:[%s8575_s3 + $0x40] sm:$0xff]   ;;  %p5911_p13 = pneg %p5910_p12 }
  0xd5   : > { %v851_v56 = vsel %vm6408_vm4, %v842_v26, %v850_v29  ;;  %vm8666_vm14 = vmmov 0   ;;  %v1029_v10 = vrot.slane %v1027_v31, 4  ;;  %v1035_v32 = vrot.slane %v1033_v35, 5  ;;  %vm8667_vm4 = vmmov %vm8661_vm11  ;;  %v6527_v26 = vld [vmem:[#allocation2 + $0x10] sm:$0xff]  }
  0xd6   : > { %5379 = vmatprep.mubr.msk.bf16.mxu1 %vm8666_vm14, %v8588_v54  ;;  %870 = vst.msk [vmem:[#allocation2 + $0x44] sm:$0xf] %vm483_vm7, %v851_v56  ;;  %v1039_v42 = vrot.slane %v1037_v38, 4  ;;  %v1003_v43 = vshll.u32 %v977_v39, 16  ;;  %v874_v28 = vsel %vm6477_vm10, %v852_v7, %v873_v36  ;;  %v1007_v44 = vshrl.u32 %v977_v39, 16  ;;  %vm6495_vm5 = vmand %vm483_vm7, %vm8667_vm4  ;;  %v5756_v36 = vld [vmem:[%s8575_s3 + $0x48] sm:$0xff]  }
  0xd7   : > { %v1013_v1 = vshll.u32 %v978_v41, 16  ;;  %v1017_v45 = vshrl.u32 %v978_v41, 16  ;;  %875 = vst [vmem:[#allocation2 + $0x48] sm:$0x7] %v874_v28  ;;  %v1030_v46 = vor.u32 %v1029_v10, %v1025_v40  ;;  %v1184_v61 = vshll.u32 %v6468_v20, 16  ;;  %v5754_v39 = vld [vmem:[#allocation2 + $0x18] sm:$0xff]  }
  0xd8   : > { %v1040_v2 = vor.u32 %v1039_v42, %v1035_v32  ;;  %v1005_v47 = vrot.slane %v1003_v43, 5  ;;  %v1009_v50 = vrot.slane %v1007_v44, 4  ;;  %v1189_v63 = vshll.u32 %v6491_v12, 16  ;;  %v5760_v7 = vld [vmem:[%s8575_s3 + $0x50] sm:$0xff]   ;;  %v5755_v42 = vld [vmem:[#allocation2 + $0x20] sm:$0xff]   ;;  %v6566_v44 = vld [vmem:[#allocation2 + $0x28] sm:$0xff]  }
  0xd9   : > { %v1015_v51 = vrot.slane %v1013_v1, 5  ;;  %v1019_v52 = vrot.slane %v1017_v45, 4  ;;  %v1031_v53 = vrot.slane %v1030_v46, 4  ;;  %v1182_v4 = vshrl.u32 %v6468_v20, 16 }
  0xda   : > { %v1041_v57 = vrot.slane %v1040_v2, 4  ;;  %v1006_v19 = vsel %vm6453_vm12, %v1001_v62, %v1005_v47  ;;  %v1010_v58 = vor.u32 %v1009_v50, %v1005_v47  ;;  %vm8670_vm1 = vcmask 518146   ;;  %v6568_v47 = vld [vmem:[#allocation2 + $0x30] sm:$0xff]  }
  0xdb   : > { %v1020_v59 = vor.u32 %v1019_v52, %v1015_v51  ;;  %1055 = vst.msk [vmem:[#allocation2 + $0x50] sm:$0xf] %vm483_vm7, %v1006_v19  ;;  %v1036_v0 = vsel %vm6453_vm12, %v1031_v53, %v1035_v32  ;;  %vm6513_vm11 = vmand %vm8670_vm1, %vm861_vm15  ;;  %v1186_v11 = vrot.slane %v1184_v61, 1  ;;  %v1191_v15 = vrot.slane %v1189_v63, 1 }
  0xdc   : > { %v1061_v3 = vsel %vm6495_vm5, %v1041_v57, %v1060_v49  ;;  %5380 = vmatmul.mubr.msk.bf16.gmra.mrb[4].mxu1 %vm1308_vm9, %v6491_v12  ;;  %1058 = vst.msk [vmem:[#allocation2 + $0x5c] sm:$0xf] %vm483_vm7, %v1036_v0  ;;  %v1011_v6 = vrot.slane %v1010_v58, 4  ;;  %vm1180_vm10 = vsmask.f32 7424  ;;  %v1193_v55 = vshrl.u32 %v6491_v12, 16 }
  0xdd   : > { %1062 = vst [vmem:[#allocation2 + $0x60] sm:$0xf] %v1061_v3  ;;  %v1021_v9 = vrot.slane %v1020_v59, 4  ;;  %5383 = vmatprep.mubr.msk.bf16.mxu1 %vm8666_vm14, %v8588_v54  ;;  %v1187_v20 = vor.u32 %v1186_v11, %v1182_v4  ;;  %v1197_v30 = vshll.u32 %v6527_v26, 16  ;;  %v1205_v10 = vshll.u32 %v5754_v39, 16  ;;  %v6574_v49 = vld [vmem:[#allocation2 + $0x40] sm:$0xff]  }
  0xde   : > { %v877_v16 = vld [vmem:[#allocation2 + $0x48] sm:$0x4]  ;;  %v1016_v21 = vsel %vm6453_vm12, %v1011_v6, %v1015_v51  ;;  %v1195_v38 = vor.u32 %v1193_v55, %v1191_v15  ;;  %v1201_v43 = vshrl.u32 %v6527_v26, 16  ;;  %v1209_v45 = vshrl.u32 %v5754_v39, 16 }
  0xdf   : > { %v1026_v22 = vsel %vm6453_vm12, %v1021_v9, %v1025_v40  ;;  %v878_v29 = vsel %vm6513_vm11, 0, %v877_v16  ;;  %1056 = vst.msk [vmem:[#allocation2 + $0x54] sm:$0xf] %vm483_vm7, %v1016_v21  ;;  %v1192_v37 = vsel %vm1180_vm10, %v1187_v20, %v1191_v15  ;;  %v1199_v56 = vrot.slane %v1197_v30, 1  ;;  %v1674_v40 = vld [vmem:[#allocation2] sm:$0xe] }
  0xe0   : > { %1057 = vst.msk [vmem:[#allocation2 + $0x58] sm:$0xf] %vm483_vm7, %v1026_v22  ;;  %879 = vst [vmem:[#allocation2 + $0x48] sm:$0x4] %v878_v29  ;;  %5316 = vmatmul.mubr.msk.bf16.vlgmr.msra.gmra.mrb[0].mxu0 %vm1308_vm9, %v1192_v37  ;;  %v5030_v32 = vcombine.low %v1674_v40, %v6458_v60  ;;  %v1207_v28 = vrot.slane %v1205_v10, 1  ;;  %v1213_v2 = vshll.u32 %v5755_v42, 16 }
  0xe1   : > { %5428 = vmatpush3.bf16.msra.mxu0 %v5752_v24  ;;  %5319 = vmatprep.mubr.msk.bf16.mxu0 %vm8666_vm14, %v8588_v54  ;;  %v1200_v41 = vsel %vm1180_vm10, %v1195_v38, %v1199_v56  ;;  %v1203_v1 = vor.u32 %v1201_v43, %v1199_v56  ;;  %v6570_v60 = vld [vmem:[#allocation2 + $0x38] sm:$0xff]   ;;  %v1688_v52 = vrot.slane %v6491_v12, 1  ;;  %v1690_v53 = vrot.slane %v6527_v26, 1  ;;  %vm8687_vm7 = vmmov %vm8667_vm4 }
  0xe2   : > { %5429 = vmatprep.subr.bf16.mxu0 %v8588_v54  ;;  %v1687_v46 = vrot.slane %v5030_v32, 1  ;;  %v1692_v57 = vrot.slane %v5754_v39, 1  ;;  %v1694_v59 = vrot.slane %v5755_v42, 1  ;;  %v1696_v61 = vrot.slane %v6566_v44, 1 }
  0xe3   : > { %v1208_v48 = vsel %vm1180_vm10, %v1203_v1, %v1207_v28  ;;  %v1211_v63 = vor.u32 %v1209_v45, %v1207_v28  ;;  %v1215_v4 = vrot.slane %v1213_v2, 1  ;;  %v1698_v9 = vrot.slane %v6568_v47, 1 }
  0xe4   : > { %v1063_v31 = vld [vmem:[#allocation2 + $0x60] sm:$0x8]  ;;  %5384 = vmatmul.mubr.msk.bf16.gmra.mrb[8].mxu1 %vm1308_vm9, %v6527_v26  ;;  %v6585_v58 = vld [vmem:[#allocation2 + $0x60] ss:$0 sps:$4 sm:$0xff]   ;;  %v1700_v11 = vrot.slane %v6570_v60, 1  ;;  %v1702_v15 = vrot.slane %v6574_v49, 1 }
  0xe5   : > { %v1064_v35 = vsel %vm6432_vm3, 0, %v1063_v31  ;;  %5387 = vmatprep.mubr.msk.bf16.mxu1 %vm8666_vm14, %v8588_v54  ;;  %5430 = vmatpush3.bf16.msra.mxu0 %v5756_v36  ;;  %vm1686_vm3 = vcmask 1046528   ;;  %v1710_v24 = vrot.slane %v6585_v58, 1  ;;  %v1216_v31 = vsel %vm1180_vm10, %v1211_v63, %v1215_v4 }
  0xe6   : > { %1065 = vst [vmem:[#allocation2 + $0x60] sm:$0x8] %v1064_v35  ;;  %5431 = vmatprep.subr.bf16.mxu0 %v8588_v54  ;;  %v6578_v51 = vld [vmem:[#allocation2 + $0x50] sm:$0xff]   ;;  %v6591_v0 = vsel %vm1686_vm3, %v1687_v46, %v1688_v52  ;;  %v6594_v12 = vsel %vm1686_vm3, %v1688_v52, %v1690_v53  ;;  %v6597_v3 = vsel %vm1686_vm3, %v1690_v53, %v1692_v57  ;;  %v1217_v35 = vshrl.u32 %v5755_v42, 16 }
  0xe7   : > { %v6576_v50 = vld [vmem:[#allocation2 + $0x48] sm:$0xff]   ;;  %v6583_v19 = vld [vmem:[#allocation2 + $0x58] sm:$0xff]   ;;  %v6601_v62 = vsel %vm1686_vm3, %v1692_v57, %v1694_v59  ;;  %v6604_v6 = vsel %vm1686_vm3, %v1694_v59, %v1696_v61  ;;  %v1706_v21 = vrot.slane %v6578_v51, 1  ;;  %v6614_v22 = vsel %vm1686_vm3, %v1696_v61, %v1698_v9 }
  0xe8   : > { %5320 = vmatmul.mubr.msk.bf16.gmra.mrb[4].mxu0 %vm1308_vm9, %v1200_v41  ;;  %v1704_v16 = vrot.slane %v6576_v50, 1  ;;  %v1708_v20 = vrot.slane %v6583_v19, 1  ;;  %v6619_v26 = vsel %vm1686_vm3, %v1698_v9, %v1700_v11  ;;  %v6622_v29 = vsel %vm1686_vm3, %v1700_v11, %v1702_v15 }
  0xe9   : > { %5323 = vmatprep.mubr.msk.bf16.mxu0 %vm8666_vm14, %v8588_v54  ;;  %5432 = vmatpush3.bf16.msra.mxu0 %v5760_v7  ;;  %v1221_v38 = vshll.u32 %v6566_v44, 16  ;;  %v1229_v40 = vshll.u32 %v6568_v47, 16  ;;  %v1225_v41 = vshrl.u32 %v6566_v44, 16  ;;  %v1237_v43 = vshll.u32 %v6570_v60, 16 }
  0xea   : > { %5433 = vmatprep.subr.bf16.mxu0 %v8588_v54  ;;  %v6625_v37 = vsel %vm1686_vm3, %v1702_v15, %v1704_v16  ;;  %v6628_v55 = vsel %vm1686_vm3, %v1704_v16, %v1706_v21  ;;  %v6631_v30 = vsel %vm1686_vm3, %v1706_v21, %v1708_v20  ;;  %v6636_v36 = vsel %vm1686_vm3, %v1708_v20, %v1710_v24 }
  0xeb   : > { %v1223_v56 = vrot.slane %v1221_v38, 1  ;;  %v1231_v10 = vrot.slane %v1229_v40, 1  ;;  %v1245_v45 = vshll.u32 %v6574_v49, 16  ;;  %v1241_v46 = vshrl.u32 %v6570_v60, 16 }
  0xec   : > { %5388 = vmatmul.mubr.msk.bf16.gmra.mrb[12].mxu1 %vm1308_vm9, %v5754_v39  ;;  %v1219_v39 = vor.u32 %v1217_v35, %v1215_v4  ;;  %v1253_v52 = vshll.u32 %v6576_v50, 16  ;;  %v1249_v53 = vshrl.u32 %v6574_v49, 16  ;;  %v1257_v61 = vshrl.u32 %v6576_v50, 16 }
  0xed   : > { %5391 = vmatprep.mubr.msk.bf16.mxu1 %vm8666_vm14, %v8588_v54  ;;  %5434 = vmatpush3.bf16.msra.mxu0 %v5764_v27  ;;  %v1227_v27 = vor.u32 %v1225_v41, %v1223_v56  ;;  %v1247_v2 = vrot.slane %v1245_v45, 1  ;;  %v1261_v63 = vshll.u32 %v6578_v51, 16  ;;  %v1265_v11 = vshrl.u32 %v6578_v51, 16 }
  0xee   : > { %5555 = vmatprep.subr.bf16.mxu0 %v8588_v54  ;;  %v1224_v7 = vsel %vm1180_vm10, %v1219_v39, %v1223_v56  ;;  %v1277_v20 = vshll.u32 %v6585_v58, 16  ;;  %v1281_v56 = vshrl.u32 %v6585_v58, 16  ;;  %vm2522_vm5 = vcmask 1043456  }
  0xef   : > { %v1232_v32 = vsel %vm1180_vm10, %v1227_v27, %v1231_v10  ;;  %v1251_v57 = vor.u32 %v1249_v53, %v1247_v2  ;;  %v1263_v4 = vrot.slane %v1261_v63, 1  ;;  %vm8692_vm1 = vsmask.f32 7938 }
  0xf0   : > { %5324 = vmatmul.mubr.msk.bf16.gmra.mrb[8].mxu0 %vm1308_vm9, %v1208_v48  ;;  %v1279_v35 = vrot.slane %v1277_v20, 1  ;;  %vm7264_vm11 = vmand %vm2522_vm5, %vm8692_vm1 }
  0xf1   : > { %5327 = vmatprep.mubr.msk.bf16.mxu0 %vm8666_vm14, %v8588_v54  ;;  %v1267_v15 = vor.u32 %v1265_v11, %v1263_v4 }
  0xf4   : > { %5392 = vmatmul.mubr.msk.bf16.gmra.mrb[16].mxu1 %vm1308_vm9, %v5755_v42  ;;  %v1233_v42 = vshrl.u32 %v6568_v47, 16 }
  0xf5   : > { %5395 = vmatprep.mubr.msk.bf16.mxu1 %vm8666_vm14, %v8588_v54 }
  0xf6   : > { %v1235_v28 = vor.u32 %v1233_v42, %v1231_v10 }
  0xf8   : > { %5328 = vmatmul.mubr.msk.bf16.gmra.mrb[12].mxu0 %vm1308_vm9, %v1216_v31  ;;  %v5766_v31 = vld [vmem:[#allocation2 + $0x60] ss:$0 sps:$4 sm:$0x77]  }
  0xf9   : > { %5331 = vmatprep.mubr.msk.bf16.mxu0 %vm8666_vm14, %v8588_v54 }
  0xfc   : > { %5396 = vmatmul.mubr.msk.bf16.gmra.mrb[20].mxu1 %vm1308_vm9, %v6566_v44  ;;  %v1239_v44 = vrot.slane %v1237_v43, 1 }
  0xfd   : > { %5399 = vmatprep.mubr.msk.bf16.mxu1 %vm8666_vm14, %v8588_v54 }
  0xfe   : > { %v1240_v1 = vsel %vm1180_vm10, %v1235_v28, %v1239_v44 }
 0x100   : > { %5332 = vmatmul.mubr.msk.bf16.gmra.mrb[16].mxu0 %vm1308_vm9, %v1224_v7  ;;  %v1283_v7 = vor.u32 %v1281_v56, %v1279_v35 }
 0x101   : > { %5335 = vmatprep.mubr.msk.bf16.mxu0 %vm8666_vm14, %v8588_v54 }
 0x104   : > { %5400 = vmatmul.mubr.msk.bf16.gmra.mrb[24].mxu1 %vm1308_vm9, %v6568_v47  ;;  %v1243_v47 = vor.u32 %v1241_v46, %v1239_v44 }
 0x105   : > { %5403 = vmatprep.mubr.msk.bf16.mxu1 %vm8666_vm14, %v8588_v54 }
 0x106   : > { %v1248_v48 = vsel %vm1180_vm10, %v1243_v47, %v1247_v2 }
 0x108   : > { %5336 = vmatmul.mubr.msk.bf16.gmra.mrb[20].mxu0 %vm1308_vm9, %v1232_v32 }
 0x109   : > { %5339 = vmatprep.mubr.msk.bf16.mxu0 %vm8666_vm14, %v8588_v54 }
 0x10c   : > { %5404 = vmatmul.mubr.msk.bf16.gmra.mrb[28].mxu1 %vm1308_vm9, %v6570_v60  ;;  %v1255_v60 = vrot.slane %v1253_v52, 1 }
 0x10d   : > { %5407 = vmatprep.mubr.msk.bf16.mxu1 %vm8666_vm14, %v8588_v54 }
 0x10e   : > { %v1256_v59 = vsel %vm1180_vm10, %v1251_v57, %v1255_v60 }
 0x110   : > { %5340 = vmatmul.mubr.msk.bf16.gmra.mrb[24].mxu0 %vm1308_vm9, %v1240_v1 }
 0x111   : > { %5343 = vmatprep.mubr.msk.bf16.mxu0 %vm8666_vm14, %v8588_v54 }
 0x114   : > { %5408 = vmatmul.mubr.msk.bf16.gmra.mrb[32].mxu1 %vm1308_vm9, %v6574_v49  ;;  %v1259_v49 = vor.u32 %v1257_v61, %v1255_v60 }
 0x115   : > { %5411 = vmatprep.mubr.msk.bf16.mxu1 %vm8666_vm14, %v8588_v54 }
 0x116   : > { %v1264_v9 = vsel %vm1180_vm10, %v1259_v49, %v1263_v4 }
 0x118   : > { %5344 = vmatmul.mubr.msk.bf16.gmra.mrb[28].mxu0 %vm1308_vm9, %v1248_v48 }
 0x119   : > { %5347 = vmatprep.mubr.msk.bf16.mxu0 %vm8666_vm14, %v8588_v54 }
 0x11c   : > { %5412 = vmatmul.mubr.msk.bf16.gmra.mrb[36].mxu1 %vm1308_vm9, %v6576_v50  ;;  %v1269_v50 = vshll.u32 %v6583_v19, 16 }
 0x11d   : > { %5415 = vmatprep.mubr.msk.bf16.mxu1 %vm8666_vm14, %v8588_v54 }
 0x11e   : > { %v1271_v16 = vrot.slane %v1269_v50, 1 }
 0x120   : > { %5348 = vmatmul.mubr.msk.bf16.gmra.mrb[32].mxu0 %vm1308_vm9, %v1256_v59  ;;  %v1272_v21 = vsel %vm1180_vm10, %v1267_v15, %v1271_v16 }
 0x121   : > { %5351 = vmatprep.mubr.msk.bf16.mxu0 %vm8666_vm14, %v8588_v54 }
 0x124   : > { %5416 = vmatmul.mubr.msk.bf16.gmra.mrb[40].mxu1 %vm1308_vm9, %v6578_v51  ;;  %v1273_v51 = vshrl.u32 %v6583_v19, 16 }
 0x125   : > { %5419 = vmatprep.mubr.msk.bf16.mxu1 %vm8666_vm14, %v8588_v54 }
 0x126   : > { %v1275_v38 = vor.u32 %v1273_v51, %v1271_v16 }
 0x128   : > { %5352 = vmatmul.mubr.msk.bf16.gmra.mrb[36].mxu0 %vm1308_vm9, %v1264_v9  ;;  %v1280_v39 = vsel %vm1180_vm10, %v1275_v38, %v1279_v35 }
 0x129   : > { %5355 = vmatprep.mubr.msk.bf16.mxu0 %vm8666_vm14, %v8588_v54 }
 0x12c   : > { %5420 = vmatmul.mubr.msk.bf16.gmra.mrb[44].mxu1 %vm1308_vm9, %v6583_v19 }
 0x12d   : > { %5423 = vmatprep.mubr.msk.bf16.mxu1 %vm8666_vm14, %v8588_v54 }
 0x130   : > { %5356 = vmatmul.mubr.msk.bf16.gmra.mrb[40].mxu0 %vm1308_vm9, %v1272_v21 }
 0x131   : > { %5359 = vmatprep.mubr.msk.bf16.mxu0 %vm8666_vm14, %v8588_v54 }
 0x134   : > { %5424 = vmatmul.mubr.msk.bf16.gmra.mrb[48].mxu1 %vm1308_vm9, %v5766_v31 }
 0x135   : > { %5503 = vmatprep.mubr.msk.bf16.mxu1 %vm8666_vm14, %v8588_v54 }
 0x138   : > { %5360 = vmatmul.mubr.msk.bf16.gmra.mrb[44].mxu0 %vm1308_vm9, %v1280_v39 }
 0x139   : > { %5363 = vmatprep.mubr.msk.bf16.mxu0 %vm8666_vm14, %v8588_v54 }
 0x140   : > { %5364 = vmatmul.mubr.msk.bf16.gmra.mrb[48].mxu0 %vm1308_vm9, %v1283_v7 }
 0x141   : > { %5435 = vmatprep.mubr.msk.bf16.mxu0 %vm8666_vm14, %v8588_v54 }
 0x148   : > { %5436 = vmatmul.mubr.msk.bf16.vlgmr.msra.gmra.mrb[52].mxu0 %vm1308_vm9, %v6591_v0 }
 0x149   : > { %5439 = vmatprep.mubr.msk.bf16.mxu0 %vm8666_vm14, %v8588_v54 }
 0x150   : > { %5440 = vmatmul.mubr.msk.bf16.gmra.mrb[56].mxu0 %vm1308_vm9, %v6594_v12 }
 0x151   : > { %5443 = vmatprep.mubr.msk.bf16.mxu0 %vm8666_vm14, %v8588_v54 }
 0x158   : > { %5444 = vmatmul.mubr.msk.bf16.gmra.mrb[60].mxu0 %vm1308_vm9, %v6597_v3 }
 0x159   : > { %5447 = vmatprep.mubr.msk.bf16.mxu0 %vm8666_vm14, %v8588_v54 }
 0x160   : > { %5448 = vmatmul.mubr.msk.bf16.gmra.mrb[64].mxu0 %vm1308_vm9, %v6601_v62 }
 0x161   : > { %5451 = vmatprep.mubr.msk.bf16.mxu0 %vm8666_vm14, %v8588_v54 }
 0x168   : > { %5452 = vmatmul.mubr.msk.bf16.gmra.mrb[68].mxu0 %vm1308_vm9, %v6604_v6 }
 0x169   : > { %5455 = vmatprep.mubr.msk.bf16.mxu0 %vm8666_vm14, %v8588_v54 }
 0x170   : > { %5456 = vmatmul.mubr.msk.bf16.gmra.mrb[72].mxu0 %vm1308_vm9, %v6614_v22 }
 0x171   : > { %5459 = vmatprep.mubr.msk.bf16.mxu0 %vm8666_vm14, %v8588_v54 }
 0x178   : > { %5460 = vmatmul.mubr.msk.bf16.gmra.mrb[76].mxu0 %vm1308_vm9, %v6619_v26 }
 0x179   : > { %5463 = vmatprep.mubr.msk.bf16.mxu0 %vm8666_vm14, %v8588_v54 }
 0x180   : > { %5464 = vmatmul.mubr.msk.bf16.gmra.mrb[80].mxu0 %vm1308_vm9, %v6622_v29 }
 0x181   : > { %5467 = vmatprep.mubr.msk.bf16.mxu0 %vm8666_vm14, %v8588_v54 }
 0x188   : > { %5468 = vmatmul.mubr.msk.bf16.gmra.mrb[84].mxu0 %vm1308_vm9, %v6625_v37 }
 0x189   : > { %5471 = vmatprep.mubr.msk.bf16.mxu0 %vm8666_vm14, %v8588_v54 }
 0x190   : > { %5472 = vmatmul.mubr.msk.bf16.gmra.mrb[88].mxu0 %vm1308_vm9, %v6628_v55 }
 0x191   : > { %5475 = vmatprep.mubr.msk.bf16.mxu0 %vm8666_vm14, %v8588_v54 }
 0x198   : > { %5476 = vmatmul.mubr.msk.bf16.gmra.mrb[92].mxu0 %vm1308_vm9, %v6631_v30 }
 0x199   : > { %5479 = vmatprep.mubr.msk.bf16.mxu0 %vm8666_vm14, %v8588_v54 }
 0x1a0   : > { %5480 = vmatmul.mubr.msk.bf16.gmra.mrb[96].mxu0 %vm1308_vm9, %v6636_v36 }
 0x1a1   : > { %5483 = vmatprep.mubr.msk.bf16.mxu0 %vm8666_vm14, %v8588_v54 }
 0x1a7   : > { %v1572_v19 = vpop.f32.mrb[0].mxu1 }
 0x1a8   : > { %v5377_v0 = vpop.f32.mrb[1].mxu1  ;;  %5484 = vmatmul.mubr.msk.bf16.gmra.mrb[100].mxu0 %vm1308_vm9, %v1710_v24  ;;  %vm2038_vm9 = vcmask 1045504  }
 0x1a9   : > { %v1575_v12 = vpop.f32.mrb[2].mxu1  ;;  %5571 = vmatprep.mubr.msk.bf16.mxu0 %vm8666_vm14, %v8588_v54 }
 0x1aa   : > { %v5378_v3 = vpop.f32.mrb[3].mxu1 }
 0x1af   : > { %v1580_v62 = vpop.f32.mrb[4].mxu1 }
 0x1b0   : > { %v5381_v6 = vpop.f32.mrb[5].mxu1 }
 0x1b1   : > { %v1583_v22 = vpop.f32.mrb[6].mxu1 }
 0x1b2   : > { %v5382_v26 = vpop.f32.mrb[7].mxu1 }
 0x1b3   : > { %v1382_v29 = vpop.f32.mrb[0].mxu0 }
 0x1b4   : > { %v6777_v37 = vadd.f32 %v1572_v19, %v1382_v29  ;;  %v5317_v55 = vpop.f32.mrb[1].mxu0 }
 0x1b5   : > { %v1385_v30 = vpop.f32.mrb[2].mxu0 }
 0x1b6   : > { %v6779_v40 = vadd.f32 %v1575_v12, %v1385_v30  ;;  %v5318_v41 = vpop.f32.mrb[3].mxu0 }
 0x1b7   : > { %v1588_v36 = vpop.f32.mrb[8].mxu1 }
 0x1b8   : > { %v5385_v58 = vpop.f32.mrb[9].mxu1 }
 0x1b9   : > { %v1591_v10 = vpop.f32.mrb[10].mxu1 }
 0x1ba   : > { %v5386_v24 = vpop.f32.mrb[11].mxu1 }
 0x1bb   : > { %v1390_v27 = vpop.f32.mrb[4].mxu0 }
 0x1bc   : > { %v6781_v32 = vadd.f32 %v1580_v62, %v1390_v27  ;;  %v5321_v42 = vpop.f32.mrb[5].mxu0 }
 0x1bd   : > { %v1393_v43 = vpop.f32.mrb[6].mxu0 }
 0x1be   : > { %v6783_v44 = vadd.f32 %v1583_v22, %v1393_v43  ;;  %v5322_v1 = vpop.f32.mrb[7].mxu0 }
 0x1bf   : > { %v1596_v28 = vpop.f32.mrb[12].mxu1 }
 0x1c0   : > { %v5389_v45 = vpop.f32.mrb[13].mxu1 }
 0x1c1   : > { %v1599_v46 = vpop.f32.mrb[14].mxu1 }
 0x1c2   : > { %v5390_v2 = vpop.f32.mrb[15].mxu1 }
 0x1c3   : > { %v1398_v47 = vpop.f32.mrb[8].mxu0 }
 0x1c4   : > { %v6785_v48 = vadd.f32 %v1588_v36, %v1398_v47  ;;  %v5325_v52 = vpop.f32.mrb[9].mxu0 }
 0x1c5   : > { %v1401_v53 = vpop.f32.mrb[10].mxu0 }
 0x1c6   : > { %v6787_v57 = vadd.f32 %v1591_v10, %v1401_v53  ;;  %v5326_v59 = vpop.f32.mrb[11].mxu0 }
 0x1c7   : > { %v1604_v60 = vpop.f32.mrb[16].mxu1 }
 0x1c8   : > { %v5393_v61 = vpop.f32.mrb[17].mxu1 }
 0x1c9   : > { %v1607_v63 = vpop.f32.mrb[18].mxu1 }
 0x1ca   : > { %v5394_v49 = vpop.f32.mrb[19].mxu1 }
 0x1cb   : > { %v1406_v4 = vpop.f32.mrb[12].mxu0 }
 0x1cc   : > { %v6789_v9 = vadd.f32 %v1596_v28, %v1406_v4  ;;  %v5329_v11 = vpop.f32.mrb[13].mxu0 }
 0x1cd   : > { %v1409_v50 = vpop.f32.mrb[14].mxu0 }
 0x1ce   : > { %v6791_v16 = vadd.f32 %v1599_v46, %v1409_v50  ;;  %v5330_v21 = vpop.f32.mrb[15].mxu0 }
 0x1cf   : > { %v1612_v15 = vpop.f32.mrb[20].mxu1 }
 0x1d0   : > { %v5397_v20 = vpop.f32.mrb[21].mxu1 }
 0x1d1   : > { %v1615_v31 = vpop.f32.mrb[22].mxu1 }
 0x1d2   : > { %v5398_v51 = vpop.f32.mrb[23].mxu1 }
 0x1d3   : > { %v1414_v35 = vpop.f32.mrb[16].mxu0 }
 0x1d4   : > { %v6793_v38 = vadd.f32 %v1604_v60, %v1414_v35  ;;  %v5333_v39 = vpop.f32.mrb[17].mxu0 }
 0x1d5   : > { %v1417_v56 = vpop.f32.mrb[18].mxu0 }
 0x1d6   : > { %v6795_v19 = vadd.f32 %v1607_v63, %v1417_v56  ;;  %v5334_v0 = vpop.f32.mrb[19].mxu0 }
 0x1d7   : > { %v1620_v7 = vpop.f32.mrb[24].mxu1 }
 0x1d8   : > { %v5401_v12 = vpop.f32.mrb[25].mxu1 }
 0x1d9   : > { %v1623_v3 = vpop.f32.mrb[26].mxu1 }
 0x1da   : > { %v5402_v62 = vpop.f32.mrb[27].mxu1 }
 0x1db   : > { %v1422_v6 = vpop.f32.mrb[20].mxu0 }
 0x1dc   : > { %v6797_v22 = vadd.f32 %v1612_v15, %v1422_v6  ;;  %v5337_v26 = vpop.f32.mrb[21].mxu0 }
 0x1dd   : > { %v1425_v29 = vpop.f32.mrb[22].mxu0 }
 0x1de   : > { %v6799_v30 = vadd.f32 %v1615_v31, %v1425_v29  ;;  %v5338_v36 = vpop.f32.mrb[23].mxu0 }
 0x1df   : > { %v1628_v55 = vpop.f32.mrb[28].mxu1 }
 0x1e0   : > { %v5405_v41 = vpop.f32.mrb[29].mxu1 }
 0x1e1   : > { %v1631_v58 = vpop.f32.mrb[30].mxu1 }
 0x1e2   : > { %v5406_v10 = vpop.f32.mrb[31].mxu1 }
 0x1e3   : > { %v1430_v24 = vpop.f32.mrb[24].mxu0 }
 0x1e4   : > { %v6801_v27 = vadd.f32 %v1620_v7, %v1430_v24  ;;  %v5341_v42 = vpop.f32.mrb[25].mxu0 }
 0x1e5   : > { %v1433_v43 = vpop.f32.mrb[26].mxu0 }
 0x1e6   : > { %v6803_v1 = vadd.f32 %v1623_v3, %v1433_v43  ;;  %v5342_v45 = vpop.f32.mrb[27].mxu0 }
 0x1e7   : > { %v1636_v28 = vpop.f32.mrb[32].mxu1 }
 0x1e8   : > { %v5409_v46 = vpop.f32.mrb[33].mxu1 }
 0x1e9   : > { %v1639_v2 = vpop.f32.mrb[34].mxu1 }
 0x1ea   : > { %v5410_v47 = vpop.f32.mrb[35].mxu1 }
 0x1eb   : > { %v1438_v52 = vpop.f32.mrb[28].mxu0 }
 0x1ec   : > { %v6805_v53 = vadd.f32 %v1628_v55, %v1438_v52  ;;  %v5345_v60 = vpop.f32.mrb[29].mxu0 }
 0x1ed   : > { %v1441_v59 = vpop.f32.mrb[30].mxu0 }
 0x1ee   : > { %v6807_v63 = vadd.f32 %v1631_v58, %v1441_v59  ;;  %v5346_v49 = vpop.f32.mrb[31].mxu0 }
 0x1ef   : > { %v1644_v61 = vpop.f32.mrb[36].mxu1 }
 0x1f0   : > { %v5413_v4 = vpop.f32.mrb[37].mxu1 }
 0x1f1   : > { %v1647_v11 = vpop.f32.mrb[38].mxu1 }
 0x1f2   : > { %v5414_v50 = vpop.f32.mrb[39].mxu1 }
 0x1f3   : > { %v1446_v15 = vpop.f32.mrb[32].mxu0 }
 0x1f4   : > { %v6809_v21 = vadd.f32 %v1636_v28, %v1446_v15  ;;  %v5349_v20 = vpop.f32.mrb[33].mxu0 }
 0x1f5   : > { %v1449_v31 = vpop.f32.mrb[34].mxu0 }
 0x1f6   : > { %v6811_v35 = vadd.f32 %v1639_v2, %v1449_v31  ;;  %v5350_v39 = vpop.f32.mrb[35].mxu0 }
 0x1f7   : > { %v1652_v51 = vpop.f32.mrb[40].mxu1 }
 0x1f8   : > { %v5417_v56 = vpop.f32.mrb[41].mxu1 }
 0x1f9   : > { %v1655_v7 = vpop.f32.mrb[42].mxu1  ;;  %v5907_v56 = vld [vmem:[%s8577_s5] sm:$0xff] }
 0x1fa   : > { %v5418_v0 = vpop.f32.mrb[43].mxu1 }
 0x1fb   : > { %v1454_v12 = vpop.f32.mrb[36].mxu0 }
 0x1fc   : > { %v6813_v3 = vadd.f32 %v1644_v61, %v1454_v12  ;;  %v5353_v62 = vpop.f32.mrb[37].mxu0 }
 0x1fd   : > { %v1457_v6 = vpop.f32.mrb[38].mxu0 }
 0x1fe   : > { %v6815_v29 = vadd.f32 %v1647_v11, %v1457_v6  ;;  %v5354_v55 = vpop.f32.mrb[39].mxu0 }
 0x1ff   : > { %v1660_v26 = vpop.f32.mrb[44].mxu1 }
 0x200   : > { %v5421_v36 = vpop.f32.mrb[45].mxu1 }
 0x201   : > { %v1663_v41 = vpop.f32.mrb[46].mxu1 }
 0x202   : > { %v5422_v58 = vpop.f32.mrb[47].mxu1 }
 0x203   : > { %v1462_v10 = vpop.f32.mrb[40].mxu0 }
 0x204   : > { %v6817_v24 = vadd.f32 %v1652_v51, %v1462_v10  ;;  %v5357_v42 = vpop.f32.mrb[41].mxu0  ;;  %v1938_v51 = vsub.s32 0, %v6080_v5 }
 0x205   : > { %v1465_v43 = vpop.f32.mrb[42].mxu0 }
 0x206   : > { %v6819_v45 = vadd.f32 %v1655_v7, %v1465_v43  ;;  %v5358_v46 = vpop.f32.mrb[43].mxu0  ;;  %v6831_v7 = vrot.slane %v5907_v56, %v1938_v51 }
 0x207   : > { %v1668_v28 = vpop.f32.mrb[48].mxu1 }
 0x208   : > { %v5425_v2 = vpop.f32.mrb[49].mxu1 }
 0x209   : > { %v1671_v47 = vpop.f32.mrb[50].mxu1 }
 0x20a   : > { %v5426_v52 = vpop.f32.mrb[51].mxu1 }
 0x20b   : > { %v1470_v60 = vpop.f32.mrb[44].mxu0 }
 0x20c   : > { %v6821_v59 = vadd.f32 %v1660_v26, %v1470_v60  ;;  %v5361_v61 = vpop.f32.mrb[45].mxu0 }
 0x20d   : > { %v1473_v49 = vpop.f32.mrb[46].mxu0 }
 0x20e   : > { %v6823_v4 = vadd.f32 %v1663_v41, %v1473_v49  ;;  %v5362_v11 = vpop.f32.mrb[47].mxu0 }
 0x213   : > { %v1478_v50 = vpop.f32.mrb[48].mxu0 }
 0x214   : > { %v6825_v15 = vadd.f32 %v1668_v28, %v1478_v50  ;;  %v5365_v20 = vpop.f32.mrb[49].mxu0 }
 0x215   : > { %v1481_v31 = vpop.f32.mrb[50].mxu0 }
 0x216   : > { %v5366_v39 = vpop.f32.mrb[51].mxu0 }
 0x21b   : > { %v1809_v0 = vpop.f32.mrb[52].mxu0 }
 0x21c   : > { %v1911_v12 = vadd.f32 %v1809_v0, %v6777_v37  ;;  %v5437_v62 = vpop.f32.mrb[53].mxu0 }
 0x21d   : > { %v1812_v6 = vpop.f32.mrb[54].mxu0 }
 0x21e   : > { %v1940_v26 = vadd.f32 %v6831_v7, %v1911_v12  ;;  %v1912_v55 = vadd.f32 %v1812_v6, %v6779_v40  ;;  %v5438_v36 = vpop.f32.mrb[55].mxu0 }
 0x220   : > { %v6836_v41 = vmax.f32 %v1940_v26, 0.0  ;;  %v1941_v5 = vadd.f32 %v6831_v7, %v1912_v55 }
 0x222   : > { %v6839_v58 = vmax.f32 %v1941_v5, 0.0  ;;  %1990 = vadd.xlane.f32.xlu0 %v6836_v41  ;;  %v2068_v47 = vmul.f32 %v6836_v41, %v6836_v41 }
 0x223   : > { %v1817_v10 = vpop.f32.mrb[56].mxu0 }
 0x224   : > { %v1913_v42 = vadd.f32 %v1817_v10, %v6781_v32  ;;  %1992 = vadd.xlane.f32.xlu1 %v6839_v58  ;;  %v5441_v37 = vpop.f32.mrb[57].mxu0  ;;  %v2069_v43 = vmul.f32 %v6839_v58, %v6839_v58 }
 0x225   : > { %v1820_v28 = vpop.f32.mrb[58].mxu0 }
 0x226   : > { %v1942_v40 = vadd.f32 %v6831_v7, %v1913_v42  ;;  %v1914_v46 = vadd.f32 %v1820_v28, %v6783_v44  ;;  %2095 = vadd.xlane.f32.xlu0 %v2069_v43  ;;  %v5442_v2 = vpop.f32.mrb[59].mxu0 }
 0x228   : > { %v6850_v52 = vmax.f32 %v1942_v40, 0.0  ;;  %v1943_v32 = vadd.f32 %v6831_v7, %v1914_v46  ;;  %2093 = vadd.xlane.f32.xlu1 %v2068_v47 }
 0x22a   : > { %1994 = vadd.xlane.f32.xlu0 %v6850_v52  ;;  %v2070_v60 = vmul.f32 %v6850_v52, %v6850_v52  ;;  %v6856_v49 = vmax.f32 %v1943_v32, 0.0 }
 0x22b   : > { %v1825_v61 = vpop.f32.mrb[60].mxu0 }
 0x22c   : > { %v1915_v44 = vadd.f32 %v1825_v61, %v6785_v48  ;;  %2097 = vadd.xlane.f32.xlu1 %v2070_v60  ;;  %v5445_v11 = vpop.f32.mrb[61].mxu0  ;;  %v2071_v0 = vmul.f32 %v6856_v49, %v6856_v49 }
 0x22d   : > { %v1828_v50 = vpop.f32.mrb[62].mxu0 }
 0x22e   : > { %v1944_v20 = vadd.f32 %v6831_v7, %v1915_v44  ;;  %v1916_v31 = vadd.f32 %v1828_v50, %v6787_v57  ;;  %1996 = vadd.xlane.f32.xlu0 %v6856_v49  ;;  %v5446_v51 = vpop.f32.mrb[63].mxu0 }
 0x230   : > { %v6862_v39 = vmax.f32 %v1944_v20, 0.0  ;;  %v1945_v56 = vadd.f32 %v6831_v7, %v1916_v31 }
 0x232   : > { %2099 = vadd.xlane.f32.xlu0 %v2071_v0  ;;  %1998 = vadd.xlane.f32.xlu1 %v6862_v39  ;;  %v6868_v12 = vmax.f32 %v1945_v56, 0.0  ;;  %v2072_v57 = vmul.f32 %v6862_v39, %v6862_v39 }
 0x233   : > { %v1833_v48 = vpop.f32.mrb[64].mxu0 }
 0x234   : > { %v1917_v62 = vadd.f32 %v1833_v48, %v6789_v9  ;;  %v5449_v6 = vpop.f32.mrb[65].mxu0  ;;  %v2073_v9 = vmul.f32 %v6868_v12, %v6868_v12 }
 0x235   : > { %v1836_v26 = vpop.f32.mrb[66].mxu0 }
 0x236   : > { %v1946_v55 = vadd.f32 %v6831_v7, %v1917_v62  ;;  %v1918_v36 = vadd.f32 %v1836_v26, %v6791_v16  ;;  %2101 = vadd.xlane.f32.xlu1 %v2072_v57  ;;  %2000 = vadd.xlane.f32.xlu0 %v6868_v12  ;;  %v5450_v5 = vpop.f32.mrb[67].mxu0 }
 0x238   : > { %v6876_v10 = vmax.f32 %v1946_v55, 0.0  ;;  %v1947_v42 = vadd.f32 %v6831_v7, %v1918_v36 }
 0x23a   : > { %2103 = vadd.xlane.f32.xlu0 %v2073_v9  ;;  %2002 = vadd.xlane.f32.xlu1 %v6876_v10  ;;  %v6882_v43 = vmax.f32 %v1947_v42, 0.0  ;;  %v2074_v40 = vmul.f32 %v6876_v10, %v6876_v10 }
 0x23b   : > { %v1841_v37 = vpop.f32.mrb[68].mxu0 }
 0x23c   : > { %v1919_v28 = vadd.f32 %v1841_v37, %v6793_v38  ;;  %v5453_v16 = vpop.f32.mrb[69].mxu0  ;;  %v2075_v38 = vmul.f32 %v6882_v43, %v6882_v43 }
 0x23d   : > { %v1844_v46 = vpop.f32.mrb[70].mxu0 }
 0x23e   : > { %v1948_v2 = vadd.f32 %v6831_v7, %v1919_v28  ;;  %v1920_v47 = vadd.f32 %v1844_v46, %v6795_v19  ;;  %2105 = vadd.xlane.f32.xlu1 %v2074_v40  ;;  %2004 = vadd.xlane.f32.xlu0 %v6882_v43  ;;  %v5454_v32 = vpop.f32.mrb[71].mxu0 }
 0x240   : > { %v6890_v60 = vmax.f32 %v1948_v2, 0.0  ;;  %v1949_v61 = vadd.f32 %v6831_v7, %v1920_v47 }
 0x242   : > { %2107 = vadd.xlane.f32.xlu0 %v2075_v38  ;;  %2006 = vadd.xlane.f32.xlu1 %v6890_v60  ;;  %v6896_v11 = vmax.f32 %v1949_v61, 0.0  ;;  %v2076_v20 = vmul.f32 %v6890_v60, %v6890_v60  ;;  %v5769_v38 = vld [vmem:[%s8576_s4] sm:$0xff]  }
 0x243   : > { %v1849_v44 = vpop.f32.mrb[72].mxu0  ;;  %5556 = vmatpush3.bf16.msra.mxu0 %v5769_v38  ;;  %v5770_v38 = vld [vmem:[%s8576_s4 + $0x48] sm:$0xff]  }
 0x244   : > { %v1921_v50 = vadd.f32 %v1849_v44, %v6797_v22  ;;  %v5457_v19 = vpop.f32.mrb[73].mxu0  ;;  %v2077_v22 = vmul.f32 %v6896_v11, %v6896_v11  ;;  %5557 = vmatprep.subr.bf16.mxu0 %v8588_v54 }
 0x245   : > { %v1852_v31 = vpop.f32.mrb[74].mxu0 }
 0x246   : > { %v1950_v51 = vadd.f32 %v6831_v7, %v1921_v50  ;;  %v1922_v56 = vadd.f32 %v1852_v31, %v6799_v30  ;;  %2109 = vadd.xlane.f32.xlu1 %v2076_v20  ;;  %2008 = vadd.xlane.f32.xlu0 %v6896_v11  ;;  %v5458_v0 = vpop.f32.mrb[75].mxu0  ;;  %v5771_v31 = vld [vmem:[%s8576_s4 + $0x8] sm:$0xff]  }
 0x247   : > { %5558 = vmatpush3.bf16.msra.mxu0 %v5771_v31 }
 0x248   : > { %v6904_v48 = vmax.f32 %v1950_v51, 0.0  ;;  %v1951_v62 = vadd.f32 %v6831_v7, %v1922_v56  ;;  %5559 = vmatprep.subr.bf16.mxu0 %v8588_v54 }
 0x24a   : > { %2111 = vadd.xlane.f32.xlu0 %v2077_v22  ;;  %2010 = vadd.xlane.f32.xlu1 %v6904_v48  ;;  %v6910_v57 = vmax.f32 %v1951_v62, 0.0  ;;  %v2078_v55 = vmul.f32 %v6904_v48, %v6904_v48 }
 0x24b   : > { %v1857_v6 = vpop.f32.mrb[76].mxu0 }
 0x24c   : > { %v1923_v26 = vadd.f32 %v1857_v6, %v6801_v27  ;;  %v5461_v30 = vpop.f32.mrb[77].mxu0  ;;  %v2079_v27 = vmul.f32 %v6910_v57, %v6910_v57 }
 0x24d   : > { %v1860_v36 = vpop.f32.mrb[78].mxu0 }
 0x24e   : > { %v1952_v5 = vadd.f32 %v6831_v7, %v1923_v26  ;;  %v1924_v42 = vadd.f32 %v1860_v36, %v6803_v1  ;;  %2113 = vadd.xlane.f32.xlu1 %v2078_v55  ;;  %2012 = vadd.xlane.f32.xlu0 %v6910_v57  ;;  %v5462_v9 = vpop.f32.mrb[79].mxu0 }
 0x250   : > { %v6918_v37 = vmax.f32 %v1952_v5, 0.0  ;;  %v1953_v28 = vadd.f32 %v6831_v7, %v1924_v42 }
 0x252   : > { %2115 = vadd.xlane.f32.xlu0 %v2079_v27  ;;  %2014 = vadd.xlane.f32.xlu1 %v6918_v37  ;;  %v6924_v40 = vmax.f32 %v1953_v28, 0.0  ;;  %v2080_v2 = vmul.f32 %v6918_v37, %v6918_v37 }
 0x253   : > { %v1865_v16 = vpop.f32.mrb[80].mxu0 }
 0x254   : > { %8673 = vst [vmem:[#allocation12_spill] sm:$0xff] %v6924_v40  ;;  %v1925_v46 = vadd.f32 %v1865_v16, %v6805_v53  ;;  %v5465_v1 = vpop.f32.mrb[81].mxu0  ;;  %v2081_v53 = vmul.f32 %v6924_v40, %v6924_v40 }
 0x255   : > { %v1868_v47 = vpop.f32.mrb[82].mxu0 }
 0x256   : > { %v1926_v32 = vadd.f32 %v1868_v47, %v6807_v63  ;;  %2117 = vadd.xlane.f32.xlu1 %v2080_v2  ;;  %2016 = vadd.xlane.f32.xlu0 %v6924_v40  ;;  %v5466_v61 = vpop.f32.mrb[83].mxu0  ;;  %v1954_v44 = vadd.f32 %v6831_v7, %v1925_v46  ;;  %v5768_v63 = vld [vmem:[%s8576_s4 + $0x40] sm:$0xff]  }
 0x257   : > { %5488 = vmatpush3.bf16.msra.mxu1 %v5768_v63 }
 0x258   : > { %v1955_v50 = vadd.f32 %v6831_v7, %v1926_v32  ;;  %v6947_v51 = vmax.f32 %v1954_v44, 0.0  ;;  %5489 = vmatprep.subr.bf16.mxu1 %v8588_v54  ;;  %v5776_v44 = vld [vmem:[%s8576_s4 + $0x28] sm:$0xff]  }
 0x25a   : > { %v6938_v19 = vmax.f32 %v1955_v50, 0.0  ;;  %2119 = vadd.xlane.f32.xlu0 %v2081_v53  ;;  %8675 = vst [vmem:[#allocation14_spill] sm:$0xff] %v6947_v51  ;;  %v2082_v55 = vmul.f32 %v6947_v51, %v6947_v51 }
 0x25b   : > { %v1873_v20 = vpop.f32.mrb[84].mxu0  ;;  %5490 = vmatpush3.bf16.msra.mxu1 %v5770_v38 }
 0x25c   : > { %8674 = vst [vmem:[#allocation13_spill] sm:$0xff] %v6938_v19  ;;  %v1927_v56 = vadd.f32 %v1873_v20, %v6809_v21  ;;  %2020 = vadd.xlane.f32.xlu1 %v6938_v19  ;;  %v5469_v0 = vpop.f32.mrb[85].mxu0  ;;  %v5772_v21 = vld [vmem:[%s8576_s4 + $0x10] sm:$0xff]   ;;  %v2083_v28 = vmul.f32 %v6938_v19, %v6938_v19  ;;  %5491 = vmatprep.subr.bf16.mxu1 %v8588_v54 }
 0x25d   : > { %v1876_v62 = vpop.f32.mrb[86].mxu0  ;;  %5560 = vmatpush3.bf16.msra.mxu0 %v5772_v21 }
 0x25e   : > { %v1956_v22 = vadd.f32 %v6831_v7, %v1927_v56  ;;  %v1928_v6 = vadd.f32 %v1876_v62, %v6811_v35  ;;  %2018 = vadd.xlane.f32.xlu0 %v6947_v51  ;;  %v5470_v26 = vpop.f32.mrb[87].mxu0  ;;  %5561 = vmatprep.subr.bf16.mxu0 %v8588_v54  ;;  %v5773_v35 = vld [vmem:[%s8576_s4 + $0x18] sm:$0xff]   ;;  %v5774_v56 = vld [vmem:[%s8576_s4 + $0x50] sm:$0xff]  }
 0x25f   : > { %5492 = vmatpush3.bf16.msra.mxu1 %v5774_v56  ;;  %v5779_v26 = vld [vmem:[%s8576_s4 + $0x38] sm:$0xff]  }
 0x260   : > { %v6959_v30 = vmax.f32 %v1956_v22, 0.0  ;;  %v1957_v5 = vadd.f32 %v6831_v7, %v1928_v6  ;;  %5493 = vmatprep.subr.bf16.mxu1 %v8588_v54 }
 0x261   : > { %5562 = vmatpush3.bf16.msra.mxu0 %v5773_v35 }
 0x262   : > { %8676 = vst [vmem:[#allocation15_spill] sm:$0xff] %v6959_v30  ;;  %2121 = vadd.xlane.f32.xlu0 %v2082_v55  ;;  %2022 = vadd.xlane.f32.xlu1 %v6959_v30  ;;  %v2084_v27 = vmul.f32 %v6959_v30, %v6959_v30  ;;  %v6980_v47 = vmax.f32 %v1957_v5, 0.0 }
 0x263   : > { %v1881_v36 = vpop.f32.mrb[88].mxu0  ;;  %5563 = vmatprep.subr.bf16.mxu0 %v8588_v54 }
 0x264   : > { %v1929_v42 = vadd.f32 %v1881_v36, %v6813_v3  ;;  %v5473_v9 = vpop.f32.mrb[89].mxu0  ;;  %v5775_v3 = vld [vmem:[%s8576_s4 + $0x20] sm:$0xff]   ;;  %8677 = vst [vmem:[#allocation16_spill] sm:$0xff] %v6980_v47  ;;  %v2085_v20 = vmul.f32 %v6980_v47, %v6980_v47 }
 0x265   : > { %v1884_v16 = vpop.f32.mrb[90].mxu0  ;;  %5564 = vmatpush3.bf16.msra.mxu0 %v5775_v3  ;;  %v7044_v3 = vld [vmem:[%s6108_s20 + $0x88] sm:$0xff] }
 0x266   : > { %v1958_v46 = vadd.f32 %v6831_v7, %v1929_v42  ;;  %v1930_v1 = vadd.f32 %v1884_v16, %v6815_v29  ;;  %2123 = vadd.xlane.f32.xlu0 %v2083_v28  ;;  %2125 = vadd.xlane.f32.xlu1 %v2084_v27  ;;  %v5474_v2 = vpop.f32.mrb[91].mxu0  ;;  %v5780_v42 = vld [vmem:[%s8576_s4 + $0x60] sm:$0xff]   ;;  %v5782_v27 = vld [vmem:[%s8576_s4 + $0x68] sm:$0xff]  }
 0x267   : > { %5565 = vmatprep.subr.bf16.mxu0 %v8588_v54 }
 0x268   : > { %v6982_v32 = vmax.f32 %v1958_v46, 0.0  ;;  %v1959_v61 = vadd.f32 %v6831_v7, %v1930_v1 }
 0x269   : > { %5566 = vmatpush3.bf16.msra.mxu0 %v5776_v44 }
 0x26a   : > { %8678 = vst [vmem:[#allocation17_spill] sm:$0xff] %v6982_v32  ;;  %2024 = vadd.xlane.f32.xlu0 %v6980_v47  ;;  %2026 = vadd.xlane.f32.xlu1 %v6982_v32  ;;  %v6994_v50 = vmax.f32 %v1959_v61, 0.0  ;;  %v2086_v22 = vmul.f32 %v6982_v32, %v6982_v32  ;;  %v7047_v61 = vpop.permute.xlu1 %2410 }
 0x26b   : > { %v1889_v29 = vpop.f32.mrb[92].mxu0  ;;  %5567 = vmatprep.subr.bf16.mxu0 %v8588_v54 }
 0x26c   : > { %8679 = vst [vmem:[#allocation18_spill] sm:$0xff] %v6994_v50  ;;  %v6997_v53 = vadd.f32 %v1889_v29, %v6817_v24  ;;  %v5477_v63 = vpop.f32.mrb[93].mxu0  ;;  %v5777_v24 = vld [vmem:[%s8576_s4 + $0x30] sm:$0xff]   ;;  %v2087_v35 = vmul.f32 %v6994_v50, %v6994_v50 }
 0x26d   : > { %v1892_v31 = vpop.f32.mrb[94].mxu0  ;;  %5568 = vmatpush3.bf16.msra.mxu0 %v5777_v24  ;;  %v5783_v29 = vld [vmem:[%s8576_s4 + $0x70] sm:$0xff]   ;;  %v7056_v63 = vpop.permute.xlu0 %2415 }
 0x26e   : > { %v1932_v0 = vadd.f32 %v1892_v31, %v6819_v45  ;;  %2127 = vadd.xlane.f32.xlu0 %v2085_v20  ;;  %2028 = vadd.xlane.f32.xlu1 %v6994_v50  ;;  %v5478_v62 = vpop.f32.mrb[95].mxu0  ;;  %v5778_v45 = vld [vmem:[%s8576_s4 + $0x58] sm:$0xff]   ;;  %v7062_v31 = vpop.permute.xlu1 %2420  ;;  %v8688_v50 = vmov 0 }
 0x26f   : > { %5569 = vmatprep.subr.bf16.mxu0 %v8588_v54  ;;  %5494 = vmatpush3.bf16.msra.mxu1 %v5778_v45  ;;  %v5785_v20 = vld [vmem:[%s8576_s4 + $0x78] sm:$0xff]  }
 0x270   : > { %v1961_v21 = vadd.f32 %v6831_v7, %v1932_v0  ;;  %5495 = vmatprep.subr.bf16.mxu1 %v8588_v54 }
 0x271   : > { %5570 = vmatpush3.bf16.msra.mxu0 %v5779_v26  ;;  %v7067_v0 = vpop.permute.xlu0 %2425 }
 0x272   : > { %2129 = vadd.xlane.f32.xlu0 %v2086_v22  ;;  %v7069_v62 = vpop.permute.xlu1 %2430 }
 0x273   : > { %v1897_v6 = vpop.f32.mrb[96].mxu0  ;;  %5496 = vmatpush3.bf16.msra.mxu1 %v5780_v42 }
 0x274   : > { %v7023_v55 = vadd.f32 %v1897_v6, %v6821_v59  ;;  %v5481_v36 = vpop.f32.mrb[97].mxu0  ;;  %v7032_v59 = vmax.f32 %v1961_v21, 0.0  ;;  %5497 = vmatprep.subr.bf16.mxu1 %v8588_v54  ;;  %v7082_v21 = vld [vmem:[%s6108_s20 + $0x90] sm:$0xff] }
 0x275   : > { %v1900_v5 = vpop.f32.mrb[98].mxu0  ;;  %v7071_v24 = vpop.permute.xlu0 %2435 }
 0x276   : > { %v1934_v9 = vadd.f32 %v1900_v5, %v6823_v4  ;;  %2131 = vadd.xlane.f32.xlu0 %v2087_v35  ;;  %v5482_v28 = vpop.f32.mrb[99].mxu0  ;;  %8680 = vst [vmem:[#allocation19_spill] sm:$0xff] %v7032_v59  ;;  %v2089_v2 = vmul.f32 %v7032_v59, %v7032_v59  ;;  %v7073_v22 = vpop.permute.xlu1 %2543  ;;  %v1960_v35 = vadd.f32 %v6831_v7, %v6997_v53  ;;  %v7090_v5 = vld [vmem:[%s6108_s20 + $0x98] sm:$0xff] }
 0x277   : > { %5498 = vmatpush3.bf16.msra.mxu1 %v5782_v27  ;;  %v7100_v27 = vld [vmem:[%s6108_s20 + $0xa0] sm:$0xff] }
 0x278   : > { %v1963_v46 = vadd.f32 %v6831_v7, %v1934_v9  ;;  %5499 = vmatprep.subr.bf16.mxu1 %v8588_v54  ;;  %v7097_v28 = vmax.f32 %v1960_v35, 0.0 }
 0x279   : > { %v7075_v45 = vpop.permute.xlu0 %2555 }
 0x27a   : > { %2032 = vadd.xlane.f32.xlu0 %v7032_v59  ;;  %v7077_v6 = vpop.permute.xlu1 %2547  ;;  %8682 = vst [vmem:[#allocation21_spill] sm:$0xff] %v7097_v28 }
 0x27b   : > { %v1905_v16 = vpop.f32.mrb[100].mxu0  ;;  %5500 = vmatpush3.bf16.msra.mxu1 %v5783_v29 }
 0x27c   : > { %v1935_v1 = vadd.f32 %v1905_v16, %v6825_v15  ;;  %v5485_v4 = vpop.f32.mrb[101].mxu0  ;;  %v7053_v15 = vmax.f32 %v1963_v46, 0.0  ;;  %5501 = vmatprep.subr.bf16.mxu1 %v8588_v54  ;;  %v886_v16 = vld [vmem:[#allocation3 + $0x48] sm:$0x4] }
 0x27d   : > { %v1908_v38 = vpop.f32.mrb[102].mxu0  ;;  %v7079_v26 = vpop.permute.xlu0 %2559  ;;  %v887_v46 = vsel %vm6250_vm13, 0, %v886_v16  ;;  %v1962_v4 = vadd.f32 %v6831_v7, %v7023_v55  ;;  %vm1066_vm13 = vcmask 1043459  }
 0x27e   : > { %2135 = vadd.xlane.f32.xlu0 %v2089_v2  ;;  %v5486_v44 = vpop.f32.mrb[103].mxu0  ;;  %8681 = vst [vmem:[#allocation20_spill] sm:$0xff] %v7053_v15  ;;  %v2091_v56 = vmul.f32 %v7053_v15, %v7053_v15  ;;  %v7084_v36 = vpop.permute.xlu1 %2551  ;;  %888 = vst [vmem:[#allocation3 + $0x48] sm:$0x4] %v887_v46  ;;  %v2088_v2 = vmul.f32 %v7097_v28, %v7097_v28  ;;  %v7113_v38 = vld [vmem:[%s6108_s20 + $0xa8] sm:$0xff]  ;;  %v7135_v46 = vld [vmem:[%s6108_s20 + $0xb8] sm:$0xff] }
 0x27f   : > { %2724 = vperm.xlu1 %5740, %v7044_v3   ;;  %5502 = vmatpush3.bf16.msra.mxu1 %v5785_v20  ;;  %v7118_v25 = vmax.f32 %v1962_v4, 0.0  ;;  %v1964_v44 = vadd.f32 %v6831_v7, %v1935_v1  ;;  %v7122_v20 = vld [vmem:[%s6108_s20 + $0xb0] sm:$0xff]  ;;  %v5134_v1 = vld [vmem:[%s6108_s20 + $0x38] sm:$0xff]  ;;  %vm1067_vm12 = vmand %vm1066_vm13, %vm8687_vm7  ;;  %vm8696_vm7 = vsmask.f32 7942 }
 0x280   : > { %5623 = vmatprep.subr.bf16.mxu1 %v8588_v54  ;;  %vm7155_vm4 = vmand %vm1066_vm13, %vm1049_vm2  ;;  %vm2565_vm2 = vcmask 1041408   ;;  %vm2681_vm13 = vcmask 1043457  }
 0x281   : > { %v7092_v42 = vpop.permute.xlu0 %2708  ;;  %8684 = vst [vmem:[#allocation23_spill] sm:$0xff] %v7118_v25  ;;  %v7130_v35 = vmax.f32 %v1964_v44, 0.0  ;;  %v2090_v16 = vmul.f32 %v7118_v25, %v7118_v25  ;;  %v8689_v50 = vsel %vm7155_vm4, 4294967295, %v8688_v50 }
 0x282   : > { %2036 = vadd.xlane.f32.xlu0 %v7053_v15  ;;  %v7095_v9 = vpop.permute.xlu1 %2563  ;;  %8690 = vst [vmem:[#allocation26_spill] sm:$0xff] %v8689_v50 }
 0x283   : > { %8686 = vst [vmem:[#allocation25_spill] sm:$0xff] %v7130_v35  ;;  %v2039_v34 = vsel %vm2038_vm9, %v7130_v35, 0.0 }
 0x285   : > { %v7106_v53 = vpop.permute.xlu0 %2716 }
 0x286   : > { %2139 = vadd.xlane.f32.xlu0 %v2091_v56  ;;  %v7115_v29 = vpop.permute.xlu1 %2704 }
 0x287   : > { %8683 = vst [vmem:[#allocation22_spill] sm:$0xff] %v7115_v29 }
 0x289   : > { %v7124_v56 = vpop.permute.xlu0 %2720 }
 0x28a   : > { %8685 = vst [vmem:[#allocation24_spill] sm:$0xff] %v7124_v56  ;;  %v7128_v55 = vpop.permute.xlu1 %2712 }
 0x29c   : > { %2865 = vperm.xlu0 %5739, %v7082_v21  }
 0x2a0   : > { %2869 = vperm.xlu0 %5739, %v7090_v5  }
 0x2a3   : > { %2030 = vadd.xlane.f32.xlu1 %v7097_v28 }
 0x2a4   : > { %2873 = vperm.xlu0 %5739, %v7100_v27  }
 0x2a7   : > { %2133 = vadd.xlane.f32.xlu1 %v2088_v2  ;;  %v2092_v2 = vmul.f32 %v7130_v35, %v7130_v35 }
 0x2a8   : > { %2877 = vperm.xlu0 %5739, %v7113_v38  }
 0x2a9   : > { %v2141_v15 = vsel %vm2038_vm9, %v2092_v2, 0.0 }
 0x2ab   : > { %2034 = vadd.xlane.f32.xlu1 %v7118_v25  ;;  %v1072_v25 = vld [vmem:[#allocation3 + $0x60] sm:$0x8] }
 0x2ac   : > { %2881 = vperm.xlu0 %5739, %v7122_v20  }
 0x2af   : > { %v1991_v4 = vpop.xlane.xlu0 %1990  ;;  %2137 = vadd.xlane.f32.xlu1 %v2090_v16 }
 0x2b0   : > { %2885 = vperm.xlu0 %5739, %v7135_v46   ;;  %v7141_v54 = vmul.f32 0.0078125, %v1991_v4  ;;  %v5135_v4 = vld [vmem:[%s6108_s20 + $0x40] sm:$0xff] }
 0x2b1   : > { %v1993_v7 = vpop.xlane.xlu1 %1992 }
 0x2b2   : > { %v7143_v44 = vmul.f32 0.0078125, %v1993_v7  ;;  %v2169_v7 = vmul.f32 %v7141_v54, %v7141_v54 }
 0x2b3   : > { %v2096_v33 = vpop.xlane.xlu0 %2095  ;;  %2040 = vadd.xlane.f32.xlu1 %v2039_v34  ;;  %v1069_v34 = vsel %vm1067_vm12, 0, %v1068_v18  ;;  %vm7332_vm12 = vmand %vm2681_vm13, %vm8696_vm7  ;;  %vm2852_vm13 = vcmask 1042432  }
 0x2b4   : > { %v2170_v16 = vmul.f32 %v7143_v44, %v7143_v44  ;;  %v2145_v23 = vmul.f32 0.0078125, %v2096_v33  ;;  %4441 = vperm.xlu0 %5739, %v5134_v1   ;;  %1070 = vst [vmem:[#allocation3 + $0x48] sm:$0x8] %v1069_v34  ;;  %v1073_v1 = vsel %vm7155_vm4, 0, %v1072_v25  ;;  %v5136_v25 = vld [vmem:[%s6108_s20 + $0x48] sm:$0xff]  ;;  %vm7669_vm7 = vmand %vm2852_vm13, %vm711_vm0 }
 0x2b5   : > { %v2094_v28 = vpop.xlane.xlu1 %2093  ;;  %1074 = vst [vmem:[#allocation3 + $0x60] sm:$0x8] %v1073_v1  ;;  %vm8733_vm0 = vsmask.f32 3328 }
 0x2b6   : > { %v2195_v35 = vsub.f32 %v2145_v23, %v2170_v16  ;;  %v2144_v59 = vmul.f32 0.0078125, %v2094_v28 }
 0x2b7   : > { %v1995_v33 = vpop.xlane.xlu0 %1994  ;;  %2142 = vadd.xlane.f32.xlu1 %v2141_v15 }
 0x2b8   : > { %v2220_v2 = vmax.f32 %v2195_v35, 0.0  ;;  %v2194_v32 = vsub.f32 %v2144_v59, %v2169_v7  ;;  %v7161_v47 = vmul.f32 0.0078125, %v1995_v33  ;;  %4445 = vperm.xlu0 %5739, %v5135_v4  }
 0x2b9   : > { %v2098_v23 = vpop.xlane.xlu1 %2097 }
 0x2ba   : > { %v2270_v18 = vadd.f32 1e-05, %v2220_v2  ;;  %v2219_v28 = vmax.f32 %v2194_v32, 0.0  ;;  %v2171_v16 = vmul.f32 %v7161_v47, %v7161_v47  ;;  %v2146_v30 = vmul.f32 0.0078125, %v2098_v23 }
 0x2bb   : > { %v1997_v51 = vpop.xlane.xlu0 %1996  ;;  %v2567_v2 = vrot.slane %v7077_v6, 6 }
 0x2bc   : > { %5807 = vrsqrt.f32 %v2270_v18  ;;  %v2269_v15 = vadd.f32 1e-05, %v2219_v28  ;;  %v7165_v34 = vmul.f32 0.0078125, %v1997_v51  ;;  %4599 = vperm.xlu0 %5739, %v7090_v5   ;;  %v2196_v59 = vsub.f32 %v2146_v30, %v2171_v16  ;;  %v5142_v51 = vld [vmem:[%s6108_s20 + $0x78] sm:$0xff] }
 0x2bd   : > { %v2573_v5 = vrot.slane %v7079_v26, 6  ;;  %v2569_v30 = vrot.slane %v7084_v36, 6  ;;  %v8604_v28 = vrot.slane %v7073_v22, 6  ;;  %v2571_v16 = vrot.slane %v7075_v45, 6  ;;  %v5137_v36 = vld [vmem:[%s6108_s20 + $0x50] sm:$0xff] }
 0x2be   : > { %5809 = vrsqrt.f32 %v2269_v15  ;;  %v2221_v35 = vmax.f32 %v2196_v59, 0.0  ;;  %v2172_v32 = vmul.f32 %v7165_v34, %v7165_v34  ;;  %v2245_v45 = vsub.f32 %v6839_v58, %v7143_v44 }
 0x2bf   : > { %v2100_v4 = vpop.xlane.xlu0 %2099  ;;  %v1999_v7 = vpop.xlane.xlu1 %1998  ;;  %v7186_v26 = vsel %vm2565_vm2, %v8604_v28, %v2567_v2 }
 0x2c0   : > { %v2147_v33 = vmul.f32 0.0078125, %v2100_v4  ;;  %v7171_v1 = vmul.f32 0.0078125, %v1999_v7  ;;  %4449 = vperm.xlu0 %5739, %v5136_v25   ;;  %v2271_v23 = vadd.f32 1e-05, %v2221_v35  ;;  %v5133_v7 = vld [vmem:[%s6108_s20 + $0x30] sm:$0xff] }
 0x2c2   : > { %v2197_v18 = vsub.f32 %v2147_v33, %v2172_v32  ;;  %5811 = vrsqrt.f32 %v2271_v23  ;;  %v2173_v6 = vmul.f32 %v7171_v1, %v7171_v1  ;;  %v7193_v33 = vsel %vm2565_vm2, %v2571_v16, %v2573_v5 }
 0x2c3   : > { %v2102_v15 = vpop.xlane.xlu1 %2101  ;;  %v2001_v59 = vpop.xlane.xlu0 %2000  ;;  %v7196_v23 = vsel %vm2565_vm2, %v2567_v2, %v2569_v30 }
 0x2c4   : > { %v2222_v25 = vmax.f32 %v2197_v18, 0.0  ;;  %v2148_v35 = vmul.f32 0.0078125, %v2102_v15  ;;  %v7181_v4 = vmul.f32 0.0078125, %v2001_v59  ;;  %4528 = vperm.xlu0 %5739, %v5142_v51   ;;  %v7199_v15 = vsel %vm2565_vm2, %v2569_v30, %v2571_v16 }
 0x2c5   : > { %v2244_v59 = vsub.f32 %v6836_v41, %v7141_v54  ;;  %v2728_v30 = vrot.slane %v7092_v42, 4  ;;  %v8609_v54 = vrot.slane %v7095_v9, 6 }
 0x2c6   : > { %v5808_v32 = vpop.eup %5807  ;;  %v2272_v18 = vadd.f32 1e-05, %v2222_v25  ;;  %v2198_v51 = vsub.f32 %v2148_v35, %v2173_v6  ;;  %v2174_v58 = vmul.f32 %v7181_v4, %v7181_v4  ;;  %v5143_v6 = vld [vmem:[%s6108_s20 + $0x80] sm:$0xff] }
 0x2c7   : > { %v2320_v28 = vmul.f32 %v5808_v32, %v2245_v45  ;;  %v2104_v44 = vpop.xlane.xlu0 %2103  ;;  %v2003_v50 = vpop.xlane.xlu1 %2002  ;;  %v5139_v35 = vld [vmem:[%s6108_s20 + $0x60] sm:$0xff] }
 0x2c8   : > { %v5810_v19 = vpop.eup %5809  ;;  %5813 = vrsqrt.f32 %v2272_v18  ;;  %v2223_v2 = vmax.f32 %v2198_v51, 0.0  ;;  %v2149_v40 = vmul.f32 0.0078125, %v2104_v44  ;;  %v7205_v25 = vmul.f32 0.0078125, %v2003_v50  ;;  %4453 = vperm.xlu0 %5739, %v5137_v36   ;;  %4437 = vperm.xlu1 %5740, %v5133_v7  }
 0x2c9   : > { %v2349_v41 = vmul.f32 %v6102_v14, %v2320_v28  ;;  %v2319_v16 = vmul.f32 %v5810_v19, %v2244_v59  ;;  %v2246_v7 = vsub.f32 %v6850_v52, %v7161_v47 }
 0x2ca   : > { %v2273_v18 = vadd.f32 1e-05, %v2223_v2  ;;  %v2199_v51 = vsub.f32 %v2149_v40, %v2174_v58  ;;  %v2175_v19 = vmul.f32 %v7205_v25, %v7205_v25  ;;  %v7225_v58 = vsel %vm2565_vm2, %v2573_v5, %v8609_v54 }
 0x2cb   : > { %v2378_v50 = vadd.f32 %v6113_v17, %v2349_v41  ;;  %v2348_v36 = vmul.f32 %v6102_v14, %v2319_v16  ;;  %v2106_v28 = vpop.xlane.xlu1 %2105  ;;  %v2005_v59 = vpop.xlane.xlu0 %2004  ;;  %v5138_v41 = vld [vmem:[%s6108_s20 + $0x58] sm:$0xff]  ;;  %v5140_v16 = vld [vmem:[%s6108_s20 + $0x68] sm:$0xff]  ;;  %v2730_v5 = vrot.slane %v7128_v55, 4 }
 0x2cc   : > { %5815 = vrsqrt.f32 %v2273_v18  ;;  %v2224_v44 = vmax.f32 %v2199_v51, 0.0  ;;  %v2150_v45 = vmul.f32 0.0078125, %v2106_v28  ;;  %v7220_v32 = vmul.f32 0.0078125, %v2005_v59  ;;  %4532 = vperm.xlu0 %5739, %v5143_v6   ;;  %4516 = vperm.xlu1 %5740, %v5139_v35   ;;  %v5812_v40 = vpop.eup %5811 }
 0x2cd   : > { %v2439_v47 = vmul.f32 %v7056_v63, %v2378_v50  ;;  %v2377_v2 = vadd.f32 %v6113_v17, %v2348_v36  ;;  %v8691_v18 = vrot.slane %v7115_v29, 4  ;;  %v2321_v35 = vmul.f32 %v5812_v40, %v2246_v7 }
 0x2ce   : > { %v2274_v51 = vadd.f32 1e-05, %v2224_v44  ;;  %v2200_v28 = vsub.f32 %v2150_v45, %v2175_v19  ;;  %v2176_v63 = vmul.f32 %v7220_v32, %v7220_v32  ;;  %v2247_v45 = vsub.f32 %v6856_v49, %v7165_v34 }
 0x2cf   : > { %v7237_v6 = vsel %vm2522_vm5, %v8691_v18, %v2728_v30  ;;  %v5166_v59 = vpack.c.bf16 %v2439_v47, %v2439_v47  ;;  %v2438_v52 = vmul.f32 %v7047_v61, %v2377_v2  ;;  %v2108_v50 = vpop.xlane.xlu0 %2107  ;;  %v2007_v36 = vpop.xlane.xlu1 %2006  ;;  %v2350_v54 = vmul.f32 %v6102_v14, %v2321_v35 }
 0x2d0   : > { %5817 = vrsqrt.f32 %v2274_v51  ;;  %v2225_v56 = vmax.f32 %v2200_v28, 0.0  ;;  %v2151_v29 = vmul.f32 0.0078125, %v2108_v50  ;;  %4457 = vperm.xlu0 %5739, %v5138_v41   ;;  %4520 = vperm.xlu1 %5740, %v5140_v16   ;;  %v7246_v19 = vmul.f32 0.0078125, %v2007_v36 }
 0x2d1   : > { %v2471_v7 = vshrl.u32 %v5166_v59, 16  ;;  %v5165_v44 = vpack.c.bf16 %v2438_v52, %v2438_v52  ;;  %v2379_v40 = vadd.f32 %v6113_v17, %v2350_v54  ;;  %v2248_v47 = vsub.f32 %v6862_v39, %v7171_v1 }
 0x2d2   : > { %v5814_v61 = vpop.eup %5813  ;;  %v2275_v2 = vadd.f32 1e-05, %v2225_v56  ;;  %v2201_v18 = vsub.f32 %v2151_v29, %v2176_v63  ;;  %v2249_v52 = vsub.f32 %v6868_v12, %v7181_v4  ;;  %v2474_v34 = vshll.u32 %v5166_v59, 16  ;;  %v5141_v63 = vld [vmem:[%s6108_s20 + $0x70] sm:$0xff] }
 0x2d3   : > { %v7251_v35 = vrot.slane %v2471_v7, 7  ;;  %v2463_v41 = vshrl.u32 %v5165_v44, 16  ;;  %v2322_v16 = vmul.f32 %v5814_v61, %v2247_v45  ;;  %v2110_v51 = vpop.xlane.xlu1 %2109  ;;  %v2009_v49 = vpop.xlane.xlu0 %2008  ;;  %v2440_v28 = vmul.f32 %v7062_v31, %v2379_v40 }
 0x2d4   : > { %5819 = vrsqrt.f32 %v2275_v2  ;;  %v2226_v54 = vmax.f32 %v2201_v18, 0.0  ;;  %4536 = vperm.xlu0 %5739, %v7044_v3   ;;  %4595 = vperm.xlu1 %5740, %v7082_v21   ;;  %v2466_v29 = vshll.u32 %v5165_v44, 16  ;;  %v2177_v1 = vmul.f32 %v7246_v19, %v7246_v19  ;;  %v2524_v3 = vld [vmem:[#allocation3] sm:$0xf] }
 0x2d5   : > { %v2465_v39 = vrot.slane %v2463_v41, 7  ;;  %v2351_v56 = vmul.f32 %v6102_v14, %v2322_v16  ;;  %v2476_v31 = vor.u32 %v2474_v34, %v7251_v35  ;;  %v5167_v59 = vpack.c.bf16 %v2440_v28, %v2440_v28 }
 0x2d6   : > { %v5816_v12 = vpop.eup %5815  ;;  %v2276_v21 = vadd.f32 1e-05, %v2226_v54  ;;  %v2152_v50 = vmul.f32 0.0078125, %v2110_v51 }
 0x2d7   : > { %v2468_v36 = vor.u32 %v2466_v29, %v2465_v39  ;;  %v2469_v7 = vrot.slane %v2465_v39, 4  ;;  %v2380_v44 = vadd.f32 %v6113_v17, %v2351_v56  ;;  %v2323_v45 = vmul.f32 %v5816_v12, %v2248_v47  ;;  %v2112_v61 = vpop.xlane.xlu0 %2111  ;;  %v2011_v40 = vpop.xlane.xlu1 %2010 }
 0x2d8   : > { %v2480_v2 = vshrl.u32 %v5167_v59, 16  ;;  %v2483_v18 = vshll.u32 %v5167_v59, 16  ;;  %5821 = vrsqrt.f32 %v2276_v21  ;;  %v2202_v41 = vsub.f32 %v2152_v50, %v2177_v1  ;;  %4615 = vperm.xlu0 %5739, %v7135_v46   ;;  %4524 = vperm.xlu1 %5740, %v5141_v63  }
 0x2d9   : > { %v2477_v16 = vsel %vm6300_vm8, %v2469_v7, %v2476_v31  ;;  %v2525_v51 = vsel %vm7264_vm11, %v2468_v36, %v2524_v3  ;;  %v2441_v34 = vmul.f32 %v7067_v0, %v2380_v44  ;;  %v2352_v28 = vmul.f32 %v6102_v14, %v2323_v45 }
 0x2da   : > { %v5818_v47 = vpop.eup %5817  ;;  %2526 = vst [vmem:[#allocation3] sm:$0xf] %v2525_v51  ;;  %2527 = vst [vmem:[#allocation3 + $0x4] sm:$0xf] %v2477_v16  ;;  %v2482_v54 = vrot.slane %v2480_v2, 7  ;;  %v2227_v39 = vmax.f32 %v2202_v41, 0.0  ;;  %v2250_v36 = vsub.f32 %v6876_v10, %v7205_v25  ;;  %v2251_v41 = vsub.f32 %v6882_v43, %v7220_v32 }
 0x2db   : > { %v7277_v29 = vmul.f32 0.0078125, %v2009_v49  ;;  %v2153_v56 = vmul.f32 0.0078125, %v2112_v61  ;;  %v2478_v46 = vrot.slane %v7251_v35, 4  ;;  %v5168_v1 = vpack.c.bf16 %v2441_v34, %v2441_v34  ;;  %v2114_v4 = vpop.xlane.xlu1 %2113  ;;  %v2013_v31 = vpop.xlane.xlu0 %2012 }
 0x2dc   : > { %v2381_v63 = vadd.f32 %v6113_v17, %v2352_v28  ;;  %v2324_v12 = vmul.f32 %v5818_v47, %v2249_v52  ;;  %v2485_v0 = vor.u32 %v2483_v18, %v2482_v54  ;;  %v2277_v3 = vadd.f32 1e-05, %v2227_v39  ;;  %4603 = vperm.xlu1 %5740, %v7100_v27   ;;  %v4365_v52 = vld [vmem:[%s6108_s20] sm:$0xff] }
 0x2dd   : > { %v2178_v59 = vmul.f32 %v7277_v29, %v7277_v29  ;;  %v7283_v21 = vmul.f32 0.0078125, %v2011_v40  ;;  %v2489_v49 = vshrl.u32 %v5168_v1, 16  ;;  %v2492_v45 = vshll.u32 %v5168_v1, 16 }
 0x2de   : > { %v2442_v50 = vmul.f32 %v7069_v62, %v2381_v63  ;;  %v2353_v35 = vmul.f32 %v6102_v14, %v2324_v12  ;;  %v5820_v7 = vpop.eup %5819  ;;  %v2486_v44 = vsel %vm6300_vm8, %v2478_v46, %v2485_v0  ;;  %5823 = vrsqrt.f32 %v2277_v3 }
 0x2df   : > { %v2203_v61 = vsub.f32 %v2153_v56, %v2178_v59  ;;  %2528 = vst [vmem:[#allocation3 + $0x8] sm:$0xf] %v2486_v44  ;;  %v2491_v40 = vrot.slane %v2489_v49, 7  ;;  %v2325_v18 = vmul.f32 %v5820_v7, %v2250_v36  ;;  %v2116_v62 = vpop.xlane.xlu0 %2115  ;;  %v2179_v10 = vmul.f32 %v7283_v21, %v7283_v21  ;;  %v2015_v39 = vpop.xlane.xlu1 %2014 }
 0x2e0   : > { %v5169_v2 = vpack.c.bf16 %v2442_v50, %v2442_v50  ;;  %v2382_v27 = vadd.f32 %v6113_v17, %v2353_v35  ;;  %v2154_v25 = vmul.f32 0.0078125, %v2114_v4  ;;  %4373 = vperm.xlu1 %5740, %v4365_v52   ;;  %v2487_v51 = vrot.slane %v2482_v54, 4  ;;  %v4366_v52 = vld [vmem:[%s6108_s20 + $0x8] sm:$0xff] }
 0x2e1   : > { %v2228_v16 = vmax.f32 %v2203_v61, 0.0  ;;  %v2494_v34 = vor.u32 %v2492_v45, %v2491_v40  ;;  %v2354_v1 = vmul.f32 %v6102_v14, %v2325_v18  ;;  %v7302_v0 = vmul.f32 0.0078125, %v2013_v31 }
 0x2e2   : > { %v2498_v28 = vshrl.u32 %v5169_v2, 16  ;;  %v2501_v47 = vshll.u32 %v5169_v2, 16  ;;  %v5822_v56 = vpop.eup %5821  ;;  %v2443_v46 = vmul.f32 %v7071_v24, %v2382_v27  ;;  %v2204_v12 = vsub.f32 %v2154_v25, %v2179_v10  ;;  %v2532_v25 = vld [vmem:[#allocation3 + $0x18] sm:$0x1] }
 0x2e3   : > { %v2278_v63 = vadd.f32 1e-05, %v2228_v16  ;;  %v2495_v43 = vsel %vm6300_vm8, %v2487_v51, %v2494_v34  ;;  %v2326_v4 = vmul.f32 %v5822_v56, %v2251_v41  ;;  %v2017_v54 = vpop.xlane.xlu0 %2016  ;;  %v2383_v59 = vadd.f32 %v6113_v17, %v2354_v1  ;;  %v2118_v18 = vpop.xlane.xlu1 %2117 }
 0x2e4   : > { %v2500_v32 = vrot.slane %v2498_v28, 7  ;;  %2529 = vst [vmem:[#allocation3 + $0xc] sm:$0xf] %v2495_v43  ;;  %v5170_v3 = vpack.c.bf16 %v2443_v46, %v2443_v46  ;;  %v2229_v49 = vmax.f32 %v2204_v12, 0.0  ;;  %4607 = vperm.xlu1 %5740, %v7113_v38   ;;  %v2496_v24 = vrot.slane %v2491_v40, 4 }
 0x2e5   : > { %5825 = vrsqrt.f32 %v2278_v63  ;;  %v2355_v35 = vmul.f32 %v6102_v14, %v2326_v4  ;;  %v2252_v36 = vsub.f32 %v6890_v60, %v7246_v19  ;;  %v8695_v31 = vrot.slane %v7073_v22, 6 }
 0x2e6   : > { %v2503_v50 = vor.u32 %v2501_v47, %v2500_v32  ;;  %v2507_v7 = vshrl.u32 %v5170_v3, 16  ;;  %v2279_v45 = vadd.f32 1e-05, %v2229_v49  ;;  %v2180_v61 = vmul.f32 %v7302_v0, %v7302_v0  ;;  %v2683_v49 = vld [vmem:[#allocation3 + $0x18] sm:$0xe] }
 0x2e7   : > { %v2584_v44 = vmul.f32 %v8695_v31, %v2383_v59  ;;  %v2510_v38 = vshll.u32 %v5170_v3, 16  ;;  %v2384_v40 = vadd.f32 %v6113_v17, %v2355_v35  ;;  %v2155_v27 = vmul.f32 0.0078125, %v2116_v62  ;;  %v7317_v41 = vpop.xlane.xlu0 %2119 }
 0x2e8   : > { %v2504_v2 = vsel %vm6300_vm8, %v2496_v24, %v2503_v50  ;;  %v5824_v60 = vpop.eup %5823  ;;  %v2509_v19 = vrot.slane %v2507_v7, 7  ;;  %5827 = vrsqrt.f32 %v2279_v45  ;;  %v7319_v22 = vmul.f32 0.0078125, %v2015_v39  ;;  %4378 = vperm.xlu1 %5740, %v4366_v52   ;;  %v3013_v45 = vld [vmem:[#allocation3] sm:$0xf] }
 0x2e9   : > { %2530 = vst [vmem:[#allocation3 + $0x10] sm:$0xf] %v2504_v2  ;;  %v5171_v16 = vpack.c.bf16 %v2584_v44, %v2584_v44  ;;  %v2505_v10 = vrot.slane %v2500_v32, 4  ;;  %v2585_v51 = vmul.f32 %v7186_v26, %v2384_v40  ;;  %v2327_v34 = vmul.f32 %v5824_v60, %v2252_v36  ;;  %v4367_v36 = vld [vmem:[%s6108_s20 + $0x10] sm:$0xff]  ;;  %v7343_v40 = vld [vmem:[#allocation3 + $0x4] sm:$0xf] }
 0x2ea   : > { %v2205_v28 = vsub.f32 %v2155_v27, %v2180_v61  ;;  %v2512_v47 = vor.u32 %v2510_v38, %v2509_v19  ;;  %v2514_v56 = vrot.slane %v2509_v19, 4  ;;  %v2156_v46 = vmul.f32 0.0078125, %v2118_v18 }
 0x2eb   : > { %v2614_v62 = vshrl.u32 %v5171_v16, 16  ;;  %v2617_v1 = vshll.u32 %v5171_v16, 16  ;;  %v5172_v63 = vpack.c.bf16 %v2585_v51, %v2585_v51  ;;  %v2356_v12 = vmul.f32 %v6102_v14, %v2327_v34  ;;  %v2019_v4 = vpop.xlane.xlu0 %2018 }
 0x2ec   : > { %v2230_v43 = vmax.f32 %v2205_v28, 0.0  ;;  %v2513_v39 = vsel %vm6300_vm8, %v2505_v10, %v2512_v47  ;;  %v2533_v32 = vsel %vm6098_vm6, %v2514_v56, %v2532_v25  ;;  %v2181_v3 = vmul.f32 %v7319_v22, %v7319_v22  ;;  %4611 = vperm.xlu1 %5740, %v7122_v20   ;;  %v2021_v10 = vpop.xlane.xlu1 %2020  ;;  %v4368_v25 = vld [vmem:[%s6108_s20 + $0x18] sm:$0xff] }
 0x2ed   : > { %v2616_v26 = vrot.slane %v2614_v62, 7  ;;  %2531 = vst [vmem:[#allocation3 + $0x14] sm:$0xf] %v2513_v39  ;;  %2534 = vst [vmem:[#allocation3 + $0x18] sm:$0x1] %v2533_v32  ;;  %v2622_v24 = vshrl.u32 %v5172_v63, 16  ;;  %v2385_v50 = vadd.f32 %v6113_v17, %v2356_v12  ;;  %v2253_v13 = vsub.f32 %v6896_v11, %v7277_v29 }
 0x2ee   : > { %v2280_v35 = vadd.f32 1e-05, %v2230_v43  ;;  %v2625_v20 = vshll.u32 %v5172_v63, 16  ;;  %v2206_v31 = vsub.f32 %v2156_v46, %v2181_v3  ;;  %v7340_v44 = vmul.f32 0.0078125, %v2017_v54 }
 0x2ef   : > { %v5826_v52 = vpop.eup %5825  ;;  %v2619_v7 = vor.u32 %v2617_v1, %v2616_v26  ;;  %v2624_v61 = vrot.slane %v2622_v24, 7  ;;  %v2586_v2 = vmul.f32 %v7196_v23, %v2385_v50  ;;  %v2122_v27 = vpop.xlane.xlu0 %2121  ;;  %v7350_v11 = vsel %vm2522_vm5, %v2728_v30, %v2730_v5 }
 0x2f0   : > { %v2328_v38 = vmul.f32 %v5826_v52, %v2253_v13  ;;  %5829 = vrsqrt.f32 %v2280_v35  ;;  %v2254_v54 = vsub.f32 %v6904_v48, %v7283_v21  ;;  %v2231_v23 = vmax.f32 %v2206_v31, 0.0  ;;  %4383 = vperm.xlu1 %5740, %v4367_v36  }
 0x2f1   : > { %v2684_v29 = vsel %vm7332_vm12, %v2619_v7, %v2683_v49  ;;  %v2620_v18 = vrot.slane %v2616_v26, 4  ;;  %v2627_v60 = vor.u32 %v2625_v20, %v2624_v61  ;;  %v5173_v19 = vpack.c.bf16 %v2586_v2, %v2586_v2  ;;  %v2023_v49 = vpop.xlane.xlu1 %2022 }
 0x2f2   : > { %2685 = vst [vmem:[#allocation3 + $0x18] sm:$0xe] %v2684_v29  ;;  %v2357_v16 = vmul.f32 %v6102_v14, %v2328_v38  ;;  %v5828_v42 = vpop.eup %5827  ;;  %v2281_v51 = vadd.f32 1e-05, %v2231_v23  ;;  %v2182_v30 = vmul.f32 %v7340_v44, %v7340_v44  ;;  %v7361_v34 = vcombine.low %v3013_v45, %v7343_v40 }
 0x2f3   : > { %v2157_v48 = vmul.f32 0.0078125, %v7317_v41  ;;  %v8699_v21 = vrot.slane %v7106_v53, 4  ;;  %v2628_v47 = vsel %vm6300_vm8, %v2620_v18, %v2627_v60  ;;  %v2631_v56 = vshrl.u32 %v5173_v19, 16  ;;  %v2124_v46 = vpop.xlane.xlu0 %2123 }
 0x2f4   : > { %v2386_v62 = vadd.f32 %v6113_v17, %v2357_v16  ;;  %2686 = vst [vmem:[#allocation3 + $0x1c] sm:$0xf] %v2628_v47  ;;  %v2329_v1 = vmul.f32 %v5828_v42, %v2254_v54  ;;  %5831 = vrsqrt.f32 %v2281_v51  ;;  %5572 = vmatmul.mubr.bf16.vlgmr.msra.gmra.mrb[104].mxu0 %v7361_v34  ;;  %v7375_v63 = vmul.f32 0.0078125, %v2021_v10  ;;  %4388 = vperm.xlu1 %5740, %v4368_v25  }
 0x2f5   : > { %v7369_v28 = vsel %vm2522_vm5, %v2730_v5, %v8699_v21  ;;  %v2207_v41 = vsub.f32 %v2157_v48, %v2182_v30  ;;  %v2633_v55 = vrot.slane %v2631_v56, 7  ;;  %v2634_v12 = vshll.u32 %v5173_v19, 16  ;;  %v2126_v51 = vpop.xlane.xlu1 %2125 }
 0x2f6   : > { %v2587_v5 = vmul.f32 %v7199_v15, %v2386_v62  ;;  %v7378_v43 = vmul.f32 0.0078125, %v2019_v4  ;;  %v8700_v39 = vmov 0.0   ;;  %v2358_v32 = vmul.f32 %v6102_v14, %v2329_v1 }
 0x2f7   : > { %5575 = vmatprep.mubr.msk.bf16.mxu0 %vm8666_vm14, %v8700_v39  ;;  %v2255_v26 = vsub.f32 %v6910_v57, %v7302_v0  ;;  %v2232_v3 = vmax.f32 %v2207_v41, 0.0  ;;  %v2158_v59 = vmul.f32 0.0078125, %v2122_v27  ;;  %v2629_v24 = vrot.slane %v2624_v61, 4  ;;  %v7387_v15 = vpop.xlane.xlu0 %2024  ;;  %v7394_v0 = vld [vmem:[#allocation3 + $0x8] sm:$0xff]  }
 0x2f8   : > { %v2636_v50 = vor.u32 %v2634_v12, %v2633_v55  ;;  %v5174_v13 = vpack.c.bf16 %v2587_v5, %v2587_v5  ;;  %v2183_v35 = vmul.f32 %v7378_v43, %v7378_v43  ;;  %v2387_v4 = vadd.f32 %v6113_v17, %v2358_v32  ;;  %v7418_v32 = vld [vmem:[#allocation3 + $0x10] sm:$0xff]  }
 0x2f9   : > { %v2256_v36 = vsub.f32 %v6918_v37, %v7319_v22  ;;  %v2282_v52 = vadd.f32 1e-05, %v2232_v3  ;;  %v2184_v57 = vmul.f32 %v7375_v63, %v7375_v63  ;;  %v7398_v61 = vmul.f32 0.0078125, %v2023_v49 }
 0x2fa   : > { %v5830_v7 = vpop.eup %5829  ;;  %v2637_v20 = vsel %vm6300_vm8, %v2629_v24, %v2636_v50  ;;  %v2640_v31 = vshrl.u32 %v5174_v13, 16  ;;  %v2208_v45 = vsub.f32 %v2158_v59, %v2183_v35  ;;  %v2638_v2 = vrot.slane %v2633_v55, 4  ;;  %v8701_v59 = vld [vmem:[#allocation12_spill] sm:$0xff] }
 0x2fb   : > { %2687 = vst [vmem:[#allocation3 + $0x20] sm:$0xf] %v2637_v20  ;;  %v2588_v38 = vmul.f32 %v7193_v33, %v2387_v4  ;;  %v2330_v27 = vmul.f32 %v5830_v7, %v2255_v26  ;;  %5833 = vrsqrt.f32 %v2282_v52  ;;  %v2643_v22 = vshll.u32 %v5174_v13, 16  ;;  %v7402_v23 = vpop.xlane.xlu0 %2127  ;;  %v5791_v26 = vld [vmem:[%s8576_s4 + $0x80] sm:$0xff]   ;;  %v8702_v52 = vld [vmem:[#allocation13_spill] sm:$0xff] }
 0x2fc   : > { %v2642_v37 = vrot.slane %v2640_v31, 7  ;;  %v2233_v29 = vmax.f32 %v2208_v45, 0.0  ;;  %v3137_v54 = vshll.u32 %v7361_v34, 16  ;;  %5576 = vmatmul.mubr.bf16.gmra.mrb[108].mxu0 %v7394_v0  ;;  %v3142_v19 = vshll.u32 %v7394_v0, 16  ;;  %v8703_v7 = vld [vmem:[#allocation14_spill] sm:$0xff]  ;;  %v2027_v31 = vpop.xlane.xlu1 %2026 }
 0x2fd   : > { %v5175_v18 = vpack.c.bf16 %v2588_v38, %v2588_v38  ;;  %v2359_v60 = vmul.f32 %v6102_v14, %v2330_v27  ;;  %v2159_v16 = vmul.f32 0.0078125, %v2124_v46  ;;  %v3135_v33 = vshrl.u32 %v7361_v34, 16  ;;  %5579 = vmatprep.mubr.msk.bf16.mxu0 %vm8666_vm14, %v8700_v39 }
 0x2fe   : > { %v2645_v10 = vor.u32 %v2643_v22, %v2642_v37  ;;  %v2283_v25 = vadd.f32 1e-05, %v2233_v29  ;;  %v3139_v42 = vrot.slane %v3137_v54, 1  ;;  %v5832_v30 = vpop.eup %5831  ;;  %v7411_v56 = vrot.slane %v3142_v19, 1 }
 0x2ff   : > { %v2649_v48 = vshrl.u32 %v5175_v18, 16  ;;  %v2652_v21 = vshll.u32 %v5175_v18, 16  ;;  %v2388_v47 = vadd.f32 %v6113_v17, %v2359_v60  ;;  %v2331_v46 = vmul.f32 %v5832_v30, %v2256_v36  ;;  %v7415_v41 = vpop.xlane.xlu0 %2129  ;;  %v8705_v18 = vld [vmem:[#allocation22_spill] sm:$0xff] }
 0x300   : > { %v2646_v62 = vsel %vm6300_vm8, %v2638_v2, %v2645_v10  ;;  %5835 = vrsqrt.f32 %v2283_v25  ;;  %v3140_v1 = vor.u32 %v3139_v42, %v3135_v33  ;;  %vm2842_vm6 = vcmask 1043458  }
 0x301   : > { %2688 = vst [vmem:[#allocation3 + $0x24] sm:$0xf] %v2646_v62  ;;  %v2651_v34 = vrot.slane %v2649_v48, 7  ;;  %v2589_v55 = vmul.f32 %v7225_v58, %v2388_v47  ;;  %v2209_v12 = vsub.f32 %v2159_v16, %v2184_v57  ;;  %v2160_v5 = vmul.f32 0.0078125, %v2126_v51  ;;  %vm7473_vm1 = vmand %vm2842_vm6, %vm861_vm15 }
 0x302   : > { %v2360_v3 = vmul.f32 %v6102_v14, %v2331_v46  ;;  %v2257_v49 = vsub.f32 %v8701_v59, %v7340_v44  ;;  %v2185_v24 = vmul.f32 %v7398_v61, %v7398_v61  ;;  %v3145_v50 = vsel %vm1180_vm10, %v3140_v1, %v7411_v56  ;;  %v7462_v1 = vld [vmem:[#allocation3 + $0x18] sm:$0xff]  }
 0x303   : > { %v2647_v58 = vrot.slane %v2642_v37, 4  ;;  %v2654_v13 = vor.u32 %v2652_v21, %v2651_v34  ;;  %v5176_v35 = vpack.c.bf16 %v2589_v55, %v2589_v55  ;;  %5504 = vmatmul.mubr.bf16.vlgmr.msra.gmra.mrb[52].mxu1 %v3145_v50  ;;  %v2234_v4 = vmax.f32 %v2209_v12, 0.0  ;;  %v7437_v45 = vpop.xlane.xlu0 %2131  ;;  %v5796_v55 = vld [vmem:[%s8576_s4 + $0x90] sm:$0xff]  }
 0x304   : > { %v2389_v36 = vadd.f32 %v6113_v17, %v2360_v3  ;;  %v2259_v57 = vsub.f32 %v8702_v52, %v7375_v63  ;;  %v2258_v20 = vsub.f32 %v8703_v7, %v7378_v43  ;;  %v2210_v44 = vsub.f32 %v2160_v5, %v2185_v24  ;;  %5507 = vmatprep.mubr.msk.bf16.mxu1 %vm8666_vm14, %v8700_v39  ;;  %v5794_v43 = vld [vmem:[%s8576_s4 + $0x88] sm:$0xff]   ;;  %v2844_v7 = vld [vmem:[#allocation3 + $0x30] sm:$0xc] }
 0x305   : > { %v5834_v2 = vpop.eup %5833  ;;  %v2655_v38 = vsel %vm6300_vm8, %v2647_v58, %v2654_v13  ;;  %v2658_v27 = vshrl.u32 %v5176_v35, 16  ;;  %v2284_v37 = vadd.f32 1e-05, %v2234_v4  ;;  %5580 = vmatmul.mubr.bf16.gmra.mrb[112].mxu0 %v7418_v32  ;;  %v7443_v22 = vmul.f32 0.0078125, %v7387_v15  ;;  %5624 = vmatpush3.bf16.msra.mxu1 %v5791_v26 }
 0x306   : > { %2689 = vst [vmem:[#allocation3 + $0x28] sm:$0xf] %v2655_v38  ;;  %v8704_v29 = vrot.slane %v7095_v9, 6  ;;  %v8706_v60 = vrot.slane %v8705_v18, 4  ;;  %v2332_v16 = vmul.f32 %v5834_v2, %v2257_v49  ;;  %v2235_v10 = vmax.f32 %v2210_v44, 0.0  ;;  %5583 = vmatprep.mubr.msk.bf16.mxu0 %vm8666_vm14, %v8700_v39  ;;  %5625 = vmatprep.subr.bf16.mxu1 %v8700_v39  ;;  %v2029_v38 = vpop.xlane.xlu1 %2028 }
 0x307   : > { %v2660_v15 = vrot.slane %v2658_v27, 7  ;;  %v2661_v25 = vshll.u32 %v5176_v35, 16  ;;  %5837 = vrsqrt.f32 %v2284_v37  ;;  %v7455_v33 = vmul.f32 0.0078125, %v2027_v31  ;;  %v7458_v48 = vpop.xlane.xlu0 %2032  ;;  %v2693_v37 = vld [vmem:[#allocation3 + $0x30] sm:$0x3] }
 0x308   : > { %v2590_v54 = vmul.f32 %v8704_v29, %v2389_v36  ;;  %v2745_v19 = vmul.f32 %v8706_v60, %v2389_v36  ;;  %v2361_v9 = vmul.f32 %v6102_v14, %v2332_v16  ;;  %v2285_v30 = vadd.f32 1e-05, %v2235_v10 }
 0x309   : > { %v2656_v21 = vrot.slane %v2651_v34, 4  ;;  %v2663_v47 = vor.u32 %v2661_v25, %v2660_v15  ;;  %v3146_v62 = vshrl.u32 %v7394_v0, 16  ;;  %v3150_v46 = vshll.u32 %v7418_v32, 16  ;;  %5626 = vmatpush3.bf16.msra.mxu1 %v5794_v43 }
 0x30a   : > { %v5177_v42 = vpack.c.bf16 %v2590_v54, %v2590_v54  ;;  %v5178_v51 = vpack.c.bf16 %v2745_v19, %v2745_v19  ;;  %v5836_v12 = vpop.eup %5835  ;;  %5627 = vmatprep.subr.bf16.mxu1 %v8700_v39  ;;  %v2390_v49 = vadd.f32 %v6113_v17, %v2361_v9  ;;  %5839 = vrsqrt.f32 %v2285_v30 }
 0x30b   : > { %v2664_v34 = vsel %vm6300_vm8, %v2656_v21, %v2663_v47  ;;  %v2333_v24 = vmul.f32 %v5836_v12, %v2258_v20  ;;  %v3148_v35 = vor.u32 %v3146_v62, %v7411_v56  ;;  %v7480_v4 = vrot.slane %v3150_v46, 1  ;;  %v7482_v36 = vpop.xlane.xlu0 %2135  ;;  %v5797_v56 = vld [vmem:[%s8576_s4 + $0x98] sm:$0xff]   ;;  %v8712_v21 = vld [vmem:[#allocation15_spill] sm:$0xff] }
 0x30c   : > { %v2667_v5 = vshrl.u32 %v5177_v42, 16  ;;  %v2670_v26 = vshll.u32 %v5177_v42, 16  ;;  %v2775_v3 = vshrl.u32 %v5178_v51, 16  ;;  %v2778_v59 = vshll.u32 %v5178_v51, 16  ;;  %2690 = vst [vmem:[#allocation3 + $0x2c] sm:$0xf] %v2664_v34 }
 0x30d   : > { %v2746_v20 = vmul.f32 %v7237_v6, %v2390_v49  ;;  %v2362_v44 = vmul.f32 %v6102_v14, %v2333_v24  ;;  %v2186_v31 = vmul.f32 %v7443_v22, %v7443_v22  ;;  %v2161_v2 = vmul.f32 0.0078125, %v7402_v23  ;;  %5584 = vmatmul.mubr.bf16.gmra.mrb[116].mxu0 %v7462_v1  ;;  %5628 = vmatpush3.bf16.msra.mxu1 %v5796_v55  ;;  %v7522_v62 = vld [vmem:[#allocation3 + $0x20] sm:$0xff]  }
 0x30e   : > { %v2669_v58 = vrot.slane %v2667_v5, 7  ;;  %v7477_v13 = vrot.slane %v2775_v3, 7  ;;  %vm8709_vm15 = vsmask.f32 1280  ;;  %v2665_v6 = vrot.slane %v2660_v15, 4  ;;  %5587 = vmatprep.mubr.msk.bf16.mxu0 %vm8666_vm14, %v8700_v39  ;;  %5629 = vmatprep.subr.bf16.mxu1 %v8700_v39 }
 0x30f   : > { %vm7495_vm11 = vmand %vm2565_vm2, %vm8709_vm15  ;;  %v3153_v23 = vsel %vm1180_vm10, %v3148_v35, %v7480_v4  ;;  %v5179_v54 = vpack.c.bf16 %v2746_v20, %v2746_v20  ;;  %v2391_v18 = vadd.f32 %v6113_v17, %v2362_v44  ;;  %v2187_v60 = vmul.f32 %v7455_v33, %v7455_v33  ;;  %v5799_v35 = vld [vmem:[%s8576_s4 + $0xa8] sm:$0xff]  }
 0x310   : > { %v2672_v43 = vor.u32 %v2670_v26, %v2669_v58  ;;  %v2780_v29 = vor.u32 %v2778_v59, %v7477_v13  ;;  %5508 = vmatmul.mubr.bf16.gmra.mrb[56].mxu1 %v3153_v23  ;;  %v2211_v19 = vsub.f32 %v2161_v2, %v2186_v31  ;;  %v7512_v15 = vmul.f32 0.0078125, %v2029_v38 }
 0x311   : > { %v2162_v25 = vmul.f32 0.0078125, %v7415_v41  ;;  %5511 = vmatprep.mubr.msk.bf16.mxu1 %vm8666_vm14, %v8700_v39  ;;  %v5838_v42 = vpop.eup %5837  ;;  %v2783_v9 = vshrl.u32 %v5179_v54, 16  ;;  %v2747_v30 = vmul.f32 %v7350_v11, %v2391_v18  ;;  %v2260_v47 = vsub.f32 %v8712_v21, %v7398_v61  ;;  %5630 = vmatpush3.bf16.msra.mxu1 %v5797_v56  ;;  %v5798_v41 = vld [vmem:[%s8576_s4 + $0xa0] sm:$0xff]   ;;  %v7531_v11 = vpop.xlane.xlu0 %2036 }
 0x312   : > { %v2673_v16 = vsel %vm6300_vm8, %v2665_v6, %v2672_v43  ;;  %v2845_v10 = vsel %vm7473_vm1, %v2780_v29, %v2844_v7  ;;  %v2781_v46 = vrot.slane %v7477_v13, 4  ;;  %v2334_v55 = vmul.f32 %v5838_v42, %v2259_v57  ;;  %5631 = vmatprep.subr.bf16.mxu1 %v8700_v39  ;;  %v8713_v29 = vld [vmem:[#allocation24_spill] sm:$0xff] }
 0x313   : > { %v2694_v51 = vsel %vm7495_vm11, %v2673_v16, %v2693_v37  ;;  %2846 = vst [vmem:[#allocation3 + $0x30] sm:$0xc] %v2845_v10  ;;  %v2236_v12 = vmax.f32 %v2211_v19, 0.0  ;;  %v2212_v5 = vsub.f32 %v2162_v25, %v2187_v60  ;;  %v2785_v61 = vrot.slane %v2783_v9, 7  ;;  %v7564_v16 = vld [vmem:[#allocation3 + $0x28] sm:$0xff]  }
 0x314   : > { %2695 = vst [vmem:[#allocation3 + $0x30] sm:$0x3] %v2694_v51  ;;  %v2786_v26 = vshll.u32 %v5179_v54, 16  ;;  %v5180_v3 = vpack.c.bf16 %v2747_v30, %v2747_v30  ;;  %v3158_v59 = vshll.u32 %v7462_v1, 16  ;;  %v2363_v34 = vmul.f32 %v6102_v14, %v2334_v55  ;;  %v5840_v63 = vpop.eup %5839 }
 0x315   : > { %v2286_v49 = vadd.f32 1e-05, %v2236_v12  ;;  %v2188_v24 = vmul.f32 %v7512_v15, %v7512_v15  ;;  %v2237_v50 = vmax.f32 %v2212_v5, 0.0  ;;  %v3154_v13 = vshrl.u32 %v7418_v32, 16  ;;  %5588 = vmatmul.mubr.bf16.gmra.mrb[120].mxu0 %v7522_v62  ;;  %5632 = vmatpush3.bf16.msra.mxu1 %v5798_v41  ;;  %v7555_v43 = vpop.xlane.xlu0 %2139  ;;  %v5805_v5 = vld [vmem:[%s8576_s4 + $0xb8] sm:$0xff]  }
 0x316   : > { %v2788_v52 = vor.u32 %v2786_v26, %v2785_v61  ;;  %v2792_v57 = vshrl.u32 %v5180_v3, 16  ;;  %v2795_v58 = vshll.u32 %v5180_v3, 16  ;;  %v2392_v7 = vadd.f32 %v6113_v17, %v2363_v34  ;;  %5591 = vmatprep.mubr.msk.bf16.mxu0 %vm8666_vm14, %v8700_v39  ;;  %5633 = vmatprep.subr.bf16.mxu1 %v8700_v39  ;;  %v8716_v34 = vld [vmem:[#allocation16_spill] sm:$0xff] }
 0x317   : > { %v2335_v20 = vmul.f32 %v5840_v63, %v2260_v47  ;;  %5841 = vrsqrt.f32 %v2286_v49  ;;  %v2287_v44 = vadd.f32 1e-05, %v2237_v50  ;;  %v3156_v38 = vor.u32 %v3154_v13, %v7480_v4 }
 0x318   : > { %v2789_v31 = vsel %vm6300_vm8, %v2781_v46, %v2788_v52  ;;  %v7549_v2 = vrot.slane %v2792_v57, 7  ;;  %v3160_v56 = vrot.slane %v3158_v59, 1  ;;  %v2748_v27 = vmul.f32 %v7369_v28, %v2392_v7  ;;  %v5802_v28 = vld [vmem:[%s8576_s4 + $0xb0] sm:$0xff]   ;;  %v7582_v46 = vpop.permute.xlu1 %2724 }
 0x319   : > { %2847 = vst [vmem:[#allocation3 + $0x34] sm:$0xf] %v2789_v31  ;;  %v2364_v6 = vmul.f32 %v6102_v14, %v2335_v20  ;;  %5843 = vrsqrt.f32 %v2287_v44  ;;  %v2163_v37 = vmul.f32 0.0078125, %v7437_v45  ;;  %v8714_v23 = vrot.slane %v8713_v29, 4  ;;  %5634 = vmatpush3.bf16.msra.mxu1 %v5799_v35 }
 0x31a   : > { %v8715_v54 = vrot.slane %v7106_v53, 4  ;;  %v2790_v60 = vrot.slane %v2785_v61, 4  ;;  %v2797_v4 = vor.u32 %v2795_v58, %v7549_v2  ;;  %v3161_v19 = vsel %vm1180_vm10, %v3156_v38, %v3160_v56  ;;  %5635 = vmatprep.subr.bf16.mxu1 %v8700_v39 }
 0x31b   : > { %v5181_v45 = vpack.c.bf16 %v2748_v27, %v2748_v27  ;;  %v2393_v10 = vadd.f32 %v6113_v17, %v2364_v6  ;;  %5512 = vmatmul.mubr.bf16.gmra.mrb[60].mxu1 %v3161_v19  ;;  %v2213_v25 = vsub.f32 %v2163_v37, %v2188_v24  ;;  %v7574_v42 = vmul.f32 0.0078125, %v7458_v48  ;;  %v7580_v41 = vpop.permute.xlu0 %2865 }
 0x31c   : > { %v2735_v18 = vsel %vm2522_vm5, %v8715_v54, %v8714_v23  ;;  %v2798_v53 = vsel %vm6300_vm8, %v2790_v60, %v2797_v4  ;;  %5515 = vmatprep.mubr.msk.bf16.mxu1 %vm8666_vm14, %v8700_v39  ;;  %v3162_v51 = vshrl.u32 %v7462_v1, 16  ;;  %v3166_v9 = vshll.u32 %v7522_v62, 16 }
 0x31d   : > { %2848 = vst [vmem:[#allocation3 + $0x38] sm:$0xf] %v2798_v53  ;;  %v2801_v30 = vshrl.u32 %v5181_v45, 16  ;;  %v2749_v21 = vmul.f32 %v2735_v18, %v2393_v10  ;;  %v2238_v47 = vmax.f32 %v2213_v25, 0.0  ;;  %v2165_v48 = vmul.f32 0.0078125, %v7482_v36  ;;  %5592 = vmatmul.mubr.bf16.gmra.mrb[124].mxu0 %v7564_v16  ;;  %5636 = vmatpush3.bf16.msra.mxu1 %v5802_v28  ;;  %v8717_v36 = vld [vmem:[#allocation17_spill] sm:$0xff] }
 0x31e   : > { %v3164_v55 = vor.u32 %v3162_v51, %v3160_v56  ;;  %v3168_v12 = vrot.slane %v3166_v9, 1  ;;  %v2804_v26 = vshll.u32 %v5181_v45, 16  ;;  %5595 = vmatprep.mubr.msk.bf16.mxu0 %vm8666_vm14, %v8700_v39  ;;  %5637 = vmatprep.subr.bf16.mxu1 %v8700_v39  ;;  %v2261_v49 = vsub.f32 %v8716_v34, %v7443_v22 }
 0x31f   : > { %v2803_v61 = vrot.slane %v2801_v30, 7  ;;  %v5182_v3 = vpack.c.bf16 %v2749_v21, %v2749_v21  ;;  %v2288_v59 = vadd.f32 1e-05, %v2238_v47  ;;  %v2262_v24 = vsub.f32 %v8717_v36, %v7455_v33  ;;  %v7601_v7 = vpop.permute.xlu0 %2869 }
 0x320   : > { %v2190_v50 = vmul.f32 %v7574_v42, %v7574_v42  ;;  %v3169_v63 = vsel %vm1180_vm10, %v3164_v55, %v3168_v12  ;;  %v2799_v57 = vrot.slane %v7549_v2, 4  ;;  %v2736_v35 = vrot.slane %v7582_v46, 4  ;;  %v7603_v31 = vld [vmem:[#allocation3 + $0x30] sm:$0xff]  }
 0x321   : > { %v5842_v52 = vpop.eup %5841  ;;  %v2806_v58 = vor.u32 %v2804_v26, %v2803_v61  ;;  %v2810_v13 = vshrl.u32 %v5182_v3, 16  ;;  %v2808_v20 = vrot.slane %v2803_v61, 4  ;;  %5845 = vrsqrt.f32 %v2288_v59  ;;  %5638 = vmatpush3.bf16.msra.mxu1 %v5805_v5 }
 0x322   : > { %v2336_v44 = vmul.f32 %v5842_v52, %v2261_v49  ;;  %v2215_v22 = vsub.f32 %v2165_v48, %v2190_v50  ;;  %v2813_v56 = vshll.u32 %v5182_v3, 16  ;;  %v3174_v2 = vshll.u32 %v7564_v16, 16 }
 0x323   : > { %v5844_v33 = vpop.eup %5843  ;;  %v2807_v38 = vsel %vm6300_vm8, %v2799_v57, %v2806_v58  ;;  %v7607_v27 = vrot.slane %v2810_v13, 7  ;;  %5516 = vmatmul.mubr.bf16.gmra.mrb[64].mxu1 %v3169_v63  ;;  %v3170_v23 = vshrl.u32 %v7522_v62, 16  ;;  %v7615_v60 = vpop.permute.xlu0 %2873  ;;  %v8718_v28 = vrot.slane %v8713_v29, 4  ;;  %v3001_v57 = vld [vmem:[#allocation3 + $0x48] sm:$0x8] }
 0x324   : > { %2849 = vst [vmem:[#allocation3 + $0x3c] sm:$0xf] %v2807_v38  ;;  %v2337_v6 = vmul.f32 %v5844_v33, %v2262_v24  ;;  %v2365_v37 = vmul.f32 %v6102_v14, %v2336_v44  ;;  %5519 = vmatprep.mubr.msk.bf16.mxu1 %vm8666_vm14, %v8700_v39  ;;  %v3176_v18 = vrot.slane %v3174_v2, 1  ;;  %v2240_v53 = vmax.f32 %v2215_v22, 0.0 }
 0x325   : > { %v2815_v54 = vor.u32 %v2813_v56, %v7607_v27  ;;  %v2737_v45 = vsel %vm2522_vm5, %v8718_v28, %v2736_v35  ;;  %v3172_v10 = vor.u32 %v3170_v23, %v3168_v12  ;;  %5596 = vmatmul.mubr.bf16.gmra.mrb[128].mxu0 %v7603_v31  ;;  %v7626_v51 = vmul.f32 0.0078125, %v7531_v11  ;;  %v8719_v11 = vld [vmem:[#allocation18_spill] sm:$0xff] }
 0x326   : > { %v2366_v4 = vmul.f32 %v6102_v14, %v2337_v6  ;;  %v2394_v19 = vadd.f32 %v6113_v17, %v2365_v37  ;;  %v3182_v9 = vshll.u32 %v7603_v31, 16  ;;  %5599 = vmatprep.mubr.msk.bf16.mxu0 %vm8666_vm14, %v8700_v39  ;;  %v2887_v47 = vrot.slane %v7580_v41, 2 }
 0x327   : > { %v2816_v25 = vsel %vm6300_vm8, %v2808_v20, %v2815_v54  ;;  %v3177_v21 = vsel %vm1180_vm10, %v3172_v10, %v3176_v18  ;;  %v2167_v46 = vmul.f32 0.0078125, %v7555_v43  ;;  %v7635_v55 = vpop.permute.xlu0 %2877  ;;  %v2263_v12 = vsub.f32 %v8719_v11, %v7512_v15 }
 0x328   : > { %v2395_v30 = vadd.f32 %v6113_v17, %v2366_v4  ;;  %2850 = vst [vmem:[#allocation3 + $0x40] sm:$0xf] %v2816_v25  ;;  %v2750_v29 = vmul.f32 %v2737_v45, %v2394_v19  ;;  %v2192_v26 = vmul.f32 %v7626_v51, %v7626_v51  ;;  %v3178_v3 = vshrl.u32 %v7564_v16, 16  ;;  %v3634_v19 = vld [vmem:[#allocation3] sm:$0xe] }
 0x329   : > { %v3184_v59 = vrot.slane %v3182_v9, 1  ;;  %v2888_v41 = vrot.slane %v7601_v7, 2  ;;  %v2290_v24 = vadd.f32 1e-05, %v2240_v53  ;;  %v2817_v50 = vrot.slane %v7607_v27, 4 }
 0x32a   : > { %v2751_v48 = vmul.f32 %v2736_v35, %v2395_v30  ;;  %v5183_v5 = vpack.c.bf16 %v2750_v29, %v2750_v29  ;;  %v2905_v61 = vmul.f32 %v2887_v47, %v2395_v30  ;;  %v2217_v63 = vsub.f32 %v2167_v46, %v2192_v26  ;;  %v2854_v45 = vld [vmem:[#allocation3 + $0x48] sm:$0x7] }
 0x32b   : > { %5520 = vmatmul.mubr.bf16.gmra.mrb[68].mxu1 %v3177_v21  ;;  %v7643_v34 = vld [vmem:[#allocation3 + $0x38] sm:$0xff]   ;;  %v5846_v43 = vpop.eup %5845  ;;  %v3180_v52 = vor.u32 %v3178_v3, %v3176_v18  ;;  %v7650_v13 = vpop.permute.xlu0 %2881  ;;  %v2889_v56 = vsel %vm2038_vm9, %v2887_v47, %v2888_v41  ;;  %5847 = vrsqrt.f32 %v2290_v24  ;;  %v3186_v46 = vshrl.u32 %v7603_v31, 16 }
 0x32c   : > { %v5184_v49 = vpack.c.bf16 %v2751_v48, %v2751_v48  ;;  %v2819_v36 = vshrl.u32 %v5183_v5, 16  ;;  %5523 = vmatprep.mubr.msk.bf16.mxu1 %vm8666_vm14, %v8700_v39  ;;  %v7647_v15 = vpack.c.bf16 %v2905_v61, %v2905_v61  ;;  %v2338_v58 = vmul.f32 %v5846_v43, %v2263_v12 }
 0x32d   : > { %v2822_v20 = vshll.u32 %v5183_v5, 16  ;;  %5600 = vmatmul.mubr.bf16.gmra.mrb[132].mxu0 %v7643_v34  ;;  %v3185_v33 = vsel %vm1180_vm10, %v3180_v52, %v3184_v59  ;;  %v3190_v27 = vshll.u32 %v7643_v34, 16  ;;  %v2242_v9 = vmax.f32 %v2217_v63, 0.0 }
 0x32e   : > { %v2821_v35 = vrot.slane %v2819_v36, 7  ;;  %v2828_v44 = vshrl.u32 %v5184_v49, 16  ;;  %v2935_v22 = vshll.u32 %v7647_v15, 16  ;;  %v2367_v38 = vmul.f32 %v6102_v14, %v2338_v58  ;;  %5603 = vmatprep.mubr.msk.bf16.mxu0 %vm8666_vm14, %v8700_v39 }
 0x32f   : > { %v2831_v37 = vshll.u32 %v5184_v49, 16  ;;  %v7665_v4 = vpop.permute.xlu0 %2885  ;;  %v3192_v11 = vrot.slane %v3190_v27, 1  ;;  %v5124_v12 = vcombine.low %v3634_v19, %v7343_v40  ;;  %v2292_v26 = vadd.f32 1e-05, %v2242_v9 }
 0x330   : > { %v2824_v2 = vor.u32 %v2822_v20, %v2821_v35  ;;  %v2830_v6 = vrot.slane %v2828_v44, 7  ;;  %v3002_v54 = vsel %vm7155_vm4, %v2935_v22, %v3001_v57  ;;  %v2396_v18 = vadd.f32 %v6113_v17, %v2367_v38  ;;  %v2031_v30 = vpop.xlane.xlu1 %2030  ;;  %vm3009_vm4 = vmand %vm2522_vm5, %vm8733_vm0 }
 0x331   : > { %3003 = vst [vmem:[#allocation3 + $0x48] sm:$0x8] %v3002_v54  ;;  %v2826_v25 = vrot.slane %v2821_v35, 4  ;;  %v7675_v21 = vmul.f32 0.0078125, %v2031_v30  ;;  %v3188_v3 = vor.u32 %v3186_v46, %v3184_v59  ;;  %v3655_v49 = vrot.slane %v7394_v0, 1 }
 0x332   : > { %v2825_v10 = vsel %vm6300_vm8, %v2817_v50, %v2824_v2  ;;  %v2833_v53 = vor.u32 %v2831_v37, %v2830_v6  ;;  %v2906_v29 = vmul.f32 %v2889_v56, %v2396_v18  ;;  %v2937_v36 = vshrl.u32 %v7647_v15, 16 }
 0x333   : > { %2851 = vst [vmem:[#allocation3 + $0x44] sm:$0xf] %v2825_v10  ;;  %5524 = vmatmul.mubr.bf16.gmra.mrb[72].mxu1 %v3185_v33  ;;  %v7685_v61 = vpop.permute.xlu0 %4441  ;;  %v2189_v50 = vmul.f32 %v7675_v21, %v7675_v21  ;;  %v3193_v40 = vsel %vm1180_vm10, %v3188_v3, %v3192_v11  ;;  %v3654_v52 = vrot.slane %v5124_v12, 1  ;;  %v3657_v57 = vrot.slane %v7418_v32, 1  ;;  %v8723_v32 = vld [vmem:[#allocation19_spill] sm:$0xff] }
 0x334   : > { %v2834_v47 = vsel %vm6300_vm8, %v2826_v25, %v2833_v53  ;;  %5527 = vmatprep.mubr.msk.bf16.mxu1 %vm8666_vm14, %v8700_v39  ;;  %v5186_v5 = vpack.c.bf16 %v2906_v29, %v2906_v29  ;;  %v2134_v43 = vpop.xlane.xlu1 %2133  ;;  %v8618_v0 = vrot.slane %v7685_v61, 6  ;;  %v2265_v27 = vsub.f32 %v8723_v32, %v7574_v42 }
 0x335   : > { %v2855_v48 = vsel %vm7669_vm7, %v2834_v47, %v2854_v45  ;;  %v2164_v63 = vmul.f32 0.0078125, %v2134_v43  ;;  %v7699_v33 = vsel %vm1686_vm3, %v3654_v52, %v3655_v49  ;;  %v7702_v38 = vsel %vm1686_vm3, %v3655_v49, %v3657_v57  ;;  %v5848_v56 = vpop.eup %5847 }
 0x336   : > { %2856 = vst [vmem:[#allocation3 + $0x48] sm:$0x7] %v2855_v48  ;;  %v2942_v24 = vshrl.u32 %v5186_v5, 16  ;;  %v2945_v35 = vshll.u32 %v5186_v5, 16  ;;  %5849 = vrsqrt.f32 %v2292_v26  ;;  %v5093_v2 = vrot.slane %v2937_v36, 11 }
 0x337   : > { %v2214_v20 = vsub.f32 %v2164_v63, %v2189_v50  ;;  %v4446_v59 = vpop.permute.xlu0 %4445  ;;  %v3194_v37 = vshrl.u32 %v7643_v34, 16  ;;  %v3659_v45 = vrot.slane %v7462_v1, 1  ;;  %v3661_v10 = vrot.slane %v7522_v62, 1 }
 0x338   : > { %v7693_v58 = vrot.slane %v2942_v24, 7  ;;  %v4462_v15 = vrot.slane %v4446_v59, 6  ;;  %v2035_v22 = vpop.xlane.xlu1 %2034  ;;  %v2340_v25 = vmul.f32 %v5848_v56, %v2265_v27  ;;  %v2890_v47 = vrot.slane %v7615_v60, 2 }
 0x339   : > { %v2239_v54 = vmax.f32 %v2214_v20, 0.0  ;;  %v7721_v19 = vmul.f32 0.0078125, %v2035_v22  ;;  %v3196_v53 = vor.u32 %v3194_v37, %v3192_v11  ;;  %v2892_v46 = vrot.slane %v7635_v55, 2 }
 0x33a   : > { %v7695_v44 = vld [vmem:[#allocation3 + $0x40] sm:$0xff]   ;;  %v2947_v6 = vor.u32 %v2945_v35, %v7693_v58  ;;  %v7715_v18 = vsel %vm2565_vm2, %v8618_v0, %v4462_v15  ;;  %v7733_v62 = vsel %vm1686_vm3, %v3657_v57, %v3659_v45  ;;  %v7736_v11 = vsel %vm1686_vm3, %v3659_v45, %v3661_v10 }
 0x33b   : > { %5528 = vmatmul.mubr.bf16.gmra.mrb[76].mxu1 %v3193_v40  ;;  %5604 = vmatmul.mubr.bf16.gmra.mrb[136].mxu0 %v7695_v44  ;;  %v3198_v23 = vshll.u32 %v7695_v44, 16  ;;  %v7723_v28 = vpop.permute.xlu0 %4599  ;;  %v2289_v30 = vadd.f32 1e-05, %v2239_v54  ;;  %v2191_v48 = vmul.f32 %v7721_v19, %v7721_v19  ;;  %v2369_v26 = vmul.f32 %v6102_v14, %v2340_v25 }
 0x33c   : > { %5531 = vmatprep.mubr.msk.bf16.mxu1 %vm8666_vm14, %v8700_v39  ;;  %v2948_v42 = vsel %vm6300_vm8, %v5093_v2, %v2947_v6  ;;  %5607 = vmatprep.mubr.msk.bf16.mxu0 %vm8666_vm14, %v8700_v39  ;;  %8724 = vst [vmem:[#allocation12_spill] sm:$0xff] %v7723_v28  ;;  %v2138_v29 = vpop.xlane.xlu1 %2137  ;;  %v3663_v49 = vrot.slane %v7564_v16, 1  ;;  %v3665_v36 = vrot.slane %v7603_v31, 1  ;;  %v3667_v63 = vrot.slane %v7643_v34, 1  ;;  %v8725_v31 = vld [vmem:[#allocation20_spill] sm:$0xff] }
 0x33d   : > { %3004 = vst [vmem:[#allocation3 + $0x4c] sm:$0xf] %v2948_v42  ;;  %v3200_v9 = vrot.slane %v3198_v23, 1  ;;  %5851 = vrsqrt.f32 %v2289_v30  ;;  %v2166_v5 = vmul.f32 0.0078125, %v2138_v29  ;;  %v3669_v40 = vrot.slane %v7695_v44, 1 }
 0x33e   : > { %v7751_v57 = vsel %vm1686_vm3, %v3661_v10, %v3663_v49  ;;  %v2267_v35 = vsub.f32 %v8725_v31, %v7626_v51  ;;  %v2893_v34 = vsel %vm2038_vm9, %v2890_v47, %v2892_v46  ;;  %v2398_v56 = vadd.f32 %v6113_v17, %v2369_v26 }
 0x33f   : > { %v3201_v12 = vsel %vm1180_vm10, %v3196_v53, %v3200_v9  ;;  %v4450_v1 = vpop.permute.xlu0 %4449  ;;  %v2216_v24 = vsub.f32 %v2166_v5, %v2191_v48  ;;  %v3202_v32 = vshrl.u32 %v7695_v44, 16  ;;  %v7770_v51 = vsel %vm1686_vm3, %v3665_v36, %v3667_v63  ;;  %v8726_v44 = vld [vmem:[#allocation21_spill] sm:$0xff] }
 0x340   : > { %v4464_v3 = vrot.slane %v4450_v1, 6  ;;  %v2041_v43 = vpop.xlane.xlu1 %2040  ;;  %v5850_v16 = vpop.eup %5849  ;;  %v7773_v2 = vsel %vm1686_vm3, %v3667_v63, %v3669_v40  ;;  %v2908_v42 = vmul.f32 %v2893_v34, %v2398_v56  ;;  %v2264_v10 = vsub.f32 %v8726_v44, %v7675_v21 }
 0x341   : > { %v7741_v50 = vmul.f32 0.0078125, %v2041_v43  ;;  %v2241_v59 = vmax.f32 %v2216_v24, 0.0  ;;  %v2342_v45 = vmul.f32 %v5850_v16, %v2267_v35  ;;  %v3204_v53 = vor.u32 %v3202_v32, %v3200_v9 }
 0x342   : > { %v7748_v52 = vsel %vm2565_vm2, %v4462_v15, %v4464_v3  ;;  %v7765_v15 = vsel %vm1686_vm3, %v3663_v49, %v3665_v36  ;;  %v2896_v21 = vrot.slane %v7665_v4, 2  ;;  %v5188_v63 = vpack.c.bf16 %v2908_v42, %v2908_v42  ;;  %v8728_v42 = vld [vmem:[#allocation23_spill] sm:$0xff] }
 0x343   : > { %5532 = vmatmul.mubr.bf16.gmra.mrb[80].mxu1 %v3201_v12  ;;  %v7762_v22 = vpop.permute.xlu0 %4528  ;;  %v2291_v6 = vadd.f32 1e-05, %v2241_v59  ;;  %v2193_v23 = vmul.f32 %v7741_v50, %v7741_v50  ;;  %v2371_v36 = vmul.f32 %v6102_v14, %v2342_v45  ;;  %v2894_v16 = vrot.slane %v7650_v13, 2 }
 0x344   : > { %5535 = vmatprep.mubr.msk.bf16.mxu1 %vm8666_vm14, %v8700_v39  ;;  %v7760_v20 = vld [vmem:[#allocation3 + $0x48] sm:$0xff]   ;;  %v2143_v27 = vpop.xlane.xlu1 %2142  ;;  %v4543_v34 = vrot.slane %v7762_v22, 4  ;;  %v2891_v13 = vsel %vm2038_vm9, %v2888_v41, %v2890_v47  ;;  %v2266_v45 = vsub.f32 %v8728_v42, %v7721_v19  ;;  %vm4758_vm12 = vcmask 23552  }
 0x345   : > { %5608 = vmatmul.mubr.bf16.gmra.mrb[140].mxu0 %v7760_v20  ;;  %v3206_v37 = vshll.u32 %v7760_v20, 16  ;;  %v2168_v54 = vmul.f32 0.0078125, %v2143_v27  ;;  %v3671_v25 = vrot.slane %v7760_v20, 1  ;;  %5853 = vrsqrt.f32 %v2291_v6 }
 0x346   : > { %5611 = vmatprep.mubr.msk.bf16.mxu0 %vm8666_vm14, %v8700_v39  ;;  %v2400_v27 = vadd.f32 %v6113_v17, %v2371_v36  ;;  %v2960_v6 = vshrl.u32 %v5188_v63, 16  ;;  %vm4751_vm6 = vcmask 15360   ;;  %vm4837_vm1 = vcmask 388099  }
 0x347   : > { %v7784_v30 = vrot.slane %v3206_v37, 1  ;;  %v2218_v29 = vsub.f32 %v2168_v54, %v2193_v23  ;;  %v4454_v12 = vpop.permute.xlu0 %4453  ;;  %v5852_v48 = vpop.eup %5851  ;;  %v7791_v26 = vsel %vm1686_vm3, %v3669_v40, %v3671_v25 }
 0x348   : > { %v4466_v5 = vrot.slane %v4454_v12, 6  ;;  %v7786_v1 = vpop.permute.xlu1 %4437  ;;  %v2339_v43 = vmul.f32 %v5852_v48, %v2264_v10 }
 0x349   : > { %v3209_v49 = vsel %vm1180_vm10, %v3204_v53, %v7784_v30  ;;  %v2243_v9 = vmax.f32 %v2218_v29, 0.0  ;;  %v2962_v53 = vrot.slane %v2960_v6, 7 }
 0x34a   : > { %v7798_v24 = vsel %vm2565_vm2, %v4464_v3, %v4466_v5  ;;  %v2368_v31 = vmul.f32 %v6102_v14, %v2339_v43  ;;  %v2897_v3 = vsel %vm2038_vm9, %v2894_v16, %v2896_v21 }
 0x34b   : > { %5536 = vmatmul.mubr.bf16.gmra.mrb[84].mxu1 %v3209_v49  ;;  %v2293_v40 = vadd.f32 1e-05, %v2243_v9  ;;  %v4533_v35 = vpop.permute.xlu0 %4532  ;;  %v2910_v54 = vmul.f32 %v2897_v3, %v2400_v27  ;;  %v2963_v9 = vshll.u32 %v5188_v63, 16  ;;  %v2949_v27 = vrot.slane %v7693_v58, 4 }
 0x34c   : > { %5539 = vmatprep.mubr.msk.bf16.mxu1 %vm8666_vm14, %v8700_v39  ;;  %v4545_v59 = vrot.slane %v4533_v35, 4  ;;  %v7805_v56 = vpop.permute.xlu1 %4516  ;;  %v2397_v32 = vadd.f32 %v6113_v17, %v2368_v31  ;;  %v8731_v35 = vld [vmem:[#allocation25_spill] sm:$0xff] }
 0x34d   : > { %5855 = vrsqrt.f32 %v2293_v40  ;;  %v5190_v48 = vpack.c.bf16 %v2910_v54, %v2910_v54  ;;  %v2895_v40 = vsel %vm2038_vm9, %v2892_v46, %v2894_v16  ;;  %v2268_v3 = vsub.f32 %v8731_v35, %v7741_v50 }
 0x34e   : > { %v7818_v22 = vsel %vm2522_vm5, %v4543_v34, %v4545_v59  ;;  %v2907_v37 = vmul.f32 %v2891_v13, %v2397_v32  ;;  %v2965_v63 = vor.u32 %v2963_v9, %v2962_v53  ;;  %v8614_v9 = vrot.slane %v7723_v28, 2 }
 0x34f   : > { %v7820_v23 = vpop.permute.xlu0 %4457  ;;  %v5854_v7 = vpop.eup %5853  ;;  %v2978_v54 = vshrl.u32 %v5190_v48, 16 }
 0x350   : > { %8727 = vst [vmem:[#allocation13_spill] sm:$0xff] %v7820_v23  ;;  %v8615_v44 = vrot.slane %v7820_v23, 6  ;;  %v7825_v60 = vpop.permute.xlu1 %4520  ;;  %v5187_v10 = vpack.c.bf16 %v2907_v37, %v2907_v37  ;;  %v2341_v41 = vmul.f32 %v5854_v7, %v2266_v45 }
 0x352   : > { %v7830_v47 = vsel %vm2565_vm2, %v4466_v5, %v8615_v44  ;;  %v2951_v29 = vshrl.u32 %v5187_v10, 16  ;;  %v2370_v43 = vmul.f32 %v6102_v14, %v2341_v41  ;;  %v2954_v31 = vshll.u32 %v5187_v10, 16 }
 0x353   : > { %v7832_v12 = vpop.permute.xlu0 %4536  ;;  %v2980_v10 = vrot.slane %v2978_v54, 7 }
 0x354   : > { %8729 = vst [vmem:[#allocation14_spill] sm:$0xff] %v7832_v12  ;;  %v8616_v19 = vrot.slane %v7832_v12, 4  ;;  %v7836_v49 = vpop.permute.xlu1 %4595  ;;  %v2953_v36 = vrot.slane %v2951_v29, 7  ;;  %v2399_v5 = vadd.f32 %v6113_v17, %v2370_v43  ;;  %v8744_v12 = vld [vmem:[#allocation9_spill] sm:$0xff] }
 0x355   : > { %8730 = vst [vmem:[#allocation22_spill] sm:$0xff] %v7836_v49 }
 0x356   : > { %v7847_v32 = vsel %vm2522_vm5, %v4545_v59, %v8616_v19  ;;  %v2956_v6 = vor.u32 %v2954_v31, %v2953_v36  ;;  %v2958_v37 = vrot.slane %v2953_v36, 4  ;;  %v2909_v55 = vmul.f32 %v2895_v40, %v2399_v5 }
 0x357   : > { %v5856_v13 = vpop.eup %5855  ;;  %v2981_v31 = vshll.u32 %v5190_v48, 16 }
 0x358   : > { %v2343_v42 = vmul.f32 %v5856_v13, %v2268_v3  ;;  %v7850_v46 = vpop.permute.xlu1 %4524  ;;  %v2957_v16 = vsel %vm6300_vm8, %v2949_v27, %v2956_v6  ;;  %v2966_v50 = vsel %vm6300_vm8, %v2958_v37, %v2965_v63  ;;  %v5189_v45 = vpack.c.bf16 %v2909_v55, %v2909_v55 }
 0x359   : > { %v8617_v59 = vrot.slane %v7850_v46, 4  ;;  %3005 = vst [vmem:[#allocation3 + $0x50] sm:$0xf] %v2957_v16  ;;  %3006 = vst [vmem:[#allocation3 + $0x54] sm:$0xf] %v2966_v50  ;;  %v2983_v3 = vor.u32 %v2981_v31, %v2980_v10 }
 0x35a   : > { %v2372_v58 = vmul.f32 %v6102_v14, %v2343_v42  ;;  %v2969_v41 = vshrl.u32 %v5189_v45, 16  ;;  %v2972_v5 = vshll.u32 %v5189_v45, 16  ;;  %v2967_v14 = vrot.slane %v2962_v53, 4 }
 0x35b   : > { %v7861_v7 = vsel %vm2522_vm5, %v8617_v59, %v4543_v34  ;;  %v3210_v53 = vshrl.u32 %v7760_v20, 16 }
 0x35c   : > { %v2401_v29 = vadd.f32 %v6113_v17, %v2372_v58  ;;  %v4604_v43 = vpop.permute.xlu1 %4603  ;;  %v2971_v40 = vrot.slane %v2969_v41, 7 }
 0x35d   : > { %v4620_v36 = vrot.slane %v4604_v43, 2  ;;  %v3212_v45 = vor.u32 %v3210_v53, %v7784_v30  ;;  %v3010_v43 = vld [vmem:[#allocation3 + $0x60] sm:$0xf] }
 0x35e   : > { %v2911_v35 = vmul.f32 %v2896_v21, %v2401_v29  ;;  %v2974_v13 = vor.u32 %v2972_v5, %v2971_v40  ;;  %v2976_v27 = vrot.slane %v2971_v40, 4  ;;  %v2985_v29 = vrot.slane %v2980_v10, 4 }
 0x35f   : > { %v7870_v34 = vsel %vm2038_vm9, %v8614_v9, %v4620_v36 }
 0x360   : > { %8732 = vst [vmem:[#allocation15_spill] sm:$0xff] %v7870_v34  ;;  %v5191_v17 = vpack.c.bf16 %v2911_v35, %v2911_v35  ;;  %v7872_v63 = vpop.permute.xlu1 %4373  ;;  %v5800_v6 = vld [vmem:[#allocation3 + $0x50] sm:$0xff]   ;;  %v2975_v48 = vsel %vm6300_vm8, %v2967_v14, %v2974_v13  ;;  %v2984_v4 = vsel %vm6300_vm8, %v2976_v27, %v2983_v3 }
 0x361   : > { %3007 = vst [vmem:[#allocation3 + $0x58] sm:$0xf] %v2975_v48  ;;  %3008 = vst [vmem:[#allocation3 + $0x5c] sm:$0xf] %v2984_v4  ;;  %5612 = vmatmul.mubr.bf16.gmra.mrb[144].mxu0 %v5800_v6  ;;  %v3214_v37 = vshll.u32 %v5800_v6, 16  ;;  %v3673_v54 = vrot.slane %v5800_v6, 1 }
 0x362   : > { %v2987_v21 = vshrl.u32 %v5191_v17, 16  ;;  %v2990_v42 = vshll.u32 %v5191_v17, 16  ;;  %5615 = vmatprep.mubr.msk.bf16.mxu0 %vm8666_vm14, %v8700_v39  ;;  %v3218_v14 = vshrl.u32 %v5800_v6, 16 }
 0x363   : > { %v3216_v58 = vrot.slane %v3214_v37, 1  ;;  %v7885_v41 = vsel %vm1686_vm3, %v3671_v25, %v3673_v54 }
 0x364   : > { %v2989_v55 = vrot.slane %v2987_v21, 7  ;;  %v4608_v16 = vpop.permute.xlu1 %4607 }
 0x365   : > { %v4622_v50 = vrot.slane %v4608_v16, 2  ;;  %v3217_v5 = vsel %vm1180_vm10, %v3212_v45, %v3216_v58  ;;  %v3220_v8 = vor.u32 %v3218_v14, %v3216_v58 }
 0x366   : > { %v2992_v31 = vor.u32 %v2990_v42, %v2989_v55  ;;  %5540 = vmatmul.mubr.bf16.gmra.mrb[88].mxu1 %v3217_v5 }
 0x367   : > { %v7890_v40 = vsel %vm2038_vm9, %v4620_v36, %v4622_v50  ;;  %5543 = vmatprep.mubr.msk.bf16.mxu1 %vm8666_vm14, %v8700_v39 }
 0x368   : > { %8734 = vst [vmem:[#allocation24_spill] sm:$0xff] %v7890_v40  ;;  %v2993_v30 = vsel %vm6300_vm8, %v2985_v29, %v2992_v31  ;;  %v7895_v35 = vpop.permute.xlu1 %4378  ;;  %v5801_v25 = vld [vmem:[#allocation3 + $0x58] sm:$0xff]   ;;  %vm4491_vm8 = vcmask 1047554  }
 0x369   : > { %v3011_v20 = vsel %vm3009_vm4, %v2993_v30, %v3010_v43  ;;  %5616 = vmatmul.mubr.bf16.gmra.mrb[148].mxu0 %v5801_v25  ;;  %v3222_v36 = vshll.u32 %v5801_v25, 16  ;;  %v3675_v3 = vrot.slane %v5801_v25, 1  ;;  %v3226_v53 = vshrl.u32 %v5801_v25, 16 }
 0x36a   : > { %3012 = vst [vmem:[#allocation3 + $0x60] sm:$0xf] %v3011_v20  ;;  %5619 = vmatprep.mubr.msk.bf16.mxu0 %vm8666_vm14, %v8700_v39 }
 0x36b   : > { %v3224_v27 = vrot.slane %v3222_v36, 1  ;;  %v3676_v17 = vsel %vm1686_vm3, %v3673_v54, %v3675_v3 }
 0x36c   : > { %v7899_v10 = vpop.permute.xlu1 %4611 }
 0x36d   : > { %8735 = vst [vmem:[#allocation16_spill] sm:$0xff] %v7899_v10  ;;  %v8613_v13 = vrot.slane %v7899_v10, 2  ;;  %v3225_v4 = vsel %vm1180_vm10, %v3220_v8, %v3224_v27  ;;  %v3228_v55 = vor.u32 %v3226_v53, %v3224_v27 }
 0x36e   : > { %5544 = vmatmul.mubr.bf16.gmra.mrb[92].mxu1 %v3225_v4 }
 0x36f   : > { %v7908_v48 = vsel %vm2038_vm9, %v4622_v50, %v8613_v13  ;;  %5547 = vmatprep.mubr.msk.bf16.mxu1 %vm8666_vm14, %v8700_v39 }
 0x370   : > { %8736 = vst [vmem:[#allocation17_spill] sm:$0xff] %v7908_v48 }
 0x371   : > { %v5803_v6 = vld [vmem:[#allocation3 + $0x60] ss:$0 sps:$4 sm:$0x77]  }
 0x372   : > { %v7913_v21 = vld [vmem:[#allocation3 + $0x60] ss:$0 sps:$4 sm:$0xff]   ;;  %5620 = vmatmul.mubr.bf16.gmra.mrb[152].mxu0 %v5803_v6 }
 0x373   : > { %v3230_v37 = vshll.u32 %v7913_v21, 16  ;;  %v3677_v54 = vrot.slane %v7913_v21, 1  ;;  %v3234_v45 = vshrl.u32 %v7913_v21, 16 }
 0x375   : > { %v3232_v42 = vrot.slane %v3230_v37, 1  ;;  %v3678_v16 = vsel %vm1686_vm3, %v3675_v3, %v3677_v54  ;;  %vm4744_vm3 = vcmask 7168  }
 0x377   : > { %v3233_v50 = vsel %vm1180_vm10, %v3228_v55, %v3232_v42  ;;  %v3236_v58 = vor.u32 %v3234_v45, %v3232_v42  ;;  %vm4649_vm10 = vcmask 1047558  }
 0x378   : > { %5548 = vmatmul.mubr.bf16.gmra.mrb[96].mxu1 %v3233_v50 }
 0x379   : > { %5551 = vmatprep.mubr.msk.bf16.mxu1 %vm8666_vm14, %v8700_v39 }
 0x380   : > { %5552 = vmatmul.mubr.bf16.gmra.mrb[100].mxu1 %v3236_v58 }
 0x381   : > { %5639 = vmatprep.mubr.msk.bf16.mxu1 %vm8666_vm14, %v8700_v39 }
 0x388   : > { %5640 = vmatmul.mubr.bf16.vlgmr.msra.gmra.mrb[104].mxu1 %v7699_v33 }
 0x389   : > { %5643 = vmatprep.mubr.msk.bf16.mxu1 %vm8666_vm14, %v8700_v39 }
 0x390   : > { %5644 = vmatmul.mubr.bf16.gmra.mrb[108].mxu1 %v7702_v38 }
 0x391   : > { %5647 = vmatprep.mubr.msk.bf16.mxu1 %vm8666_vm14, %v8700_v39 }
 0x398   : > { %5648 = vmatmul.mubr.bf16.gmra.mrb[112].mxu1 %v7733_v62 }
 0x399   : > { %5651 = vmatprep.mubr.msk.bf16.mxu1 %vm8666_vm14, %v8700_v39 }
 0x3a0   : > { %5652 = vmatmul.mubr.bf16.gmra.mrb[116].mxu1 %v7736_v11 }
 0x3a1   : > { %5655 = vmatprep.mubr.msk.bf16.mxu1 %vm8666_vm14, %v8700_v39 }
 0x3a8   : > { %5656 = vmatmul.mubr.bf16.gmra.mrb[120].mxu1 %v7751_v57 }
 0x3a9   : > { %5659 = vmatprep.mubr.msk.bf16.mxu1 %vm8666_vm14, %v8700_v39 }
 0x3b0   : > { %5660 = vmatmul.mubr.bf16.gmra.mrb[124].mxu1 %v7765_v15 }
 0x3b1   : > { %5663 = vmatprep.mubr.msk.bf16.mxu1 %vm8666_vm14, %v8700_v39 }
 0x3b8   : > { %5664 = vmatmul.mubr.bf16.gmra.mrb[128].mxu1 %v7770_v51 }
 0x3b9   : > { %5667 = vmatprep.mubr.msk.bf16.mxu1 %vm8666_vm14, %v8700_v39 }
 0x3c0   : > { %5668 = vmatmul.mubr.bf16.gmra.mrb[132].mxu1 %v7773_v2 }
 0x3c1   : > { %5671 = vmatprep.mubr.msk.bf16.mxu1 %vm8666_vm14, %v8700_v39 }
 0x3c7   : > { %v3532_v33 = vpop.f32.mrb[104].mxu0 }
 0x3c8   : > { %v5573_v38 = vpop.f32.mrb[105].mxu0  ;;  %5672 = vmatmul.mubr.bf16.gmra.mrb[136].mxu1 %v7791_v26 }
 0x3c9   : > { %v3535_v62 = vpop.f32.mrb[106].mxu0  ;;  %5675 = vmatprep.mubr.msk.bf16.mxu1 %vm8666_vm14, %v8700_v39 }
 0x3ca   : > { %v5574_v11 = vpop.f32.mrb[107].mxu0 }
 0x3cf   : > { %v3540_v57 = vpop.f32.mrb[108].mxu0 }
 0x3d0   : > { %v5577_v15 = vpop.f32.mrb[109].mxu0  ;;  %5676 = vmatmul.mubr.bf16.gmra.mrb[140].mxu1 %v7885_v41 }
 0x3d1   : > { %v3543_v51 = vpop.f32.mrb[110].mxu0  ;;  %5679 = vmatprep.mubr.msk.bf16.mxu1 %vm8666_vm14, %v8700_v39 }
 0x3d2   : > { %v5578_v29 = vpop.f32.mrb[111].mxu0 }
 0x3d6   : > { %v3332_v2 = vpop.f32.mrb[52].mxu1 }
 0x3d7   : > { %v7956_v43 = vadd.f32 %v3532_v33, %v3332_v2  ;;  %v5505_v31 = vpop.f32.mrb[53].mxu1 }
 0x3d8   : > { %v3335_v5 = vpop.f32.mrb[54].mxu1  ;;  %v3548_v30 = vpop.f32.mrb[112].mxu0  ;;  %5680 = vmatmul.mubr.bf16.gmra.mrb[144].mxu1 %v3676_v17 }
 0x3d9   : > { %v7958_v26 = vadd.f32 %v3535_v62, %v3335_v5  ;;  %v5506_v20 = vpop.f32.mrb[55].mxu1  ;;  %v5581_v25 = vpop.f32.mrb[113].mxu0  ;;  %5683 = vmatprep.mubr.msk.bf16.mxu1 %vm8666_vm14, %v8700_v39 }
 0x3da   : > { %v3551_v14 = vpop.f32.mrb[114].mxu0 }
 0x3db   : > { %v5582_v36 = vpop.f32.mrb[115].mxu0 }
 0x3e0   : > { %v3556_v41 = vpop.f32.mrb[116].mxu0  ;;  %5684 = vmatmul.mubr.bf16.gmra.mrb[148].mxu1 %v3678_v16 }
 0x3e1   : > { %v5585_v3 = vpop.f32.mrb[117].mxu0  ;;  %5687 = vmatprep.mubr.msk.bf16.mxu1 %vm8666_vm14, %v8700_v39  ;;  %vm4570_vm14 = vcmask 1047556  }
 0x3e2   : > { %v3559_v27 = vpop.f32.mrb[118].mxu0 }
 0x3e3   : > { %v3340_v8 = vpop.f32.mrb[56].mxu1  ;;  %v5586_v53 = vpop.f32.mrb[119].mxu0 }
 0x3e4   : > { %v7962_v4 = vadd.f32 %v3540_v57, %v3340_v8  ;;  %v5509_v6 = vpop.f32.mrb[57].mxu1 }
 0x3e5   : > { %v3343_v37 = vpop.f32.mrb[58].mxu1 }
 0x3e6   : > { %v7966_v55 = vadd.f32 %v3543_v51, %v3343_v37  ;;  %v5510_v17 = vpop.f32.mrb[59].mxu1 }
 0x3e8   : > { %v3564_v42 = vpop.f32.mrb[120].mxu0  ;;  %5688 = vmatmul.mubr.bf16.gmra.mrb[152].mxu1 %v3677_v54 }
 0x3e9   : > { %v5589_v50 = vpop.f32.mrb[121].mxu0 }
 0x3ea   : > { %v3567_v45 = vpop.f32.mrb[122].mxu0 }
 0x3eb   : > { %v5590_v58 = vpop.f32.mrb[123].mxu0 }
 0x3ee   : > { %v3348_v33 = vpop.f32.mrb[60].mxu1 }
 0x3ef   : > { %v7970_v16 = vadd.f32 %v3548_v30, %v3348_v33  ;;  %v5513_v38 = vpop.f32.mrb[61].mxu1 }
 0x3f0   : > { %v3351_v62 = vpop.f32.mrb[62].mxu1  ;;  %v3572_v39 = vpop.f32.mrb[124].mxu0 }
 0x3f1   : > { %v7972_v11 = vadd.f32 %v3551_v14, %v3351_v62  ;;  %v5514_v57 = vpop.f32.mrb[63].mxu1  ;;  %v5593_v15 = vpop.f32.mrb[125].mxu0 }
 0x3f2   : > { %v3575_v51 = vpop.f32.mrb[126].mxu0 }
 0x3f3   : > { %v5594_v29 = vpop.f32.mrb[127].mxu0 }
 0x3f6   : > { %v3356_v2 = vpop.f32.mrb[64].mxu1 }
 0x3f7   : > { %v7974_v31 = vadd.f32 %v3556_v41, %v3356_v2  ;;  %v5517_v5 = vpop.f32.mrb[65].mxu1 }
 0x3f8   : > { %v3359_v20 = vpop.f32.mrb[66].mxu1  ;;  %v3580_v25 = vpop.f32.mrb[128].mxu0 }
 0x3f9   : > { %v7976_v21 = vadd.f32 %v3559_v27, %v3359_v20  ;;  %v5518_v54 = vpop.f32.mrb[67].mxu1  ;;  %v5597_v30 = vpop.f32.mrb[129].mxu0 }
 0x3fa   : > { %v3583_v36 = vpop.f32.mrb[130].mxu0 }
 0x3fb   : > { %v5598_v3 = vpop.f32.mrb[131].mxu0 }
 0x3fe   : > { %v3364_v8 = vpop.f32.mrb[68].mxu1 }
 0x3ff   : > { %v7978_v14 = vadd.f32 %v3564_v42, %v3364_v8  ;;  %v5521_v6 = vpop.f32.mrb[69].mxu1 }
 0x400   : > { %v3367_v53 = vpop.f32.mrb[70].mxu1  ;;  %v3588_v50 = vpop.f32.mrb[132].mxu0 }
 0x401   : > { %v7980_v37 = vadd.f32 %v3567_v45, %v3367_v53  ;;  %v5522_v17 = vpop.f32.mrb[71].mxu1  ;;  %v5601_v41 = vpop.f32.mrb[133].mxu0 }
 0x402   : > { %v3591_v58 = vpop.f32.mrb[134].mxu0 }
 0x403   : > { %v5602_v33 = vpop.f32.mrb[135].mxu0 }
 0x406   : > { %v3372_v38 = vpop.f32.mrb[72].mxu1 }
 0x407   : > { %v7982_v27 = vadd.f32 %v3572_v39, %v3372_v38  ;;  %v5525_v62 = vpop.f32.mrb[73].mxu1 }
 0x408   : > { %v3375_v57 = vpop.f32.mrb[74].mxu1 }
 0x409   : > { %v7984_v15 = vadd.f32 %v3575_v51, %v3375_v57  ;;  %v5526_v29 = vpop.f32.mrb[75].mxu1 }
 0x40e   : > { %v3380_v2 = vpop.f32.mrb[76].mxu1  ;;  %v3596_v20 = vpop.f32.mrb[136].mxu0 }
 0x40f   : > { %v7986_v42 = vadd.f32 %v3580_v25, %v3380_v2  ;;  %v5529_v5 = vpop.f32.mrb[77].mxu1  ;;  %v5605_v54 = vpop.f32.mrb[137].mxu0 }
 0x410   : > { %v3383_v45 = vpop.f32.mrb[78].mxu1  ;;  %v3599_v8 = vpop.f32.mrb[138].mxu0 }
 0x411   : > { %v7988_v30 = vadd.f32 %v3583_v36, %v3383_v45  ;;  %v5530_v3 = vpop.f32.mrb[79].mxu1  ;;  %v5606_v6 = vpop.f32.mrb[139].mxu0 }
 0x416   : > { %v3388_v53 = vpop.f32.mrb[80].mxu1 }
 0x417   : > { %v7990_v39 = vadd.f32 %v3588_v50, %v3388_v53  ;;  %v5533_v17 = vpop.f32.mrb[81].mxu1 }
 0x418   : > { %v3391_v41 = vpop.f32.mrb[82].mxu1  ;;  %v3604_v38 = vpop.f32.mrb[140].mxu0 }
 0x419   : > { %v7992_v51 = vadd.f32 %v3591_v58, %v3391_v41  ;;  %v5534_v33 = vpop.f32.mrb[83].mxu1  ;;  %v5609_v25 = vpop.f32.mrb[141].mxu0 }
 0x41a   : > { %v3607_v62 = vpop.f32.mrb[142].mxu0 }
 0x41b   : > { %v5610_v57 = vpop.f32.mrb[143].mxu0 }
 0x41e   : > { %v3396_v29 = vpop.f32.mrb[84].mxu1 }
 0x41f   : > { %v7994_v2 = vadd.f32 %v3596_v20, %v3396_v29  ;;  %v5537_v36 = vpop.f32.mrb[85].mxu1 }
 0x420   : > { %v3399_v5 = vpop.f32.mrb[86].mxu1 }
 0x421   : > { %v7996_v45 = vadd.f32 %v3599_v8, %v3399_v5  ;;  %v5538_v54 = vpop.f32.mrb[87].mxu1 }
 0x434   : > { %v3612_v3 = vpop.f32.mrb[144].mxu0 }
 0x435   : > { %v5613_v50 = vpop.f32.mrb[145].mxu0 }
 0x436   : > { %v3615_v6 = vpop.f32.mrb[146].mxu0 }
 0x437   : > { %v5614_v53 = vpop.f32.mrb[147].mxu0 }
 0x439   : > { %v3404_v17 = vpop.f32.mrb[88].mxu1 }
 0x43a   : > { %v7998_v58 = vadd.f32 %v3604_v38, %v3404_v17  ;;  %v5541_v41 = vpop.f32.mrb[89].mxu1 }
 0x43b   : > { %v3407_v33 = vpop.f32.mrb[90].mxu1 }
 0x43c   : > { %v8000_v25 = vadd.f32 %v3607_v62, %v3407_v33  ;;  %v5542_v57 = vpop.f32.mrb[91].mxu1  ;;  %v3620_v13 = vpop.f32.mrb[148].mxu0 }
 0x43d   : > { %v5617_v20 = vpop.f32.mrb[149].mxu0 }
 0x43e   : > { %v3623_v29 = vpop.f32.mrb[150].mxu0 }
 0x43f   : > { %v5618_v36 = vpop.f32.mrb[151].mxu0 }
 0x441   : > { %v3412_v9 = vpop.f32.mrb[92].mxu1 }
 0x442   : > { %v8002_v8 = vadd.f32 %v3612_v3, %v3412_v9  ;;  %v5545_v5 = vpop.f32.mrb[93].mxu1 }
 0x443   : > { %v3415_v54 = vpop.f32.mrb[94].mxu1 }
 0x444   : > { %v8004_v50 = vadd.f32 %v3615_v6, %v3415_v54  ;;  %v5546_v53 = vpop.f32.mrb[95].mxu1 }
 0x445   : > { %v3628_v44 = vpop.f32.mrb[152].mxu0 }
 0x446   : > { %v5621_v38 = vpop.f32.mrb[153].mxu0 }
 0x447   : > { %v3631_v17 = vpop.f32.mrb[154].mxu0 }
 0x448   : > { %v5622_v41 = vpop.f32.mrb[155].mxu0 }
 0x449   : > { %v8737_v41 = vld [vmem:[#allocation8_spill] sm:$0xff] }
 0x44b   : > { %v3420_v19 = vpop.f32.mrb[96].mxu1 }
 0x44c   : > { %v8006_v62 = vadd.f32 %v3620_v13, %v3420_v19  ;;  %v5549_v33 = vpop.f32.mrb[97].mxu1 }
 0x44d   : > { %v3423_v57 = vpop.f32.mrb[98].mxu1 }
 0x44e   : > { %v8008_v20 = vadd.f32 %v3623_v29, %v3423_v57  ;;  %v5550_v36 = vpop.f32.mrb[99].mxu1 }
 0x453   : > { %v3428_v59 = vpop.f32.mrb[100].mxu1 }
 0x454   : > { %v8010_v9 = vadd.f32 %v3628_v44, %v3428_v59  ;;  %v5553_v3 = vpop.f32.mrb[101].mxu1 }
 0x455   : > { %v3431_v5 = vpop.f32.mrb[102].mxu1 }
 0x456   : > { %v5554_v6 = vpop.f32.mrb[103].mxu1 }
 0x45b   : > { %v3774_v54 = vpop.f32.mrb[104].mxu1 }
 0x45c   : > { %v3876_v53 = vadd.f32 %v3774_v54, %v7956_v43  ;;  %v5641_v38 = vpop.f32.mrb[105].mxu1 }
 0x45d   : > { %v3777_v17 = vpop.f32.mrb[106].mxu1 }
 0x45e   : > { %v3905_v0 = vadd.f32 %v8737_v41, %v3876_v53  ;;  %v3877_v19 = vadd.f32 %v3777_v17, %v7958_v26  ;;  %v5642_v13 = vpop.f32.mrb[107].mxu1 }
 0x460   : > { %v8015_v33 = vmax.f32 %v3905_v0, 0.0  ;;  %v3906_v29 = vadd.f32 %v8737_v41, %v3877_v19 }
 0x462   : > { %3955 = vadd.xlane.f32.xlu1 %v8015_v33  ;;  %v8019_v59 = vmax.f32 %v3906_v29, 0.0  ;;  %v4031_v0 = vmul.f32 %v8015_v33, %v8015_v33 }
 0x463   : > { %v3782_v44 = vpop.f32.mrb[108].mxu1 }
 0x464   : > { %v3878_v57 = vadd.f32 %v3782_v44, %v7962_v4  ;;  %v5645_v36 = vpop.f32.mrb[109].mxu1 }
 0x465   : > { %v3785_v43 = vpop.f32.mrb[110].mxu1 }
 0x466   : > { %v3879_v3 = vadd.f32 %v3785_v43, %v7966_v55  ;;  %v5646_v5 = vpop.f32.mrb[111].mxu1  ;;  %3957 = vadd.xlane.f32.xlu1 %v8019_v59  ;;  %v3907_v53 = vadd.f32 %v8737_v41, %v3878_v57  ;;  %v4032_v55 = vmul.f32 %v8019_v59, %v8019_v59 }
 0x468   : > { %v3908_v26 = vadd.f32 %v8737_v41, %v3879_v3  ;;  %v8037_v36 = vmax.f32 %v3907_v53, 0.0 }
 0x46a   : > { %v8027_v6 = vmax.f32 %v3908_v26, 0.0  ;;  %4056 = vadd.xlane.f32.xlu1 %v4031_v0 }
 0x46b   : > { %v3790_v54 = vpop.f32.mrb[112].mxu1 }
 0x46c   : > { %v3880_v4 = vadd.f32 %v3790_v54, %v7970_v16  ;;  %v5649_v38 = vpop.f32.mrb[113].mxu1  ;;  %v4034_v17 = vmul.f32 %v8027_v6, %v8027_v6 }
 0x46d   : > { %v3793_v19 = vpop.f32.mrb[114].mxu1  ;;  %v4033_v38 = vmul.f32 %v8037_v36, %v8037_v36 }
 0x46e   : > { %v3909_v13 = vadd.f32 %v8737_v41, %v3880_v4  ;;  %v3881_v29 = vadd.f32 %v3793_v19, %v7972_v11  ;;  %v5650_v44 = vpop.f32.mrb[115].mxu1  ;;  %4058 = vadd.xlane.f32.xlu1 %v4032_v55  ;;  %4062 = vadd.xlane.f32.xlu0 %v4034_v17 }
 0x470   : > { %v8039_v57 = vmax.f32 %v3909_v13, 0.0  ;;  %v3910_v16 = vadd.f32 %v8737_v41, %v3881_v29 }
 0x472   : > { %3959 = vadd.xlane.f32.xlu1 %v8037_v36  ;;  %3963 = vadd.xlane.f32.xlu0 %v8039_v57  ;;  %v8044_v3 = vmax.f32 %v3910_v16, 0.0  ;;  %v4035_v11 = vmul.f32 %v8039_v57, %v8039_v57 }
 0x473   : > { %v3798_v43 = vpop.f32.mrb[116].mxu1 }
 0x474   : > { %v3882_v5 = vadd.f32 %v3798_v43, %v7974_v31  ;;  %v5653_v26 = vpop.f32.mrb[117].mxu1  ;;  %v4036_v55 = vmul.f32 %v8044_v3, %v8044_v3 }
 0x475   : > { %v3801_v0 = vpop.f32.mrb[118].mxu1 }
 0x476   : > { %v3883_v54 = vadd.f32 %v3801_v0, %v7976_v21  ;;  %v5654_v53 = vpop.f32.mrb[119].mxu1  ;;  %3961 = vadd.xlane.f32.xlu1 %v8027_v6  ;;  %4064 = vadd.xlane.f32.xlu0 %v4035_v11  ;;  %v3911_v4 = vadd.f32 %v8737_v41, %v3882_v5 }
 0x478   : > { %v8056_v17 = vmax.f32 %v3911_v4, 0.0  ;;  %v3912_v19 = vadd.f32 %v8737_v41, %v3883_v54 }
 0x47a   : > { %4060 = vadd.xlane.f32.xlu1 %v4033_v38  ;;  %4066 = vadd.xlane.f32.xlu0 %v4036_v55  ;;  %v8063_v43 = vmax.f32 %v3912_v19, 0.0 }
 0x47b   : > { %v3806_v31 = vpop.f32.mrb[120].mxu1 }
 0x47c   : > { %v3884_v21 = vadd.f32 %v3806_v31, %v7978_v14  ;;  %v5657_v13 = vpop.f32.mrb[121].mxu1  ;;  %v4037_v14 = vmul.f32 %v8056_v17, %v8056_v17  ;;  %v4038_v38 = vmul.f32 %v8063_v43, %v8063_v43 }
 0x47d   : > { %v3809_v29 = vpop.f32.mrb[122].mxu1 }
 0x47e   : > { %v3885_v44 = vadd.f32 %v3809_v29, %v7980_v37  ;;  %v5658_v16 = vpop.f32.mrb[123].mxu1  ;;  %3965 = vadd.xlane.f32.xlu1 %v8044_v3  ;;  %3967 = vadd.xlane.f32.xlu0 %v8056_v17  ;;  %v3913_v53 = vadd.f32 %v8737_v41, %v3884_v21 }
 0x480   : > { %v8076_v31 = vmax.f32 %v3913_v53, 0.0  ;;  %v3914_v19 = vadd.f32 %v8737_v41, %v3885_v44 }
 0x482   : > { %3969 = vadd.xlane.f32.xlu1 %v8063_v43 }
 0x483   : > { %v3814_v5 = vpop.f32.mrb[124].mxu1 }
 0x484   : > { %v3886_v26 = vadd.f32 %v3814_v5, %v7982_v27  ;;  %v5661_v11 = vpop.f32.mrb[125].mxu1 }
 0x485   : > { %v3817_v0 = vpop.f32.mrb[126].mxu1 }
 0x486   : > { %v3887_v54 = vadd.f32 %v3817_v0, %v7984_v15  ;;  %v5662_v37 = vpop.f32.mrb[127].mxu1  ;;  %4068 = vadd.xlane.f32.xlu1 %v4037_v14  ;;  %v8085_v14 = vmax.f32 %v3914_v19, 0.0  ;;  %v3915_v19 = vadd.f32 %v8737_v41, %v3886_v26 }
 0x488   : > { %v3916_v4 = vadd.f32 %v8737_v41, %v3887_v54 }
 0x48a   : > { %v8074_v55 = vmax.f32 %v3916_v4, 0.0  ;;  %4070 = vadd.xlane.f32.xlu1 %v4038_v38 }
 0x48b   : > { %v3822_v27 = vpop.f32.mrb[128].mxu1 }
 0x48c   : > { %v3888_v13 = vadd.f32 %v3822_v27, %v7986_v42  ;;  %v5665_v15 = vpop.f32.mrb[129].mxu1  ;;  %v4042_v29 = vmul.f32 %v8074_v55, %v8074_v55 }
 0x48d   : > { %v3825_v21 = vpop.f32.mrb[130].mxu1 }
 0x48e   : > { %v3917_v16 = vadd.f32 %v8737_v41, %v3888_v13  ;;  %v3889_v5 = vadd.f32 %v3825_v21, %v7988_v30  ;;  %v5666_v11 = vpop.f32.mrb[131].mxu1  ;;  %3971 = vadd.xlane.f32.xlu1 %v8076_v31  ;;  %4078 = vadd.xlane.f32.xlu0 %v4042_v29  ;;  %v4039_v30 = vmul.f32 %v8076_v31, %v8076_v31  ;;  %v8104_v21 = vmax.f32 %v3915_v19, 0.0 }
 0x490   : > { %v8087_v0 = vmax.f32 %v3917_v16, 0.0 }
 0x492   : > { %3973 = vadd.xlane.f32.xlu1 %v8085_v14  ;;  %v4043_v42 = vmul.f32 %v8087_v0, %v8087_v0 }
 0x493   : > { %v3830_v44 = vpop.f32.mrb[132].mxu1 }
 0x494   : > { %v3890_v54 = vadd.f32 %v3830_v44, %v7990_v39  ;;  %v5669_v37 = vpop.f32.mrb[133].mxu1  ;;  %4080 = vadd.xlane.f32.xlu0 %v4043_v42  ;;  %v4040_v39 = vmul.f32 %v8085_v14, %v8085_v14 }
 0x495   : > { %v3833_v53 = vpop.f32.mrb[134].mxu1 }
 0x496   : > { %v3919_v4 = vadd.f32 %v8737_v41, %v3890_v54  ;;  %v3891_v38 = vadd.f32 %v3833_v53, %v7992_v51  ;;  %v5670_v27 = vpop.f32.mrb[135].mxu1  ;;  %4072 = vadd.xlane.f32.xlu1 %v4039_v30 }
 0x498   : > { %v8098_v13 = vmax.f32 %v3919_v4, 0.0  ;;  %v3920_v15 = vadd.f32 %v8737_v41, %v3891_v38 }
 0x49a   : > { %4074 = vadd.xlane.f32.xlu1 %v4040_v39  ;;  %3983 = vadd.xlane.f32.xlu0 %v8098_v13  ;;  %v8106_v16 = vmax.f32 %v3920_v15, 0.0  ;;  %v4045_v54 = vmul.f32 %v8098_v13, %v8098_v13  ;;  %v3918_v15 = vadd.f32 %v8737_v41, %v3889_v5 }
 0x49b   : > { %v3838_v29 = vpop.f32.mrb[136].mxu1 }
 0x49c   : > { %v3892_v51 = vadd.f32 %v3838_v29, %v7994_v2  ;;  %v5673_v11 = vpop.f32.mrb[137].mxu1  ;;  %v4046_v4 = vmul.f32 %v8106_v16, %v8106_v16 }
 0x49d   : > { %v3841_v42 = vpop.f32.mrb[138].mxu1 }
 0x49e   : > { %v3893_v26 = vadd.f32 %v3841_v42, %v7996_v45  ;;  %v5674_v44 = vpop.f32.mrb[139].mxu1  ;;  %3975 = vadd.xlane.f32.xlu1 %v8104_v21  ;;  %3985 = vadd.xlane.f32.xlu0 %v8106_v16  ;;  %v3921_v30 = vadd.f32 %v8737_v41, %v3892_v51  ;;  %v4041_v45 = vmul.f32 %v8104_v21, %v8104_v21  ;;  %v8128_v51 = vmax.f32 %v3918_v15, 0.0 }
 0x4a0   : > { %v8123_v39 = vmax.f32 %v3921_v30, 0.0  ;;  %v3922_v29 = vadd.f32 %v8737_v41, %v3893_v26  ;;  %v4044_v30 = vmul.f32 %v8128_v51, %v8128_v51 }
 0x4a2   : > { %3977 = vadd.xlane.f32.xlu1 %v8074_v55  ;;  %4084 = vadd.xlane.f32.xlu0 %v4045_v54  ;;  %v8130_v11 = vmax.f32 %v3922_v29, 0.0 }
 0x4a3   : > { %v3846_v37 = vpop.f32.mrb[140].mxu1 }
 0x4a4   : > { %v3894_v2 = vadd.f32 %v3846_v37, %v7998_v58  ;;  %v5677_v53 = vpop.f32.mrb[141].mxu1 }
 0x4a5   : > { %v3849_v38 = vpop.f32.mrb[142].mxu1  ;;  %v4047_v53 = vmul.f32 %v8123_v39, %v8123_v39 }
 0x4a6   : > { %v3895_v27 = vadd.f32 %v3849_v38, %v8000_v25  ;;  %v5678_v19 = vpop.f32.mrb[143].mxu1  ;;  %4076 = vadd.xlane.f32.xlu1 %v4041_v45  ;;  %4086 = vadd.xlane.f32.xlu0 %v4046_v4  ;;  %v3923_v26 = vadd.f32 %v8737_v41, %v3894_v2  ;;  %v4048_v2 = vmul.f32 %v8130_v11, %v8130_v11 }
 0x4a8   : > { %v3924_v37 = vadd.f32 %v8737_v41, %v3895_v27  ;;  %v8142_v45 = vmax.f32 %v3923_v26, 0.0 }
 0x4aa   : > { %3979 = vadd.xlane.f32.xlu1 %v8087_v0  ;;  %3987 = vadd.xlane.f32.xlu0 %v8123_v39 }
 0x4ab   : > { %v3854_v58 = vpop.f32.mrb[144].mxu1 }
 0x4ac   : > { %v3896_v25 = vadd.f32 %v3854_v58, %v8002_v8  ;;  %v5681_v42 = vpop.f32.mrb[145].mxu1 }
 0x4ad   : > { %v3857_v44 = vpop.f32.mrb[146].mxu1  ;;  %v4049_v42 = vmul.f32 %v8142_v45, %v8142_v45 }
 0x4ae   : > { %v3897_v54 = vadd.f32 %v3857_v44, %v8004_v50  ;;  %v5682_v5 = vpop.f32.mrb[147].mxu1  ;;  %3981 = vadd.xlane.f32.xlu1 %v8128_v51  ;;  %3989 = vadd.xlane.f32.xlu0 %v8130_v11  ;;  %v8144_v50 = vmax.f32 %v3924_v37, 0.0 }
 0x4b0   : > { %v4050_v44 = vmul.f32 %v8144_v50, %v8144_v50 }
 0x4b2   : > { %4082 = vadd.xlane.f32.xlu1 %v4044_v30  ;;  %4088 = vadd.xlane.f32.xlu0 %v4047_v53 }
 0x4b3   : > { %v3862_v8 = vpop.f32.mrb[148].mxu1 }
 0x4b4   : > { %v3898_v4 = vadd.f32 %v3862_v8, %v8006_v62  ;;  %v5685_v38 = vpop.f32.mrb[149].mxu1 }
 0x4b5   : > { %v3865_v27 = vpop.f32.mrb[150].mxu1 }
 0x4b6   : > { %v3899_v19 = vadd.f32 %v3865_v27, %v8008_v20  ;;  %v5686_v15 = vpop.f32.mrb[151].mxu1  ;;  %4090 = vadd.xlane.f32.xlu1 %v4048_v2  ;;  %3993 = vadd.xlane.f32.xlu0 %v8144_v50  ;;  %v3927_v29 = vadd.f32 %v8737_v41, %v3898_v4  ;;  %v3925_v20 = vadd.f32 %v8737_v41, %v3896_v25 }
 0x4b7   : > { %v3926_v2 = vadd.f32 %v8737_v41, %v3897_v54 }
 0x4b8   : > { %v3928_v58 = vadd.f32 %v8737_v41, %v3899_v19  ;;  %v8159_v5 = vmax.f32 %v3927_v29, 0.0  ;;  %v8166_v38 = vmax.f32 %v3925_v20, 0.0 }
 0x4ba   : > { %3991 = vadd.xlane.f32.xlu1 %v8142_v45  ;;  %4092 = vadd.xlane.f32.xlu0 %v4049_v42  ;;  %8738 = vst [vmem:[#allocation18_spill] sm:$0xff] %v8159_v5  ;;  %v8161_v26 = vmax.f32 %v3928_v58, 0.0  ;;  %8740 = vst [vmem:[#allocation19_spill] sm:$0xff] %v8166_v38  ;;  %v4053_v25 = vmul.f32 %v8159_v5, %v8159_v5  ;;  %v4370_v42 = vld [vmem:[%s6108_s20 + $0x28] sm:$0xff] }
 0x4bb   : > { %v3870_v62 = vpop.f32.mrb[152].mxu1 }
 0x4bc   : > { %8739 = vst [vmem:[#allocation26_spill] sm:$0xff] %v8161_v26  ;;  %v3900_v37 = vadd.f32 %v3870_v62, %v8010_v9  ;;  %v5689_v30 = vpop.f32.mrb[153].mxu1  ;;  %v8174_v9 = vmax.f32 %v3926_v2, 0.0  ;;  %v4054_v58 = vmul.f32 %v8161_v26, %v8161_v26  ;;  %v8190_v62 = vpop.permute.xlu1 %4383 }
 0x4bd   : > { %v3873_v53 = vpop.f32.mrb[154].mxu1 }
 0x4be   : > { %v3929_v8 = vadd.f32 %v8737_v41, %v3900_v37  ;;  %v5690_v4 = vpop.f32.mrb[155].mxu1  ;;  %4094 = vadd.xlane.f32.xlu0 %v4050_v44  ;;  %4001 = vadd.xlane.f32.xlu1 %v8161_v26  ;;  %8742 = vst [vmem:[#allocation21_spill] sm:$0xff] %v8174_v9  ;;  %v4051_v41 = vmul.f32 %v8166_v38, %v8166_v38  ;;  %v4369_v44 = vld [vmem:[%s6108_s20 + $0x20] sm:$0xff]  ;;  %s330_s20 = sld [smem:[#allocation4]] }
 0x4bf   : > { %v4052_v29 = vmul.f32 %v8174_v9, %v8174_v9 }
 0x4c0   : > { %v8171_v27 = vmax.f32 %v3929_v8, 0.0  ;;  %v8193_v20 = vpop.permute.xlu1 %4388  ;;  %v8195_v8 = vpop.permute.xlu0 %4615 }
 0x4c1   : > { %8743 = vst [vmem:[#allocation23_spill] sm:$0xff] %v8195_v8 }
 0x4c2   : > { %8741 = vst [vmem:[#allocation20_spill] sm:$0xff] %v8171_v27  ;;  %3995 = vadd.xlane.f32.xlu0 %v8166_v38  ;;  %4100 = vadd.xlane.f32.xlu1 %v4053_v25  ;;  %v4003_v19 = vsel %vm2038_vm9, %v8171_v27, 0.0  ;;  %v4055_v15 = vmul.f32 %v8171_v27, %v8171_v27 }
 0x4c4   : > { %v4104_v54 = vsel %vm2038_vm9, %v4055_v15, 0.0 }
 0x4c6   : > { %3997 = vadd.xlane.f32.xlu0 %v8174_v9  ;;  %4004 = vadd.xlane.f32.xlu1 %v4003_v19 }
 0x4ca   : > { %4096 = vadd.xlane.f32.xlu0 %v4051_v41  ;;  %4105 = vadd.xlane.f32.xlu1 %v4104_v54 }
 0x4ce   : > { %4098 = vadd.xlane.f32.xlu0 %v4052_v29 }
 0x4d2   : > { %3999 = vadd.xlane.f32.xlu0 %v8159_v5 }
 0x4d6   : > { %4102 = vadd.xlane.f32.xlu0 %v4054_v58 }
 0x4db   : > { %4398 = vperm.xlu1 %5740, %v4370_v42  }
 0x4ec   : > { %4393 = vperm.xlu0 %5739, %v4369_v44  }
 0x4ef   : > { %v3956_v37 = vpop.xlane.xlu1 %3955 }
 0x4f0   : > { %v4006_v53 = vmul.f32 0.0078125, %v3956_v37 }
 0x4f2   : > { %v4132_v2 = vmul.f32 %v4006_v53, %v4006_v53 }
 0x4f3   : > { %v3958_v30 = vpop.xlane.xlu1 %3957 }
 0x4f4   : > { %v4007_v25 = vmul.f32 0.0078125, %v3958_v30 }
 0x4f6   : > { %v4133_v29 = vmul.f32 %v4007_v25, %v4007_v25 }
 0x4f7   : > { %v4057_v4 = vpop.xlane.xlu1 %4056 }
 0x4f8   : > { %v4107_v19 = vmul.f32 0.0078125, %v4057_v4 }
 0x4fa   : > { %v4157_v15 = vsub.f32 %v4107_v19, %v4132_v2 }
 0x4fb   : > { %v4059_v41 = vpop.xlane.xlu1 %4058  ;;  %v4063_v54 = vpop.xlane.xlu0 %4062 }
 0x4fc   : > { %v4182_v58 = vmax.f32 %v4157_v15, 0.0  ;;  %v4108_v42 = vmul.f32 0.0078125, %v4059_v41  ;;  %v4110_v15 = vmul.f32 0.0078125, %v4063_v54 }
 0x4fe   : > { %v4232_v10 = vadd.f32 1e-05, %v4182_v58  ;;  %v4158_v48 = vsub.f32 %v4108_v42, %v4133_v29 }
 0x4ff   : > { %v3960_v40 = vpop.xlane.xlu1 %3959  ;;  %v3964_v26 = vpop.xlane.xlu0 %3963 }
 0x500   : > { %5857 = vrsqrt.f32 %v4232_v10  ;;  %v4183_v44 = vmax.f32 %v4158_v48, 0.0  ;;  %v8197_v5 = vmul.f32 0.0078125, %v3964_v26  ;;  %v8199_v34 = vmul.f32 0.0078125, %v3960_v40 }
 0x502   : > { %v4233_v37 = vadd.f32 1e-05, %v4183_v44  ;;  %v4136_v4 = vmul.f32 %v8197_v5, %v8197_v5  ;;  %v4134_v10 = vmul.f32 %v8199_v34, %v8199_v34  ;;  %v4207_v44 = vsub.f32 %v8015_v33, %v4006_v53 }
 0x503   : > { %v3962_v8 = vpop.xlane.xlu1 %3961  ;;  %v4065_v30 = vpop.xlane.xlu0 %4064 }
 0x504   : > { %5859 = vrsqrt.f32 %v4233_v37  ;;  %v4009_v2 = vmul.f32 0.0078125, %v3962_v8  ;;  %v4111_v19 = vmul.f32 0.0078125, %v4065_v30 }
 0x506   : > { %v4135_v41 = vmul.f32 %v4009_v2, %v4009_v2  ;;  %v4161_v29 = vsub.f32 %v4111_v19, %v4136_v4  ;;  %v4208_v19 = vsub.f32 %v8019_v59, %v4007_v25  ;;  %v8746_v25 = vld [vmem:[#allocation11_spill] sm:$0xff] }
 0x507   : > { %v4061_v58 = vpop.xlane.xlu1 %4060  ;;  %v4067_v42 = vpop.xlane.xlu0 %4066 }
 0x508   : > { %v4160_v48 = vsub.f32 %v4110_v15, %v4135_v41  ;;  %v4186_v26 = vmax.f32 %v4161_v29, 0.0  ;;  %v4109_v40 = vmul.f32 0.0078125, %v4061_v58  ;;  %v4112_v29 = vmul.f32 0.0078125, %v4067_v42  ;;  %v8745_v58 = vld [vmem:[#allocation10_spill] sm:$0xff] }
 0x50a   : > { %v5858_v9 = vpop.eup %5857  ;;  %v4185_v37 = vmax.f32 %v4160_v48, 0.0  ;;  %v4236_v27 = vadd.f32 1e-05, %v4186_v26  ;;  %v4159_v38 = vsub.f32 %v4109_v40, %v4134_v10 }
 0x50b   : > { %v3966_v28 = vpop.xlane.xlu1 %3965  ;;  %v4282_v8 = vmul.f32 %v5858_v9, %v4207_v44  ;;  %v3968_v23 = vpop.xlane.xlu0 %3967 }
 0x50c   : > { %v4235_v30 = vadd.f32 1e-05, %v4185_v37  ;;  %5861 = vrsqrt.f32 %v4236_v27  ;;  %v4184_v54 = vmax.f32 %v4159_v38, 0.0  ;;  %v4011_v4 = vmul.f32 0.0078125, %v3966_v28 }
 0x50d   : > { %v4311_v49 = vmul.f32 %v8744_v12, %v4282_v8  ;;  %v8209_v26 = vmul.f32 0.0078125, %v3968_v23  ;;  %v4211_v23 = vsub.f32 %v8039_v57, %v8197_v5  ;;  %v4209_v57 = vsub.f32 %v8037_v36, %v8199_v34 }
 0x50e   : > { %v5860_v15 = vpop.eup %5859  ;;  %5863 = vrsqrt.f32 %v4235_v30  ;;  %v4234_v41 = vadd.f32 1e-05, %v4184_v54  ;;  %v4137_v33 = vmul.f32 %v4011_v4, %v4011_v4 }
 0x50f   : > { %v3970_v53 = vpop.xlane.xlu1 %3969  ;;  %v4340_v48 = vadd.f32 %v8745_v58, %v4311_v49  ;;  %v4283_v10 = vmul.f32 %v5860_v15, %v4208_v19  ;;  %v4138_v37 = vmul.f32 %v8209_v26, %v8209_v26  ;;  %v4210_v19 = vsub.f32 %v8027_v6, %v4009_v2 }
 0x510   : > { %5865 = vrsqrt.f32 %v4234_v41  ;;  %v4162_v9 = vsub.f32 %v4112_v29, %v4137_v33  ;;  %v8217_v49 = vmul.f32 0.0078125, %v3970_v53 }
 0x511   : > { %v4401_v28 = vmul.f32 %v7872_v63, %v4340_v48  ;;  %v4312_v59 = vmul.f32 %v8744_v12, %v4283_v10 }
 0x512   : > { %v4187_v38 = vmax.f32 %v4162_v9, 0.0  ;;  %v4139_v53 = vmul.f32 %v8217_v49, %v8217_v49 }
 0x513   : > { %v4069_v27 = vpop.xlane.xlu1 %4068  ;;  %v4411_v40 = vmul.f32 %v8746_v25, %v4401_v28  ;;  %v4341_v44 = vadd.f32 %v8745_v58, %v4312_v59 }
 0x514   : > { %v4237_v42 = vadd.f32 1e-05, %v4187_v38  ;;  %v4113_v8 = vmul.f32 0.0078125, %v4069_v27 }
 0x515   : > { %4417 = vadd.xlane.f32.xlu0 %v4411_v40  ;;  %v4402_v63 = vmul.f32 %v7895_v35, %v4341_v44  ;;  %v4212_v44 = vsub.f32 %v8044_v3, %v4011_v4 }
 0x516   : > { %v5862_v30 = vpop.eup %5861  ;;  %5867 = vrsqrt.f32 %v4237_v42  ;;  %v4163_v54 = vsub.f32 %v4113_v8, %v4138_v37 }
 0x517   : > { %v4071_v15 = vpop.xlane.xlu1 %4070  ;;  %v4412_v41 = vmul.f32 %v8746_v25, %v4402_v63  ;;  %v8224_v29 = vmul.f32 %v5862_v30, %v4211_v23 }
 0x518   : > { %v5864_v33 = vpop.eup %5863  ;;  %v4188_v48 = vmax.f32 %v4163_v54, 0.0  ;;  %v4114_v10 = vmul.f32 0.0078125, %v4071_v15 }
 0x519   : > { %v4285_v35 = vmul.f32 %v5864_v33, %v4210_v19  ;;  %4419 = vadd.xlane.f32.xlu0 %v4412_v41 }
 0x51a   : > { %v5866_v5 = vpop.eup %5865  ;;  %v4238_v9 = vadd.f32 1e-05, %v4188_v48  ;;  %v4164_v28 = vsub.f32 %v4114_v10, %v4139_v53  ;;  %v4213_v53 = vsub.f32 %v8056_v17, %v8209_v26  ;;  %v4459_v26 = vrot.slane %v7786_v1, 6 }
 0x51b   : > { %v4314_v6 = vmul.f32 %v8744_v12, %v4285_v35  ;;  %v3972_v2 = vpop.xlane.xlu1 %3971  ;;  %v4284_v59 = vmul.f32 %v5866_v5, %v4209_v57  ;;  %v4079_v42 = vpop.xlane.xlu0 %4078 }
 0x51c   : > { %5869 = vrsqrt.f32 %v4238_v9  ;;  %v4189_v38 = vmax.f32 %v4164_v28, 0.0  ;;  %v8235_v23 = vmul.f32 0.0078125, %v3972_v2 }
 0x51d   : > { %v4313_v27 = vmul.f32 %v8744_v12, %v4284_v59  ;;  %v4343_v36 = vadd.f32 %v8745_v58, %v4314_v6  ;;  %v4214_v6 = vsub.f32 %v8063_v43, %v8217_v49  ;;  %v8747_v49 = vrot.slane %v7685_v61, 6 }
 0x51e   : > { %v4239_v40 = vadd.f32 1e-05, %v4189_v38  ;;  %v4140_v4 = vmul.f32 %v8235_v23, %v8235_v23 }
 0x51f   : > { %v3974_v37 = vpop.xlane.xlu1 %3973  ;;  %v4342_v34 = vadd.f32 %v8745_v58, %v4313_v27  ;;  %v4404_v3 = vmul.f32 %v8193_v20, %v4343_v36 }
 0x520   : > { %v5868_v8 = vpop.eup %5867  ;;  %5871 = vrsqrt.f32 %v4239_v40  ;;  %v8246_v41 = vmul.f32 0.0078125, %v3974_v37 }
 0x521   : > { %v8237_v63 = vmul.f32 %v5868_v8, %v4212_v44  ;;  %v4403_v30 = vmul.f32 %v8190_v62, %v4342_v34  ;;  %v8240_v54 = vpop.xlane.xlu0 %4080  ;;  %v4414_v35 = vmul.f32 %v8746_v25, %v4404_v3 }
 0x522   : > { %v4141_v20 = vmul.f32 %v8246_v41, %v8246_v41 }
 0x523   : > { %v4073_v19 = vpop.xlane.xlu1 %4072  ;;  %v4413_v15 = vmul.f32 %v8746_v25, %v4403_v30  ;;  %v4461_v30 = vsel %vm2565_vm2, %v4459_v26, %v8747_v49 }
 0x524   : > { %v4115_v33 = vmul.f32 0.0078125, %v4073_v19 }
 0x525   : > { %4421 = vadd.xlane.f32.xlu0 %v4413_v15 }
 0x526   : > { %v5870_v48 = vpop.eup %5869  ;;  %v4165_v10 = vsub.f32 %v4115_v33, %v4140_v4 }
 0x527   : > { %v4075_v62 = vpop.xlane.xlu1 %4074  ;;  %v3984_v57 = vpop.xlane.xlu0 %3983  ;;  %v4288_v5 = vmul.f32 %v5870_v48, %v4213_v53 }
 0x528   : > { %v4190_v9 = vmax.f32 %v4165_v10, 0.0  ;;  %v4116_v28 = vmul.f32 0.0078125, %v4075_v62  ;;  %v8258_v36 = vmul.f32 0.0078125, %v3984_v57 }
 0x529   : > { %4423 = vadd.xlane.f32.xlu0 %v4414_v35  ;;  %v4317_v2 = vmul.f32 %v8744_v12, %v4288_v5  ;;  %v4118_v35 = vmul.f32 0.0078125, %v4079_v42  ;;  %v4215_v42 = vsub.f32 %v8076_v31, %v8235_v23 }
 0x52a   : > { %v5872_v17 = vpop.eup %5871  ;;  %v4240_v59 = vadd.f32 1e-05, %v4190_v9  ;;  %v4166_v38 = vsub.f32 %v4116_v28, %v4141_v20  ;;  %v4146_v48 = vmul.f32 %v8258_v36, %v8258_v36 }
 0x52b   : > { %v3976_v27 = vpop.xlane.xlu1 %3975  ;;  %v3986_v40 = vpop.xlane.xlu0 %3985  ;;  %v4346_v44 = vadd.f32 %v8745_v58, %v4317_v2  ;;  %v4289_v37 = vmul.f32 %v5872_v17, %v4214_v6 }
 0x52c   : > { %5873 = vrsqrt.f32 %v4240_v59  ;;  %v4191_v34 = vmax.f32 %v4166_v38, 0.0  ;;  %v8264_v1 = vmul.f32 0.0078125, %v3976_v27  ;;  %v8266_v15 = vmul.f32 0.0078125, %v3986_v40 }
 0x52d   : > { %v4477_v8 = vmul.f32 %v4459_v26, %v4346_v44  ;;  %v4318_v43 = vmul.f32 %v8744_v12, %v4289_v37 }
 0x52e   : > { %v4241_v19 = vadd.f32 1e-05, %v4191_v34  ;;  %v4142_v9 = vmul.f32 %v8264_v1, %v8264_v1  ;;  %v4147_v28 = vmul.f32 %v8266_v15, %v8266_v15 }
 0x52f   : > { %v3978_v3 = vpop.xlane.xlu1 %3977  ;;  %v4085_v4 = vpop.xlane.xlu0 %4084  ;;  %v4484_v33 = vmul.f32 %v4477_v8, %v8746_v25  ;;  %v4347_v53 = vadd.f32 %v8745_v58, %v4318_v43 }
 0x530   : > { %5875 = vrsqrt.f32 %v4241_v19  ;;  %v8272_v10 = vmul.f32 0.0078125, %v3978_v3  ;;  %v4121_v61 = vmul.f32 0.0078125, %v4085_v4 }
 0x531   : > { %v4492_v62 = vsel %vm4491_vm8, %v4484_v33, 0.0  ;;  %v4478_v57 = vmul.f32 %v4461_v30, %v4347_v53 }
 0x532   : > { %v4143_v5 = vmul.f32 %v8272_v10, %v8272_v10  ;;  %v4171_v20 = vsub.f32 %v4121_v61, %v4146_v48  ;;  %4493 = vadd.xlane.f32.xlu0 %v4492_v62  ;;  %v4216_v61 = vsub.f32 %v8085_v14, %v8246_v41  ;;  %v4119_v62 = vmul.f32 0.0078125, %v8240_v54 }
 0x533   : > { %v4077_v6 = vpop.xlane.xlu1 %4076  ;;  %v4087_v2 = vpop.xlane.xlu0 %4086  ;;  %v4485_v17 = vmul.f32 %v4478_v57, %v8746_v25 }
 0x534   : > { %v4168_v26 = vsub.f32 %v4118_v35, %v4143_v5  ;;  %v4196_v59 = vmax.f32 %v4171_v20, 0.0  ;;  %v4117_v38 = vmul.f32 0.0078125, %v4077_v6  ;;  %v4122_v27 = vmul.f32 0.0078125, %v4087_v2 }
 0x535   : > { %4495 = vadd.xlane.f32.xlu1 %v4485_v17 }
 0x536   : > { %v5874_v40 = vpop.eup %5873  ;;  %v4193_v44 = vmax.f32 %v4168_v26, 0.0  ;;  %v4246_v37 = vadd.f32 1e-05, %v4196_v59  ;;  %v4167_v34 = vsub.f32 %v4117_v38, %v4142_v9  ;;  %v4172_v8 = vsub.f32 %v4122_v27, %v4147_v28 }
 0x537   : > { %v3980_v43 = vpop.xlane.xlu1 %3979  ;;  %v3988_v49 = vpop.xlane.xlu0 %3987  ;;  %v4290_v30 = vmul.f32 %v5874_v40, %v4215_v42 }
 0x538   : > { %v4243_v19 = vadd.f32 1e-05, %v4193_v44  ;;  %5877 = vrsqrt.f32 %v4246_v37  ;;  %v4192_v3 = vmax.f32 %v4167_v34, 0.0  ;;  %v4197_v4 = vmax.f32 %v4172_v8, 0.0 }
 0x539   : > { %v8283_v33 = vmul.f32 0.0078125, %v3980_v43  ;;  %v4319_v53 = vmul.f32 %v8744_v12, %v4290_v30  ;;  %v8291_v35 = vmul.f32 0.0078125, %v3988_v49  ;;  %v4221_v44 = vsub.f32 %v8098_v13, %v8258_v36 }
 0x53a   : > { %v5876_v48 = vpop.eup %5875  ;;  %5879 = vrsqrt.f32 %v4243_v19  ;;  %v4242_v31 = vadd.f32 1e-05, %v4192_v3  ;;  %v4247_v23 = vadd.f32 1e-05, %v4197_v4  ;;  %v4218_v19 = vsub.f32 %v8074_v55, %v8272_v10 }
 0x53b   : > { %v4144_v57 = vmul.f32 %v8283_v33, %v8283_v33  ;;  %v3982_v5 = vpop.xlane.xlu1 %3981  ;;  %v3990_v20 = vpop.xlane.xlu0 %3989  ;;  %v4348_v28 = vadd.f32 %v8745_v58, %v4319_v53  ;;  %v4291_v2 = vmul.f32 %v5876_v48, %v4216_v61  ;;  %v4148_v14 = vmul.f32 %v8291_v35, %v8291_v35 }
 0x53c   : > { %5881 = vrsqrt.f32 %v4242_v31  ;;  %v8293_v9 = vmul.f32 0.0078125, %v3982_v5  ;;  %v8302_v27 = vmul.f32 0.0078125, %v3990_v20  ;;  %v8748_v20 = vrot.slane %v7850_v46, 4 }
 0x53d   : > { %5883 = vrsqrt.f32 %v4247_v23  ;;  %v4169_v6 = vsub.f32 %v4119_v62, %v4144_v57  ;;  %v4479_v26 = vmul.f32 %v7715_v18, %v4348_v28  ;;  %v4320_v59 = vmul.f32 %v8744_v12, %v4291_v2 }
 0x53e   : > { %v4145_v38 = vmul.f32 %v8293_v9, %v8293_v9  ;;  %v4539_v18 = vrot.slane %v7825_v60, 4  ;;  %v4149_v48 = vmul.f32 %v8302_v27, %v8302_v27  ;;  %v4217_v62 = vsub.f32 %v8104_v21, %v8264_v1 }
 0x53f   : > { %v4194_v17 = vmax.f32 %v4169_v6, 0.0  ;;  %v4083_v54 = vpop.xlane.xlu1 %4082  ;;  %v4089_v41 = vpop.xlane.xlu0 %4088  ;;  %v4486_v34 = vmul.f32 %v4479_v26, %v8746_v25  ;;  %v4349_v8 = vadd.f32 %v8745_v58, %v4320_v59 }
 0x540   : > { %v4120_v42 = vmul.f32 0.0078125, %v4083_v54  ;;  %v4123_v40 = vmul.f32 0.0078125, %v4089_v41 }
 0x541   : > { %v4244_v37 = vadd.f32 1e-05, %v4194_v17  ;;  %4497 = vadd.xlane.f32.xlu1 %v4486_v34  ;;  %v4480_v53 = vmul.f32 %v7748_v52, %v4349_v8  ;;  %v4542_v52 = vsel %vm2522_vm5, %v4539_v18, %v8748_v20 }
 0x542   : > { %v5878_v43 = vpop.eup %5877  ;;  %v4170_v49 = vsub.f32 %v4120_v42, %v4145_v38  ;;  %v4173_v30 = vsub.f32 %v4123_v40, %v4148_v14  ;;  %v4222_v14 = vsub.f32 %v8106_v16, %v8266_v15  ;;  %v4219_v16 = vsub.f32 %v8087_v0, %v8283_v33 }
 0x543   : > { %5885 = vrsqrt.f32 %v4244_v37  ;;  %v4091_v3 = vpop.xlane.xlu1 %4090  ;;  %v3994_v4 = vpop.xlane.xlu0 %3993  ;;  %v4296_v13 = vmul.f32 %v5878_v43, %v4221_v44  ;;  %v4487_v55 = vmul.f32 %v4480_v53, %v8746_v25 }
 0x544   : > { %v5880_v36 = vpop.eup %5879  ;;  %v4195_v31 = vmax.f32 %v4170_v49, 0.0  ;;  %v4198_v23 = vmax.f32 %v4173_v30, 0.0  ;;  %v4124_v61 = vmul.f32 0.0078125, %v4091_v3  ;;  %v8327_v59 = vmul.f32 0.0078125, %v3994_v4 }
 0x545   : > { %v4293_v57 = vmul.f32 %v5880_v36, %v4218_v19  ;;  %v4325_v10 = vmul.f32 %v8744_v12, %v4296_v13  ;;  %4499 = vadd.xlane.f32.xlu0 %v4487_v55 }
 0x546   : > { %v5882_v5 = vpop.eup %5881  ;;  %v4245_v28 = vadd.f32 1e-05, %v4195_v31  ;;  %v4248_v6 = vadd.f32 1e-05, %v4198_v23  ;;  %v4174_v2 = vsub.f32 %v4124_v61, %v4149_v48  ;;  %v4151_v0 = vmul.f32 %v8327_v59, %v8327_v59 }
 0x547   : > { %v5884_v17 = vpop.eup %5883  ;;  %v4322_v21 = vmul.f32 %v8744_v12, %v4293_v57  ;;  %v3992_v1 = vpop.xlane.xlu1 %3991  ;;  %v4354_v41 = vadd.f32 %v8745_v58, %v4325_v10  ;;  %v4292_v26 = vmul.f32 %v5882_v5, %v4217_v62 }
 0x548   : > { %v4093_v54 = vpop.xlane.xlu0 %4092  ;;  %5887 = vrsqrt.f32 %v4245_v28  ;;  %v4199_v46 = vmax.f32 %v4174_v2, 0.0  ;;  %v8329_v38 = vmul.f32 0.0078125, %v3992_v1  ;;  %v4297_v44 = vmul.f32 %v5884_v17, %v4222_v14 }
 0x549   : > { %5889 = vrsqrt.f32 %v4248_v6  ;;  %v4558_v42 = vmul.f32 %v4542_v52, %v4354_v41  ;;  %v4321_v40 = vmul.f32 %v8744_v12, %v4292_v26  ;;  %v4125_v34 = vmul.f32 0.0078125, %v4093_v54 }
 0x54a   : > { %v4249_v15 = vadd.f32 1e-05, %v4199_v46  ;;  %v4150_v37 = vmul.f32 %v8329_v38, %v8329_v38  ;;  %v4326_v19 = vmul.f32 %v8744_v12, %v4297_v44  ;;  %v4351_v3 = vadd.f32 %v8745_v58, %v4322_v21 }
 0x54b   : > { %v8336_v43 = vpop.xlane.xlu1 %4001  ;;  %v4565_v49 = vmul.f32 %v4558_v42, %v8746_v25  ;;  %v4350_v30 = vadd.f32 %v8745_v58, %v4321_v40  ;;  %v4223_v2 = vsub.f32 %v8123_v39, %v8291_v35  ;;  %v4224_v35 = vsub.f32 %v8130_v11, %v8302_v27 }
 0x54c   : > { %v4095_v8 = vpop.xlane.xlu0 %4094  ;;  %5891 = vrsqrt.f32 %v4249_v15  ;;  %v4175_v33 = vsub.f32 %v4125_v34, %v4150_v37  ;;  %v4355_v36 = vadd.f32 %v8745_v58, %v4326_v19  ;;  %v4482_v10 = vmul.f32 %v7830_v47, %v4351_v3 }
 0x54d   : > { %v4126_v4 = vmul.f32 0.0078125, %v4095_v8  ;;  %v5886_v53 = vpop.eup %5885  ;;  %4576 = vadd.xlane.f32.xlu1 %v4565_v49  ;;  %v4481_v13 = vmul.f32 %v7798_v24, %v4350_v30  ;;  %v4220_v24 = vsub.f32 %v8128_v51, %v8293_v9  ;;  %v4538_v47 = vrot.slane %v7805_v56, 4 }
 0x54e   : > { %v4294_v48 = vmul.f32 %v5886_v53, %v4219_v16  ;;  %v4200_v31 = vmax.f32 %v4175_v33, 0.0  ;;  %v4559_v55 = vmul.f32 %v7861_v7, %v4355_v36  ;;  %v4489_v54 = vmul.f32 %v4482_v10, %v8746_v25 }
 0x54f   : > { %v4176_v23 = vsub.f32 %v4126_v4, %v4151_v0  ;;  %v8346_v62 = vpop.xlane.xlu1 %4100  ;;  %v4488_v57 = vmul.f32 %v4481_v13, %v8746_v25  ;;  %v4540_v42 = vsel %vm2522_vm5, %v4538_v47, %v4539_v18  ;;  %v4225_v4 = vsub.f32 %v8142_v45, %v8329_v38 }
 0x550   : > { %v3996_v61 = vpop.xlane.xlu0 %3995  ;;  %v4323_v5 = vmul.f32 %v8744_v12, %v4294_v48  ;;  %v4250_v20 = vadd.f32 1e-05, %v4200_v31  ;;  %v4566_v28 = vmul.f32 %v4559_v55, %v8746_v25  ;;  %v4226_v10 = vsub.f32 %v8144_v50, %v8327_v59 }
 0x551   : > { %v4201_v52 = vmax.f32 %v4176_v23, 0.0  ;;  %4501 = vadd.xlane.f32.xlu0 %v4488_v57  ;;  %v8357_v14 = vmul.f32 0.0078125, %v3996_v61 }
 0x552   : > { %v5888_v6 = vpop.eup %5887  ;;  %5893 = vrsqrt.f32 %v4250_v20  ;;  %4578 = vadd.xlane.f32.xlu1 %v4566_v28  ;;  %v8362_v51 = vadd.f32 %v8745_v58, %v4323_v5 }
 0x553   : > { %v4251_v17 = vadd.f32 1e-05, %v4201_v52  ;;  %v5890_v7 = vpop.eup %5889  ;;  %v4005_v1 = vpop.xlane.xlu1 %4004  ;;  %v4295_v9 = vmul.f32 %v5888_v6, %v4220_v24  ;;  %v4152_v40 = vmul.f32 %v8357_v14, %v8357_v14 }
 0x554   : > { %v3998_v21 = vpop.xlane.xlu0 %3997  ;;  %v8364_v41 = vmul.f32 0.0078125, %v4005_v1  ;;  %v4298_v39 = vmul.f32 %v5890_v7, %v4223_v2  ;;  %v4556_v26 = vmul.f32 %v4538_v47, %v8362_v51  ;;  %v8398_v7 = vmul.f32 0.0078125, %v8336_v43 }
 0x555   : > { %5895 = vrsqrt.f32 %v4251_v17  ;;  %4503 = vadd.xlane.f32.xlu0 %v4489_v54  ;;  %v4324_v56 = vmul.f32 %v8744_v12, %v4295_v9  ;;  %v8378_v34 = vmul.f32 0.0078125, %v3998_v21  ;;  %v4129_v54 = vmul.f32 0.0078125, %v8346_v62 }
 0x556   : > { %v5892_v46 = vpop.eup %5891  ;;  %v4563_v15 = vmul.f32 %v4556_v26, %v8746_v25  ;;  %v4327_v27 = vmul.f32 %v8744_v12, %v4298_v39  ;;  %v4156_v60 = vmul.f32 %v8364_v41, %v8364_v41  ;;  %v8750_v26 = vld [vmem:[#allocation14_spill] sm:$0xff]  ;;  %v4155_v62 = vmul.f32 %v8398_v7, %v8398_v7 }
 0x557   : > { %v4106_v16 = vpop.xlane.xlu1 %4105  ;;  %v4353_v11 = vadd.f32 %v8745_v58, %v4324_v56  ;;  %v4299_v37 = vmul.f32 %v5892_v46, %v4224_v35  ;;  %v4153_v23 = vmul.f32 %v8378_v34, %v8378_v34  ;;  %v8751_v56 = vrot.slane %v8750_v26, 4 }
 0x558   : > { %v4097_v44 = vpop.xlane.xlu0 %4096  ;;  %v4131_v18 = vmul.f32 0.0078125, %v4106_v16  ;;  %v4571_v49 = vsel %vm4570_vm14, %v4563_v15, 0.0  ;;  %v4356_v19 = vadd.f32 %v8745_v58, %v4327_v27  ;;  %v8754_v27 = vld [vmem:[#allocation12_spill] sm:$0xff] }
 0x559   : > { %v4127_v8 = vmul.f32 0.0078125, %v4097_v44  ;;  %v4557_v30 = vmul.f32 %v4540_v42, %v4353_v11  ;;  %v4328_v3 = vmul.f32 %v8744_v12, %v4299_v37  ;;  %4572 = vadd.xlane.f32.xlu0 %v4571_v49  ;;  %v8752_v42 = vld [vmem:[#allocation13_spill] sm:$0xff]  ;;  %v8755_v37 = vrot.slane %v8754_v27, 2 }
 0x55a   : > { %v4181_v33 = vsub.f32 %v4131_v18, %v4156_v60  ;;  %v4560_v36 = vmul.f32 %v7818_v22, %v4356_v19  ;;  %v4315_v49 = vmul.f32 %v8744_v12, %v8224_v29  ;;  %v8757_v29 = vld [vmem:[#allocation20_spill] sm:$0xff] }
 0x55b   : > { %v4177_v0 = vsub.f32 %v4127_v8, %v4152_v40  ;;  %v4564_v13 = vmul.f32 %v4557_v30, %v8746_v25  ;;  %v4357_v48 = vadd.f32 %v8745_v58, %v4328_v3  ;;  %v8753_v40 = vrot.slane %v8752_v42, 6 }
 0x55c   : > { %v4099_v53 = vpop.xlane.xlu0 %4098  ;;  %v5894_v31 = vpop.eup %5893  ;;  %v4206_v57 = vmax.f32 %v4181_v33, 0.0  ;;  %v4567_v5 = vmul.f32 %v4560_v36, %v8746_v25 }
 0x55d   : > { %v4202_v61 = vmax.f32 %v4177_v0, 0.0  ;;  %v4128_v55 = vmul.f32 0.0078125, %v4099_v53  ;;  %v4561_v45 = vmul.f32 %v7847_v32, %v4357_v48  ;;  %v4300_v38 = vmul.f32 %v5894_v31, %v4225_v4  ;;  %4574 = vadd.xlane.f32.xlu0 %v4564_v13  ;;  %v8749_v32 = vld [vmem:[#allocation22_spill] sm:$0xff]  ;;  %v8756_v13 = vld [vmem:[#allocation19_spill] sm:$0xff] }
 0x55e   : > { %v4256_v22 = vadd.f32 1e-05, %v4206_v57  ;;  %4580 = vadd.xlane.f32.xlu1 %v4567_v5  ;;  %v4617_v47 = vrot.slane %v8749_v32, 2  ;;  %v4483_v44 = vmul.f32 %v8753_v40, %v8362_v51  ;;  %v4227_v36 = vsub.f32 %v8756_v13, %v8357_v14  ;;  %v8763_v40 = vld [vmem:[#allocation24_spill] sm:$0xff] }
 0x55f   : > { %v5896_v20 = vpop.eup %5895  ;;  %v4252_v52 = vadd.f32 1e-05, %v4202_v61  ;;  %v4178_v24 = vsub.f32 %v4128_v55, %v4153_v23  ;;  %v4568_v6 = vmul.f32 %v4561_v45, %v8746_v25  ;;  %v4329_v2 = vmul.f32 %v8744_v12, %v4300_v38 }
 0x560   : > { %v4000_v28 = vpop.xlane.xlu0 %3999  ;;  %v4301_v17 = vmul.f32 %v5896_v20, %v4226_v10  ;;  %v4619_v60 = vsel %vm2038_vm9, %v4617_v47, %v8755_v37  ;;  %v4490_v33 = vmul.f32 %v4483_v44, %v8746_v25  ;;  %v4344_v48 = vadd.f32 %v8745_v58, %v4315_v49  ;;  %v8758_v20 = vld [vmem:[#allocation21_spill] sm:$0xff]  ;;  %v8765_v49 = vld [vmem:[#allocation16_spill] sm:$0xff] }
 0x561   : > { %5897 = vrsqrt.f32 %v4252_v52  ;;  %v4203_v50 = vmax.f32 %v4178_v24, 0.0  ;;  %v8400_v59 = vmul.f32 0.0078125, %v4000_v28  ;;  %v4358_v21 = vadd.f32 %v8745_v58, %v4329_v2 }
 0x562   : > { %5899 = vrsqrt.f32 %v4256_v22  ;;  %v4330_v1 = vmul.f32 %v8744_v12, %v4301_v17  ;;  %4582 = vadd.xlane.f32.xlu1 %v4568_v6  ;;  %v4231_v23 = vsub.f32 %v8757_v29, %v8364_v41  ;;  %v4505_v5 = vsel %vm2565_vm2, %v4490_v33, 0.0  ;;  %v8759_v17 = vld [vmem:[#allocation23_spill] sm:$0xff] }
 0x563   : > { %v4253_v9 = vadd.f32 1e-05, %v4203_v50  ;;  %v4154_v39 = vmul.f32 %v8400_v59, %v8400_v59  ;;  %v4635_v35 = vmul.f32 %v4617_v47, %v4358_v21  ;;  %v4562_v46 = vmul.f32 %v8751_v56, %v4358_v21  ;;  %v8760_v47 = vld [vmem:[#allocation15_spill] sm:$0xff]  ;;  %v8762_v56 = vld [vmem:[#allocation26_spill] sm:$0xff] }
 0x564   : > { %v4103_v43 = vpop.xlane.xlu0 %4102  ;;  %v4359_v16 = vadd.f32 %v8745_v58, %v4330_v1  ;;  %v4228_v52 = vsub.f32 %v8758_v20, %v8378_v34  ;;  %v4626_v50 = vrot.slane %v8759_v17, 2 }
 0x565   : > { %5901 = vrsqrt.f32 %v4253_v9  ;;  %v4179_v15 = vsub.f32 %v4129_v54, %v4154_v39  ;;  %v4130_v11 = vmul.f32 0.0078125, %v4103_v43  ;;  %v4642_v8 = vmul.f32 %v4635_v35, %v8746_v25  ;;  %v8761_v54 = vld [vmem:[#allocation18_spill] sm:$0xff] }
 0x566   : > { %v4569_v18 = vmul.f32 %v4562_v46, %v8746_v25  ;;  %v4636_v19 = vmul.f32 %v4619_v60, %v4359_v16  ;;  %v4229_v9 = vsub.f32 %v8761_v54, %v8400_v59  ;;  %v4230_v46 = vsub.f32 %v8762_v56, %v8398_v7  ;;  %v8764_v60 = vld [vmem:[#allocation17_spill] sm:$0xff] }
 0x567   : > { %v4204_v51 = vmax.f32 %v4179_v15, 0.0  ;;  %v4180_v30 = vsub.f32 %v4130_v11, %v4155_v62  ;;  %v4650_v3 = vsel %vm4649_vm10, %v4642_v8, 0.0  ;;  %v4316_v7 = vmul.f32 %v8744_v12, %v8237_v63 }
 0x568   : > { %v4584_v0 = vsel %vm2522_vm5, %v4569_v18, 0.0  ;;  %4651 = vadd.xlane.f32.xlu0 %v4650_v3  ;;  %v4643_v57 = vmul.f32 %v4636_v19, %v8746_v25 }
 0x569   : > { %v4254_v4 = vadd.f32 1e-05, %v4204_v51  ;;  %v4205_v53 = vmax.f32 %v4180_v30, 0.0  ;;  %4585 = vadd.xlane.f32.xlu1 %v4584_v0  ;;  %v8766_v51 = vrot.slane %v8765_v49, 2  ;;  %v4399_v0 = vpop.permute.xlu1 %4398  ;;  %v4345_v33 = vadd.f32 %v8745_v58, %v4316_v7 }
 0x56b   : > { %v5898_v31 = vpop.eup %5897  ;;  %5903 = vrsqrt.f32 %v4254_v4  ;;  %v4255_v61 = vadd.f32 1e-05, %v4205_v53  ;;  %v4394_v10 = vpop.permute.xlu0 %4393  ;;  %v4627_v30 = vsel %vm2038_vm9, %v8766_v51, %v4626_v50  ;;  %v4406_v4 = vmul.f32 %v4399_v0, %v4345_v33 }
 0x56c   : > { %v5900_v55 = vpop.eup %5899  ;;  %v4302_v45 = vmul.f32 %v5898_v31, %v4227_v36  ;;  %v4405_v38 = vmul.f32 %v4394_v10, %v4344_v48  ;;  %4506 = vadd.xlane.f32.xlu0 %v4505_v5 }
 0x56d   : > { %5905 = vrsqrt.f32 %v4255_v61  ;;  %4653 = vadd.xlane.f32.xlu1 %v4643_v57  ;;  %v4306_v14 = vmul.f32 %v5900_v55, %v4231_v23 }
 0x56e   : > { %v4331_v22 = vmul.f32 %v8744_v12, %v4302_v45  ;;  %v4415_v24 = vmul.f32 %v8746_v25, %v4405_v38 }
 0x56f   : > { %v5902_v41 = vpop.eup %5901  ;;  %v4335_v28 = vmul.f32 %v8744_v12, %v4306_v14 }
 0x570   : > { %v4360_v6 = vadd.f32 %v8745_v58, %v4331_v22  ;;  %v4303_v2 = vmul.f32 %v5902_v41, %v4228_v52  ;;  %4425 = vadd.xlane.f32.xlu0 %v4415_v24 }
 0x571   : > { %v4364_v32 = vadd.f32 %v8745_v58, %v4335_v28 }
 0x572   : > { %v4637_v21 = vmul.f32 %v8760_v47, %v4360_v6  ;;  %v4332_v1 = vmul.f32 %v8744_v12, %v4303_v2 }
 0x573   : > { %v4641_v34 = vmul.f32 %v4626_v50, %v4364_v32 }
 0x574   : > { %v4644_v39 = vmul.f32 %v4637_v21, %v8746_v25  ;;  %v4361_v43 = vadd.f32 %v8745_v58, %v4332_v1 }
 0x575   : > { %v5904_v35 = vpop.eup %5903  ;;  %v4648_v26 = vmul.f32 %v4641_v34, %v8746_v25 }
 0x576   : > { %v4304_v42 = vmul.f32 %v5904_v35, %v4229_v9  ;;  %4655 = vadd.xlane.f32.xlu1 %v4644_v39  ;;  %v4638_v44 = vmul.f32 %v8763_v40, %v4361_v43 }
 0x577   : > { %v5906_v16 = vpop.eup %5905  ;;  %v4663_v62 = vsel %vm2038_vm9, %v4648_v26, 0.0 }
 0x578   : > { %v4333_v15 = vmul.f32 %v8744_v12, %v4304_v42  ;;  %4664 = vadd.xlane.f32.xlu0 %v4663_v62  ;;  %v4645_v59 = vmul.f32 %v4638_v44, %v8746_v25  ;;  %v4305_v11 = vmul.f32 %v5906_v16, %v4230_v46 }
 0x57a   : > { %4657 = vadd.xlane.f32.xlu1 %v4645_v59  ;;  %v4362_v27 = vadd.f32 %v8745_v58, %v4333_v15  ;;  %v4334_v37 = vmul.f32 %v8744_v12, %v4305_v11  ;;  %v4416_v12 = vmul.f32 %v8746_v25, %v4406_v4 }
 0x57c   : > { %v4639_v8 = vmul.f32 %v8764_v60, %v4362_v27  ;;  %v4363_v18 = vadd.f32 %v8745_v58, %v4334_v37 }
 0x57e   : > { %v4646_v19 = vmul.f32 %v4639_v8, %v8746_v25  ;;  %v4640_v3 = vmul.f32 %v4627_v30, %v4363_v18 }
 0x580   : > { %4659 = vadd.xlane.f32.xlu1 %v4646_v19  ;;  %v4647_v53 = vmul.f32 %v4640_v3, %v8746_v25 }
 0x584   : > { %4661 = vadd.xlane.f32.xlu1 %v4647_v53 }
 0x588   : > { %4427 = vadd.xlane.f32.xlu1 %v4416_v12 }
 0x5a2   : > { %v4418_v63 = vpop.xlane.xlu0 %4417 }
 0x5a6   : > { %v4420_v13 = vpop.xlane.xlu0 %4419 }
 0x5b2   : > { %v4422_v36 = vpop.xlane.xlu0 %4421 }
 0x5b6   : > { %v8467_v48 = vpop.xlane.xlu0 %4423 }
 0x5bf   : > { %v4494_v31 = vpop.xlane.xlu0 %4493 }
 0x5c0   : > { %v4673_v22 = vrot.slane %v4494_v31, 2 }
 0x5c2   : > { %v4496_v29 = vpop.xlane.xlu1 %4495 }
 0x5c3   : > { %v4674_v14 = vrot.slane %v4496_v29, 2 }
 0x5c5   : > { %v4675_v28 = vsel %vm2038_vm9, %v4673_v22, %v4674_v14 }
 0x5c6   : > { %v4745_v32 = vsel %vm4744_vm3, %v4418_v63, %v4675_v28  ;;  %v5152_v28 = vld [vmem:[%s325_s25 + $0x1] ss:$0 sm:$0xff] }
 0x5ce   : > { %v4498_v61 = vpop.xlane.xlu1 %4497 }
 0x5cf   : > { %v4676_v1 = vrot.slane %v4498_v61, 2 }
 0x5d1   : > { %v4677_v9 = vsel %vm2038_vm9, %v4674_v14, %v4676_v1 }
 0x5d2   : > { %v4500_v23 = vpop.xlane.xlu0 %4499  ;;  %v4746_v46 = vsel %vm4744_vm3, %v4420_v13, %v4677_v9 }
 0x5d3   : > { %v4678_v39 = vrot.slane %v4500_v23, 2 }
 0x5d5   : > { %v4679_v42 = vsel %vm2038_vm9, %v4676_v1, %v4678_v39 }
 0x5d6   : > { %v4747_v37 = vsel %vm4744_vm3, %v4422_v36, %v4679_v42 }
 0x5da   : > { %v4577_v55 = vpop.xlane.xlu1 %4576 }
 0x5db   : > { %v4702_v54 = vrot.slane %v4577_v55, 4 }
 0x5de   : > { %v4502_v57 = vpop.xlane.xlu0 %4501 }
 0x5df   : > { %v4579_v10 = vpop.xlane.xlu1 %4578  ;;  %v4680_v59 = vrot.slane %v4502_v57, 2 }
 0x5e0   : > { %v4704_v43 = vrot.slane %v4579_v10, 4 }
 0x5e1   : > { %v4681_v49 = vsel %vm2038_vm9, %v4678_v39, %v4680_v59 }
 0x5e2   : > { %v8469_v58 = vpop.xlane.xlu0 %4503  ;;  %v4705_v16 = vsel %vm2522_vm5, %v4702_v54, %v4704_v43  ;;  %v4748_v33 = vsel %vm4744_vm3, %v8467_v48, %v4681_v49 }
 0x5e3   : > { %v4754_v8 = vsel %vm4751_vm6, %v4747_v37, %v4705_v16  ;;  %v4682_v51 = vrot.slane %v8469_v58, 2 }
 0x5e5   : > { %v4683_v53 = vsel %vm2038_vm9, %v4680_v59, %v4682_v51 }
 0x5e6   : > { %v4573_v5 = vpop.xlane.xlu0 %4572 }
 0x5e7   : > { %v4699_v41 = vrot.slane %v4573_v5, 4 }
 0x5ea   : > { %v4575_v25 = vpop.xlane.xlu0 %4574 }
 0x5eb   : > { %v8471_v45 = vpop.xlane.xlu1 %4580  ;;  %v4700_v20 = vrot.slane %v4575_v25, 4 }
 0x5ec   : > { %v4706_v7 = vrot.slane %v8471_v45, 4 }
 0x5ed   : > { %v4701_v6 = vsel %vm2522_vm5, %v4699_v41, %v4700_v20  ;;  %v4703_v35 = vsel %vm2522_vm5, %v4700_v20, %v4702_v54  ;;  %v4797_v41 = vstv %s330_s20  ;;  %s5914_s20 = scalar_lea.vmem %s5913_s19, 128 }
 0x5ee   : > { %v4752_v21 = vsel %vm4751_vm6, %v4745_v32, %v4701_v6  ;;  %v4753_v44 = vsel %vm4751_vm6, %v4746_v46, %v4703_v35  ;;  %v4707_v30 = vsel %vm2522_vm5, %v4704_v43, %v4706_v7  ;;  %v5155_v6 = vld [vmem:[%s325_s25 + $0x2] ss:$0 sm:$0xff]  ;;  %p5916_p1 = scmp.lt.s32.totalorder %s5914_s20, %s5908_s14 }
 0x5ef   : > { %v8473_v38 = vpop.xlane.xlu1 %4582  ;;  %v4755_v63 = vsel %vm4751_vm6, %v4748_v33, %v4707_v30 }
 0x5f0   : > { %v4708_v4 = vrot.slane %v8473_v38, 4  ;;  %p5917_p2 = por %p5916_p1, %p5915_p0 }
 0x5f2   : > { %v4709_v48 = vsel %vm2522_vm5, %v4706_v7, %v4708_v4  ;;  %p5918_p3 = pnand %p5917_p2, %p5911_p13 }
 0x5f5   : > { %v4652_v24 = vpop.xlane.xlu0 %4651 }
 0x5f6   : > { %v8475_v52 = vpop.xlane.xlu1 %4585  ;;  %v4725_v17 = vrot.slane %v4652_v24, 6  ;;  %v4799_v24 = vld [vmem:[%s325_s25] sm:$0x1] }
 0x5f7   : > { %v4710_v23 = vrot.slane %v8475_v52, 4 }
 0x5f9   : > { %v4507_v11 = vpop.xlane.xlu0 %4506  ;;  %v4711_v25 = vsel %vm2522_vm5, %v4708_v4, %v4710_v23  ;;  %vm4825_vm5 = vcmask 387074  }
 0x5fa   : > { %v4654_v2 = vpop.xlane.xlu1 %4653  ;;  %v4684_v13 = vrot.slane %v4507_v11, 2 }
 0x5fb   : > { %v4726_v50 = vrot.slane %v4654_v2, 6  ;;  %v5158_v2 = vld [vmem:[%s325_s25 + $0x3] ss:$0 sm:$0xff] }
 0x5fc   : > { %v4685_v5 = vsel %vm2038_vm9, %v4682_v51, %v4684_v13  ;;  %vm4801_vm9 = vcmask 385024  }
 0x5fd   : > { %v4727_v47 = vsel %vm2565_vm2, %v4725_v17, %v4726_v50  ;;  %v4426_v3 = vpop.xlane.xlu0 %4425 }
 0x5fe   : > { %v4759_v34 = vsel %vm4758_vm12, %v4752_v21, %v4727_v47  ;;  %v4749_v36 = vsel %vm4744_vm3, %v4426_v3, %v4683_v53 }
 0x5ff   : > { %4765 = vxpose.xlu0.b32.start [1/6] (short) (narrow) %v4759_v34, 8  ;;  %v4756_v55 = vsel %vm4751_vm6, %v4749_v36, %v4709_v48 }
 0x603   : > { %v4656_v26 = vpop.xlane.xlu1 %4655 }
 0x604   : > { %v4728_v56 = vrot.slane %v4656_v26, 6 }
 0x605   : > { %v4665_v61 = vpop.xlane.xlu0 %4664 }
 0x606   : > { %v4729_v40 = vsel %vm2565_vm2, %v4726_v50, %v4728_v56  ;;  %v4736_v10 = vrot.slane %v4665_v61, 6 }
 0x607   : > { %v4658_v62 = vpop.xlane.xlu1 %4657  ;;  %v4760_v15 = vsel %vm4758_vm12, %v4753_v44, %v4729_v40 }
 0x608   : > { %v4730_v27 = vrot.slane %v4658_v62, 6  ;;  %4766 = vxpose.xlu0.b32.cont [2/6] (short) (narrow) %v4760_v15, 8 }
 0x60a   : > { %v4731_v60 = vsel %vm2565_vm2, %v4728_v56, %v4730_v27 }
 0x60b   : > { %v4761_v18 = vsel %vm4758_vm12, %v4754_v8, %v4731_v60 }
 0x60c   : > { %4767 = vxpose.xlu0.b32.cont [3/6] (short) (narrow) %v4761_v18, 8 }
 0x60d   : > { %v4660_v19 = vpop.xlane.xlu1 %4659 }
 0x60e   : > { %v4732_v0 = vrot.slane %v4660_v19, 6 }
 0x610   : > { %v4733_v12 = vsel %vm2565_vm2, %v4730_v27, %v4732_v0 }
 0x611   : > { %v4662_v31 = vpop.xlane.xlu1 %4661  ;;  %v4762_v29 = vsel %vm4758_vm12, %v4755_v63, %v4733_v12 }
 0x612   : > { %v4734_v57 = vrot.slane %v4662_v31, 6  ;;  %4768 = vxpose.xlu0.b32.cont [4/6] (short) (narrow) %v4762_v29, 8 }
 0x614   : > { %v4735_v58 = vsel %vm2565_vm2, %v4732_v0, %v4734_v57  ;;  %v4737_v20 = vsel %vm2565_vm2, %v4734_v57, %v4736_v10  ;;  %vm4813_vm2 = vcmask 386049  }
 0x615   : > { %v4428_v45 = vpop.xlane.xlu1 %4427  ;;  %v4763_v38 = vsel %vm4758_vm12, %v4756_v55, %v4735_v58 }
 0x616   : > { %v4750_v14 = vsel %vm4744_vm3, %v4428_v45, %v4685_v5  ;;  %4769 = vxpose.xlu0.b32.cont [5/6] (short) (narrow) %v4763_v38, 8 }
 0x617   : > { %v4757_v52 = vsel %vm4751_vm6, %v4750_v14, %v4711_v25 }
 0x618   : > { %v4764_v22 = vsel %vm4758_vm12, %v4757_v52, %v4737_v20 }
 0x61a   : > { %4770 = vxpose.xlu0.b32.end [6/6] (short) (narrow) %v4764_v22, 8 }
 0x686   : > { %v4781_v17 = vpop.trf.xlu0 }
 0x687   : > { %v4798_v50 = vadd.f32 %v4797_v41, %v4781_v17 }
 0x689   : > { %v4800_v32 = vmul.f32 %v4799_v24, %v4798_v50  ;;  %v4811_v47 = vmul.f32 %v5152_v28, %v4798_v50  ;;  %v4823_v21 = vmul.f32 %v5155_v6, %v4798_v50  ;;  %v4835_v1 = vmul.f32 %v5158_v2, %v4798_v50 }
 0x68b   : > { %4802 = vst.msk [vmem:[%s307_s9] sm:$0x1] %vm4801_vm9, %v4800_v32 }
 0x68c   : > { %5153 = vst.msk [vmem:[%s307_s9] sm:$0x2] %vm4813_vm2, %v4811_v47 }
 0x68d   : > { %5156 = vst.msk [vmem:[%s307_s9] sm:$0x4] %vm4825_vm5, %v4823_v21 }
 0x68e   : > { %5159 = vst.msk [vmem:[%s307_s9] sm:$0x8] %vm4837_vm1, %v4835_v1 }
 0x68f   : > { %5921 = shalt.err (!%p5918_p3)
}
 0x690   : > { %s5922_s21 = scalar_lea.hbm %s8527_s17, 64  ;;  %s5926_s24 = scalar_lea.hbm %s8579_s7, 128 }
 0x691   : > { %p5923_p4 = scmp.ne.s32.totalorder %s8527_s17, %s5922_s21  ;;  %p5927_p9 = scmp.lt.u32.totalorder %s8527_s17, %s8579_s7 }
 0x692   : > { %p5928_p10 = scmp.lt.u32.totalorder %s5926_s24, %s5922_s21  ;;  %p5930_p12 = scmp.lt.u32.totalorder %s5922_s21, %s8527_s17 }
 0x693   : > { %p5924_p7 = pnand %p5923_p4, %p6061_p5 }
 0x694   : > { %p5929_p11 = por %p5928_p10, %p5927_p9 }
 0x695   : > { %p5925_p8 = pneg %p5924_p7 }
 0x696   : > { %p5931_p13 = por %p5930_p12, %p5929_p11 }
 0x698   : > { %p5932_p0 = pnand %p5931_p13, %p5925_p8 }
 0x69a   : > { %5935 = shalt.err (!%p5932_p0)
}
 0x69b   : > { %s5978_s9 = smov 16   ;;  %s5979_s15 = smov 1  }
 0x69c   : > { %5693 = dma.vmem_to_hbm [thread:$0]  (%p6061_p5), %s8529_s10, 64, %s8527_s17, %s8531_s6, %s5978_s9, %s5978_s9, %s5979_s15  }
 0x69d PF: > { %p5699_p1 = scmp.ge.s32.totalorder %s5970_s29, 2  ;;  %s4868_s16 = sand.u32 1, %s5958_s26  }
 0x69e   : > { %s4869_s14 = scalar_lea.sflag [#allocation6], %s4868_s16 }
 0x69f   : > { %p5696_p2 = pnand %p5699_p1, %p6065_p6 }
 0x6a1   : > { %5953 = dma.done.wait (!%p5696_p2), %s4869_s14, 64  }
 0x6a2   : > { %5955 = vsyncadd (!%p5696_p2), %s4869_s14, 4294967232  ;;  %p18_p3 = scmp.ge.s32.totalorder %s6048_s8, 4   ;;  %s8767_s26 = smov %s5962_s27 }
 0x6a3   : > { %s8768_s27 = smov %s5966_s28  ;;  %s8769_s28 = smov %s6059_s11 }
 0x6a4   : > { %s8770_s29 = smov %s6048_s8  ;;  %20 = sbr.rel (!%p18_p3) target bundleno = 5 (0x5), region = 101 }
 0x6ab   :  { %4874 = vsyncpa [#allocation6], 1 }
 0x6ac   :  { %4876 = vsyncpa [#allocation6 + $0x1], 1 }

</bundles_post_ra>
